<compile_context>
chip_gen: v7x
topology: tpu7x:2x2x1
jax: 0.10.0
libtpu: 0.0.40
codegen_flags: <defaults>
</compile_context>

<pallas_src>
import functools

import jax
import jax.numpy as jnp
from jax import lax
from jax.experimental import pallas as pl
from jax.experimental.pallas import tpu as pltpu


# ----------------------------------------------------------------------------
# Helpers
# ----------------------------------------------------------------------------
def _batch_block(batch, cap):
    """Largest power-of-two batch block <= cap that divides `batch` while
    keeping at least 2 grid steps (so v7x's two TensorCores both get work)."""
    bb = 1
    while bb * 2 <= cap and batch % (bb * 2) == 0 and batch // (bb * 2) >= 2:
        bb *= 2
    return bb


# ----------------------------------------------------------------------------
# Pallas kernel: per-image conv-as-matmul,  Y = relu(X @ W + b)
#   X: (bb, OHW, K) bf16   W: (K, C) bf16   b: (1, C) f32   Y: (bb, OHW, C) bf16
# ----------------------------------------------------------------------------
def _conv_mm_kernel(x_ref, w_ref, b_ref, o_ref):
    w = w_ref[...]
    b = b_ref[...]
    for i in range(x_ref.shape[0]):                       # static small batch block
        y = jnp.dot(x_ref[i], w, preferred_element_type=jnp.float32)
        y = jnp.maximum(y + b, 0.0)                        # f32 epilogue (v5e-safe)
        o_ref[i] = y.astype(o_ref.dtype)                   # bf16 store


def conv_matmul_relu(x, w, b, *, batch_cap=8):
    """x: (B, OHW, K) bf16; w: (K, C) bf16; b: (1, C) f32 -> (B, OHW, C) bf16."""
    B, OHW, K = x.shape
    K2, C = w.shape
    assert K == K2
    bb = _batch_block(B, batch_cap)
    grid = (B // bb,)
    cost = pl.CostEstimate(
        flops=2 * B * OHW * K * C, transcendentals=0,
        bytes_accessed=B * OHW * K * 2 + K * C * 2 + C * 4 + B * OHW * C * 2)
    return pl.pallas_call(
        _conv_mm_kernel,
        out_shape=jax.ShapeDtypeStruct((B, OHW, C), jnp.bfloat16),
        grid=grid,
        in_specs=[
            pl.BlockSpec((bb, OHW, K), lambda i: (i, 0, 0)),
            pl.BlockSpec((K, C), lambda i: (0, 0)),        # resident across grid
            pl.BlockSpec((1, C), lambda i: (0, 0)),        # resident across grid
        ],
        out_specs=pl.BlockSpec((bb, OHW, C), lambda i: (i, 0, 0)),
        compiler_params=pltpu.CompilerParams(dimension_semantics=("parallel",)),
        cost_estimate=cost,
    )(x, w, b)


# ----------------------------------------------------------------------------
# Pallas kernel: fused  q = (lrelu(X @ Wfc + bfc)) @ Whead + bhead
#   X: (bb, 1, 3136) bf16 ; Wfc: (3136, 512) bf16 ; Whead: (512, Npad) bf16
# ----------------------------------------------------------------------------
def _fc_head_kernel(x_ref, wf_ref, bf_ref, wh_ref, bh_ref, o_ref):
    wf = wf_ref[...]
    bf = bf_ref[...]
    wh = wh_ref[...]
    bh = bh_ref[...]
    for i in range(x_ref.shape[0]):
        h = jnp.dot(x_ref[i], wf, preferred_element_type=jnp.float32) + bf
        h = jnp.where(h > 0.0, h, 0.01 * h)                # LeakyReLU(0.01), f32
        q = jnp.dot(h.astype(wh.dtype), wh, preferred_element_type=jnp.float32)
        o_ref[i] = q + bh                                  # f32, 128 lanes dense


def fc_head_fused(x, w_fc, b_fc, w_head, b_head, *, batch_cap=256):
    """x: (B, 1, 3136) bf16 -> q: (B, 1, Npad) f32 (head lane-padded to 128)."""
    B, one, K = x.shape
    K2, Hd = w_fc.shape
    Hd2, Np = w_head.shape
    assert one == 1 and K == K2 and Hd == Hd2
    bb = _batch_block(B, batch_cap)
    grid = (B // bb,)
    cost = pl.CostEstimate(
        flops=2 * B * (K * Hd + Hd * Np), transcendentals=0,
        bytes_accessed=(B * K * 2 + K * Hd * 2 + Hd * Np * 2
                        + Hd * 4 + Np * 4 + B * Np * 4))
    return pl.pallas_call(
        _fc_head_kernel,
        out_shape=jax.ShapeDtypeStruct((B, 1, Np), jnp.float32),
        grid=grid,
        in_specs=[
            pl.BlockSpec((bb, 1, K), lambda i: (i, 0, 0)),
            pl.BlockSpec((K, Hd), lambda i: (0, 0)),       # resident across grid
            pl.BlockSpec((1, Hd), lambda i: (0, 0)),
            pl.BlockSpec((Hd, Np), lambda i: (0, 0)),
            pl.BlockSpec((1, Np), lambda i: (0, 0)),
        ],
        out_specs=pl.BlockSpec((bb, 1, Np), lambda i: (i, 0, 0)),
        compiler_params=pltpu.CompilerParams(dimension_semantics=("parallel",)),
        cost_estimate=cost,
    )(x, w_fc, b_fc, w_head, b_head)


# ----------------------------------------------------------------------------
# Conv layer: one bf16 patches op (pure data movement) + Pallas matmul (NHWC)
# ----------------------------------------------------------------------------
def conv2d_relu_nhwc(x, wmat, b, ksize, stride):
    """x: (B, H, W, C_in) NHWC bf16; wmat: (C_in*KH*KW, C_out) bf16, rows ordered
    (c_in, kh, kw) -- exactly PyTorch weight.reshape(C_out, -1).T."""
    B = x.shape[0]
    # TODO(synk): build these patches inside the kernel (VMEM) to kill this HBM round-trip.
    patches = lax.conv_general_dilated_patches(
        x, filter_shape=(ksize, ksize), window_strides=(stride, stride),
        padding="VALID", dimension_numbers=("NHWC", "HWIO", "NHWC"))
    _, OH, OW, K = patches.shape                           # features = (c_in, kh, kw)
    cols = patches.reshape(B, OH * OW, K)                  # bf16
    C_out = wmat.shape[1]
    y = conv_matmul_relu(cols, wmat, b)                    # (B, OH*OW, C_out) bf16
    return y.reshape(B, OH, OW, C_out)                     # stays NHWC, no transpose


# ----------------------------------------------------------------------------
# DQN forward
# ----------------------------------------------------------------------------
def dqn_forward(prep, x, *, num_actions):
    # x arrives NCHW f32 like the PyTorch module; one cheap transpose + bf16 cast.
    x = jnp.transpose(x, (0, 2, 3, 1)).astype(jnp.bfloat16)            # NHWC bf16
    x = conv2d_relu_nhwc(x, prep["w_conv1"], prep["b_conv1"], 8, 4)    # (B,20,20,32)
    x = conv2d_relu_nhwc(x, prep["w_conv2"], prep["b_conv2"], 4, 2)    # (B, 9, 9,64)
    x = conv2d_relu_nhwc(x, prep["w_conv3"], prep["b_conv3"], 3, 1)    # (B, 7, 7,64)
    B = x.shape[0]
    flat = x.reshape(B, 1, -1)          # (B,1,3136) in (h,w,c) order; matches permuted w_fc
    q = fc_head_fused(flat, prep["w_fc"], prep["b_fc"],
                      prep["w_head"], prep["b_head"])                  # (B,1,128) f32
    return q[:, 0, :num_actions]


def prepare_params(p):
    """One-time (outside jit) repack of PyTorch-layout params into kernel layout."""
    prep = {}
    for i in (1, 2, 3):
        w = p[f"w_conv{i}"]                                   # (C_out, C_in, KH, KW)
        prep[f"w_conv{i}"] = w.reshape(w.shape[0], -1).T.astype(jnp.bfloat16)
        prep[f"b_conv{i}"] = p[f"b_conv{i}"].reshape(1, -1).astype(jnp.float32)
    # fc: PyTorch flattens NCHW as (c, h, w); our activations flatten NHWC as (h, w, c).
    # Fold that permutation into the weight once, and pre-transpose to (in, out).
    w_fc = p["w_fc"].reshape(512, 64, 7, 7).transpose(0, 2, 3, 1).reshape(512, 3136)
    prep["w_fc"] = w_fc.T.astype(jnp.bfloat16)                # (3136, 512)
    prep["b_fc"] = p["b_fc"].reshape(1, -1).astype(jnp.float32)
    # head: pre-transpose and zero-pad N up to a multiple of 128 (dense lane store).
    A = p["w_head"].shape[0]
    n_pad = ((A + 127) // 128) * 128
    prep["w_head"] = jnp.pad(p["w_head"].T, ((0, 0), (0, n_pad - A))).astype(jnp.bfloat16)
    prep["b_head"] = jnp.pad(p["b_head"], (0, n_pad - A)).reshape(1, -1).astype(jnp.float32)
    return prep


def init_params(key, channels, num_actions):
    """Deterministic, PyTorch-default-like (kaiming-uniform-ish) init, PyTorch layout."""
    def uniform(k, shape, fan_in):
        bound = 1.0 / jnp.sqrt(jnp.float32(fan_in))
        return jax.random.uniform(k, shape, jnp.float32, -bound, bound)

    ks = jax.random.split(key, 10)
    p = {}
    p["w_conv1"] = uniform(ks[0], (32, channels, 8, 8), channels * 8 * 8)
    p["b_conv1"] = uniform(ks[1], (32,), channels * 8 * 8)
    p["w_conv2"] = uniform(ks[2], (64, 32, 4, 4), 32 * 4 * 4)
    p["b_conv2"] = uniform(ks[3], (64,), 32 * 4 * 4)
    p["w_conv3"] = uniform(ks[4], (64, 64, 3, 3), 64 * 3 * 3)
    p["b_conv3"] = uniform(ks[5], (64,), 64 * 3 * 3)
    p["w_fc"]    = uniform(ks[6], (512, 3136), 3136)          # PyTorch Linear: (out, in)
    p["b_fc"]    = uniform(ks[7], (512,), 3136)
    p["w_head"]  = uniform(ks[8], (num_actions, 512), 512)
    p["b_head"]  = uniform(ks[9], (num_actions,), 512)
    return p


def reference_forward(p, x, num_actions):
    """Pure-JAX f32 reference mirroring the PyTorch module.  Weights and the
    input are rounded to bf16 so the comparison isolates layout / ordering
    correctness from MXU dtype numerics; biases and epilogues stay f32."""
    rnd = lambda a: a.astype(jnp.bfloat16).astype(jnp.float32)
    hi = jax.lax.Precision.HIGHEST

    def conv(y, w, b, stride):
        y = lax.conv_general_dilated(
            y, rnd(w), window_strides=(stride, stride), padding="VALID",
            dimension_numbers=("NCHW", "OIHW", "NCHW"), precision=hi)
        return jnp.maximum(y + b.reshape(1, -1, 1, 1), 0.0)

    y = conv(rnd(x), p["w_conv1"], p["b_conv1"], 4)
    y = conv(y, p["w_conv2"], p["b_conv2"], 2)
    y = conv(y, p["w_conv3"], p["b_conv3"], 1)
    flat = y.reshape(y.shape[0], -1)                          # PyTorch (c, h, w) flatten
    h = jnp.dot(flat, rnd(p["w_fc"]).T, precision=hi) + p["b_fc"]
    h = jnp.where(h > 0.0, h, 0.01 * h)
    q = jnp.dot(h, rnd(p["w_head"]).T, precision=hi) + p["b_head"]
    return q[:, :num_actions]


if __name__ == "__main__":
    # fc expects 3136 = 64*7*7 features, which pins the spatial size to 84x84
    # (classic Atari). Batch/channels kept small: B=2, channels=4, actions=4.
    B, C, H, W = 2, 4, 84, 84
    NUM_ACTIONS = 4

    key = jax.random.PRNGKey(0)
    k_x, k_p = jax.random.split(key)
    x = jax.random.normal(k_x, (B, C, H, W), dtype=jnp.float32)
    params = init_params(k_p, C, NUM_ACTIONS)
    prep = prepare_params(params)            # one-time weight repack, outside jit

    fwd = jax.jit(functools.partial(dqn_forward, num_actions=NUM_ACTIONS))
    q = jax.block_until_ready(fwd(prep, x))
    assert q.shape == (B, NUM_ACTIONS) and q.dtype == jnp.float32

    # Correctness check against the pure-JAX reference (bf16-rounded weights).
    q_ref = jax.block_until_ready(reference_forward(params, x, NUM_ACTIONS))
    err = float(jnp.max(jnp.abs(q - q_ref)))
    scale = float(jnp.max(jnp.abs(q_ref)))
    assert err <= 0.05 * scale + 2e-3, f"mismatch: max|dq|={err} scale={scale}"

    print("KERNEL_OK")
</pallas_src>

<mosaic_0001>
module attributes {stable_mosaic.version = 11 : i64} {
  func.func @_conv_mm_kernel(%arg0: i32, %arg1: memref<1x400x256xbf16, #tpu.memory_space<vmem>>, %arg2: memref<256x32xbf16, #tpu.memory_space<vmem>>, %arg3: memref<1x32xf32, #tpu.memory_space<vmem>>, %arg4: memref<1x400x32xbf16, #tpu.memory_space<vmem>>) attributes {dimension_semantics = [#tpu.dimension_semantics<parallel>], iteration_bounds = array<i64: 2>, scalar_prefetch = 0 : i64, scratch_operands = 0 : i64, tpu.core_type = #tpu.core_type<tc>, window_params = [{transform_indices = @transform_0, window_bounds = array<i64: 1, 400, 256>}, {pipeline_mode = #tpu.pipeline_mode<synchronous>, transform_indices = @transform_1, window_bounds = array<i64: 256, 32>}, {pipeline_mode = #tpu.pipeline_mode<synchronous>, transform_indices = @transform_2, window_bounds = array<i64: 1, 32>}, {transform_indices = @transform_3, window_bounds = array<i64: 1, 400, 32>}]} {
    %c0 = arith.constant 0 : index
    %c0_0 = arith.constant 0 : index
    %0 = vector.load %arg2[%c0, %c0_0] : memref<256x32xbf16, #tpu.memory_space<vmem>>, vector<256x32xbf16>
    %c0_1 = arith.constant 0 : index
    %c0_2 = arith.constant 0 : index
    %1 = vector.load %arg3[%c0_1, %c0_2] : memref<1x32xf32, #tpu.memory_space<vmem>>, vector<1x32xf32>
    %c0_3 = arith.constant 0 : index
    %c0_4 = arith.constant 0 : index
    %c0_5 = arith.constant 0 : index
    %2 = vector.load %arg1[%c0_3, %c0_4, %c0_5] : memref<1x400x256xbf16, #tpu.memory_space<vmem>>, vector<1x400x256xbf16>
    %3 = vector.shape_cast %2 : vector<1x400x256xbf16> to vector<400x256xbf16>
    %cst = arith.constant dense<0.000000e+00> : vector<400x32xf32>
    %4 = tpu.matmul %3, %0, %cst {dimension_numbers = #tpu.dot_dimension_numbers<[1], [0], [0], [1], [0, 0, 1, 1], [], []>} : vector<400x256xbf16>, vector<256x32xbf16>, vector<400x32xf32> -> vector<400x32xf32>
    %5 = vector.broadcast %1 : vector<1x32xf32> to vector<400x32xf32>
    %6 = arith.addf %4, %5 : vector<400x32xf32>
    %cst_6 = arith.constant 0.000000e+00 : f32
    %7 = vector.broadcast %cst_6 : f32 to vector<400x32xf32>
    %8 = arith.maximumf %6, %7 : vector<400x32xf32>
    %9 = arith.truncf %8 : vector<400x32xf32> to vector<400x32xbf16>
    %c0_7 = arith.constant 0 : index
    %c0_8 = arith.constant 0 : index
    %c0_9 = arith.constant 0 : index
    %10 = vector.load %arg4[%c0_7, %c0_8, %c0_9] : memref<1x400x32xbf16, #tpu.memory_space<vmem>>, vector<1x400x32xbf16>
    %11 = vector.shape_cast %10 : vector<1x400x32xbf16> to vector<400x32xbf16>
    %12 = vector.shape_cast %9 : vector<400x32xbf16> to vector<1x400x32xbf16>
    tpu.vector_store %arg4[%c0_7, %c0_8, %c0_9], %12 {strides = array<i32>} : memref<1x400x32xbf16, #tpu.memory_space<vmem>>, vector<1x400x32xbf16>,
    return
  }
  func.func @transform_0(%arg0: i32) -> (i32, i32, i32) {
    %c0_i32 = arith.constant 0 : i32
    %c0_i32_0 = arith.constant 0 : i32
    %c0_i32_1 = arith.constant 0 : i32
    return %arg0, %c0_i32, %c0_i32_0 : i32, i32, i32
  }
  func.func @transform_1(%arg0: i32) -> (i32, i32) {
    %c0_i32 = arith.constant 0 : i32
    %c0_i32_0 = arith.constant 0 : i32
    %c0_i32_1 = arith.constant 0 : i32
    return %c0_i32, %c0_i32_0 : i32, i32
  }
  func.func @transform_2(%arg0: i32) -> (i32, i32) {
    %c0_i32 = arith.constant 0 : i32
    %c0_i32_0 = arith.constant 0 : i32
    %c0_i32_1 = arith.constant 0 : i32
    return %c0_i32, %c0_i32_0 : i32, i32
  }
  func.func @transform_3(%arg0: i32) -> (i32, i32, i32) {
    %c0_i32 = arith.constant 0 : i32
    %c0_i32_0 = arith.constant 0 : i32
    %c0_i32_1 = arith.constant 0 : i32
    return %arg0, %c0_i32, %c0_i32_0 : i32, i32, i32
  }
}

module attributes {stable_mosaic.version = 11 : i64} {
  func.func @_conv_mm_kernel(%arg0: i32, %arg1: memref<1x81x512xbf16, #tpu.memory_space<vmem>>, %arg2: memref<512x64xbf16, #tpu.memory_space<vmem>>, %arg3: memref<1x64xf32, #tpu.memory_space<vmem>>, %arg4: memref<1x81x64xbf16, #tpu.memory_space<vmem>>) attributes {dimension_semantics = [#tpu.dimension_semantics<parallel>], iteration_bounds = array<i64: 2>, scalar_prefetch = 0 : i64, scratch_operands = 0 : i64, tpu.core_type = #tpu.core_type<tc>, window_params = [{transform_indices = @transform_0, window_bounds = array<i64: 1, 81, 512>}, {pipeline_mode = #tpu.pipeline_mode<synchronous>, transform_indices = @transform_1, window_bounds = array<i64: 512, 64>}, {pipeline_mode = #tpu.pipeline_mode<synchronous>, transform_indices = @transform_2, window_bounds = array<i64: 1, 64>}, {transform_indices = @transform_3, window_bounds = array<i64: 1, 81, 64>}]} {
    %c0 = arith.constant 0 : index
    %c0_0 = arith.constant 0 : index
    %0 = vector.load %arg2[%c0, %c0_0] : memref<512x64xbf16, #tpu.memory_space<vmem>>, vector<512x64xbf16>
    %c0_1 = arith.constant 0 : index
    %c0_2 = arith.constant 0 : index
    %1 = vector.load %arg3[%c0_1, %c0_2] : memref<1x64xf32, #tpu.memory_space<vmem>>, vector<1x64xf32>
    %c0_3 = arith.constant 0 : index
    %c0_4 = arith.constant 0 : index
    %c0_5 = arith.constant 0 : index
    %2 = vector.load %arg1[%c0_3, %c0_4, %c0_5] : memref<1x81x512xbf16, #tpu.memory_space<vmem>>, vector<1x81x512xbf16>
    %3 = vector.shape_cast %2 : vector<1x81x512xbf16> to vector<81x512xbf16>
    %cst = arith.constant dense<0.000000e+00> : vector<81x64xf32>
    %4 = tpu.matmul %3, %0, %cst {dimension_numbers = #tpu.dot_dimension_numbers<[1], [0], [0], [1], [0, 0, 1, 1], [], []>} : vector<81x512xbf16>, vector<512x64xbf16>, vector<81x64xf32> -> vector<81x64xf32>
    %5 = vector.broadcast %1 : vector<1x64xf32> to vector<81x64xf32>
    %6 = arith.addf %4, %5 : vector<81x64xf32>
    %cst_6 = arith.constant 0.000000e+00 : f32
    %7 = vector.broadcast %cst_6 : f32 to vector<81x64xf32>
    %8 = arith.maximumf %6, %7 : vector<81x64xf32>
    %9 = arith.truncf %8 : vector<81x64xf32> to vector<81x64xbf16>
    %c0_7 = arith.constant 0 : index
    %c0_8 = arith.constant 0 : index
    %c0_9 = arith.constant 0 : index
    %10 = vector.load %arg4[%c0_7, %c0_8, %c0_9] : memref<1x81x64xbf16, #tpu.memory_space<vmem>>, vector<1x81x64xbf16>
    %11 = vector.shape_cast %10 : vector<1x81x64xbf16> to vector<81x64xbf16>
    %12 = vector.shape_cast %9 : vector<81x64xbf16> to vector<1x81x64xbf16>
    tpu.vector_store %arg4[%c0_7, %c0_8, %c0_9], %12 {strides = array<i32>} : memref<1x81x64xbf16, #tpu.memory_space<vmem>>, vector<1x81x64xbf16>,
    return
  }
  func.func @transform_0(%arg0: i32) -> (i32, i32, i32) {
    %c0_i32 = arith.constant 0 : i32
    %c0_i32_0 = arith.constant 0 : i32
    %c0_i32_1 = arith.constant 0 : i32
    return %arg0, %c0_i32, %c0_i32_0 : i32, i32, i32
  }
  func.func @transform_1(%arg0: i32) -> (i32, i32) {
    %c0_i32 = arith.constant 0 : i32
    %c0_i32_0 = arith.constant 0 : i32
    %c0_i32_1 = arith.constant 0 : i32
    return %c0_i32, %c0_i32_0 : i32, i32
  }
  func.func @transform_2(%arg0: i32) -> (i32, i32) {
    %c0_i32 = arith.constant 0 : i32
    %c0_i32_0 = arith.constant 0 : i32
    %c0_i32_1 = arith.constant 0 : i32
    return %c0_i32, %c0_i32_0 : i32, i32
  }
  func.func @transform_3(%arg0: i32) -> (i32, i32, i32) {
    %c0_i32 = arith.constant 0 : i32
    %c0_i32_0 = arith.constant 0 : i32
    %c0_i32_1 = arith.constant 0 : i32
    return %arg0, %c0_i32, %c0_i32_0 : i32, i32, i32
  }
}

module attributes {stable_mosaic.version = 11 : i64} {
  func.func @_conv_mm_kernel(%arg0: i32, %arg1: memref<1x49x576xbf16, #tpu.memory_space<vmem>>, %arg2: memref<576x64xbf16, #tpu.memory_space<vmem>>, %arg3: memref<1x64xf32, #tpu.memory_space<vmem>>, %arg4: memref<1x49x64xbf16, #tpu.memory_space<vmem>>) attributes {dimension_semantics = [#tpu.dimension_semantics<parallel>], iteration_bounds = array<i64: 2>, scalar_prefetch = 0 : i64, scratch_operands = 0 : i64, tpu.core_type = #tpu.core_type<tc>, window_params = [{transform_indices = @transform_0, window_bounds = array<i64: 1, 49, 576>}, {pipeline_mode = #tpu.pipeline_mode<synchronous>, transform_indices = @transform_1, window_bounds = array<i64: 576, 64>}, {pipeline_mode = #tpu.pipeline_mode<synchronous>, transform_indices = @transform_2, window_bounds = array<i64: 1, 64>}, {transform_indices = @transform_3, window_bounds = array<i64: 1, 49, 64>}]} {
    %c0 = arith.constant 0 : index
    %c0_0 = arith.constant 0 : index
    %0 = vector.load %arg2[%c0, %c0_0] : memref<576x64xbf16, #tpu.memory_space<vmem>>, vector<576x64xbf16>
    %c0_1 = arith.constant 0 : index
    %c0_2 = arith.constant 0 : index
    %1 = vector.load %arg3[%c0_1, %c0_2] : memref<1x64xf32, #tpu.memory_space<vmem>>, vector<1x64xf32>
    %c0_3 = arith.constant 0 : index
    %c0_4 = arith.constant 0 : index
    %c0_5 = arith.constant 0 : index
    %2 = vector.load %arg1[%c0_3, %c0_4, %c0_5] : memref<1x49x576xbf16, #tpu.memory_space<vmem>>, vector<1x49x576xbf16>
    %3 = vector.shape_cast %2 : vector<1x49x576xbf16> to vector<49x576xbf16>
    %cst = arith.constant dense<0.000000e+00> : vector<49x64xf32>
    %4 = tpu.matmul %3, %0, %cst {dimension_numbers = #tpu.dot_dimension_numbers<[1], [0], [0], [1], [0, 0, 1, 1], [], []>} : vector<49x576xbf16>, vector<576x64xbf16>, vector<49x64xf32> -> vector<49x64xf32>
    %5 = vector.broadcast %1 : vector<1x64xf32> to vector<49x64xf32>
    %6 = arith.addf %4, %5 : vector<49x64xf32>
    %cst_6 = arith.constant 0.000000e+00 : f32
    %7 = vector.broadcast %cst_6 : f32 to vector<49x64xf32>
    %8 = arith.maximumf %6, %7 : vector<49x64xf32>
    %9 = arith.truncf %8 : vector<49x64xf32> to vector<49x64xbf16>
    %c0_7 = arith.constant 0 : index
    %c0_8 = arith.constant 0 : index
    %c0_9 = arith.constant 0 : index
    %10 = vector.load %arg4[%c0_7, %c0_8, %c0_9] : memref<1x49x64xbf16, #tpu.memory_space<vmem>>, vector<1x49x64xbf16>
    %11 = vector.shape_cast %10 : vector<1x49x64xbf16> to vector<49x64xbf16>
    %12 = vector.shape_cast %9 : vector<49x64xbf16> to vector<1x49x64xbf16>
    tpu.vector_store %arg4[%c0_7, %c0_8, %c0_9], %12 {strides = array<i32>} : memref<1x49x64xbf16, #tpu.memory_space<vmem>>, vector<1x49x64xbf16>,
    return
  }
  func.func @transform_0(%arg0: i32) -> (i32, i32, i32) {
    %c0_i32 = arith.constant 0 : i32
    %c0_i32_0 = arith.constant 0 : i32
    %c0_i32_1 = arith.constant 0 : i32
    return %arg0, %c0_i32, %c0_i32_0 : i32, i32, i32
  }
  func.func @transform_1(%arg0: i32) -> (i32, i32) {
    %c0_i32 = arith.constant 0 : i32
    %c0_i32_0 = arith.constant 0 : i32
    %c0_i32_1 = arith.constant 0 : i32
    return %c0_i32, %c0_i32_0 : i32, i32
  }
  func.func @transform_2(%arg0: i32) -> (i32, i32) {
    %c0_i32 = arith.constant 0 : i32
    %c0_i32_0 = arith.constant 0 : i32
    %c0_i32_1 = arith.constant 0 : i32
    return %c0_i32, %c0_i32_0 : i32, i32
  }
  func.func @transform_3(%arg0: i32) -> (i32, i32, i32) {
    %c0_i32 = arith.constant 0 : i32
    %c0_i32_0 = arith.constant 0 : i32
    %c0_i32_1 = arith.constant 0 : i32
    return %arg0, %c0_i32, %c0_i32_0 : i32, i32, i32
  }
}

module attributes {stable_mosaic.version = 11 : i64} {
  func.func @_fc_head_kernel(%arg0: i32, %arg1: memref<1x1x3136xbf16, #tpu.memory_space<vmem>>, %arg2: memref<3136x512xbf16, #tpu.memory_space<vmem>>, %arg3: memref<1x512xf32, #tpu.memory_space<vmem>>, %arg4: memref<512x128xbf16, #tpu.memory_space<vmem>>, %arg5: memref<1x128xf32, #tpu.memory_space<vmem>>, %arg6: memref<1x1x128xf32, #tpu.memory_space<vmem>>) attributes {dimension_semantics = [#tpu.dimension_semantics<parallel>], iteration_bounds = array<i64: 2>, scalar_prefetch = 0 : i64, scratch_operands = 0 : i64, tpu.core_type = #tpu.core_type<tc>, window_params = [{transform_indices = @transform_0, window_bounds = array<i64: 1, 1, 3136>}, {pipeline_mode = #tpu.pipeline_mode<synchronous>, transform_indices = @transform_1, window_bounds = array<i64: 3136, 512>}, {pipeline_mode = #tpu.pipeline_mode<synchronous>, transform_indices = @transform_2, window_bounds = array<i64: 1, 512>}, {pipeline_mode = #tpu.pipeline_mode<synchronous>, transform_indices = @transform_3, window_bounds = array<i64: 512, 128>}, {pipeline_mode = #tpu.pipeline_mode<synchronous>, transform_indices = @transform_4, window_bounds = array<i64: 1, 128>}, {transform_indices = @transform_5, window_bounds = array<i64: 1, 1, 128>}]} {
    %c0 = arith.constant 0 : index
    %c0_0 = arith.constant 0 : index
    %0 = vector.load %arg2[%c0, %c0_0] : memref<3136x512xbf16, #tpu.memory_space<vmem>>, vector<3136x512xbf16>
    %c0_1 = arith.constant 0 : index
    %c0_2 = arith.constant 0 : index
    %1 = vector.load %arg3[%c0_1, %c0_2] : memref<1x512xf32, #tpu.memory_space<vmem>>, vector<1x512xf32>
    %c0_3 = arith.constant 0 : index
    %c0_4 = arith.constant 0 : index
    %2 = vector.load %arg4[%c0_3, %c0_4] : memref<512x128xbf16, #tpu.memory_space<vmem>>, vector<512x128xbf16>
    %c0_5 = arith.constant 0 : index
    %c0_6 = arith.constant 0 : index
    %3 = vector.load %arg5[%c0_5, %c0_6] : memref<1x128xf32, #tpu.memory_space<vmem>>, vector<1x128xf32>
    %c0_7 = arith.constant 0 : index
    %c0_8 = arith.constant 0 : index
    %c0_9 = arith.constant 0 : index
    %4 = vector.load %arg1[%c0_7, %c0_8, %c0_9] : memref<1x1x3136xbf16, #tpu.memory_space<vmem>>, vector<1x1x3136xbf16>
    %5 = vector.shape_cast %4 : vector<1x1x3136xbf16> to vector<1x3136xbf16>
    %cst = arith.constant dense<0.000000e+00> : vector<1x512xf32>
    %6 = tpu.matmul %5, %0, %cst {dimension_numbers = #tpu.dot_dimension_numbers<[1], [0], [0], [1], [0, 0, 1, 1], [], []>} : vector<1x3136xbf16>, vector<3136x512xbf16>, vector<1x512xf32> -> vector<1x512xf32>
    %7 = arith.addf %6, %1 : vector<1x512xf32>
    %cst_10 = arith.constant 0.000000e+00 : f32
    %8 = vector.broadcast %cst_10 : f32 to vector<1x512xf32>
    %9 = arith.cmpf ogt, %7, %8 : vector<1x512xf32>
    %cst_11 = arith.constant 0.00999999977 : f32
    %10 = vector.broadcast %cst_11 : f32 to vector<1x512xf32>
    %11 = arith.mulf %10, %7 : vector<1x512xf32>
    %12 = arith.select %9, %7, %11 : vector<1x512xi1>, vector<1x512xf32>
    %13 = arith.truncf %12 : vector<1x512xf32> to vector<1x512xbf16>
    %cst_12 = arith.constant dense<0.000000e+00> : vector<1x128xf32>
    %14 = tpu.matmul %13, %2, %cst_12 {dimension_numbers = #tpu.dot_dimension_numbers<[1], [0], [0], [1], [0, 0, 1, 1], [], []>} : vector<1x512xbf16>, vector<512x128xbf16>, vector<1x128xf32> -> vector<1x128xf32>
    %15 = arith.addf %14, %3 : vector<1x128xf32>
    %c0_13 = arith.constant 0 : index
    %c0_14 = arith.constant 0 : index
    %c0_15 = arith.constant 0 : index
    %16 = vector.load %arg6[%c0_13, %c0_14, %c0_15] : memref<1x1x128xf32, #tpu.memory_space<vmem>>, vector<1x1x128xf32>
    %17 = vector.shape_cast %16 : vector<1x1x128xf32> to vector<1x128xf32>
    %18 = vector.shape_cast %15 : vector<1x128xf32> to vector<1x1x128xf32>
    tpu.vector_store %arg6[%c0_13, %c0_14, %c0_15], %18 {strides = array<i32>} : memref<1x1x128xf32, #tpu.memory_space<vmem>>, vector<1x1x128xf32>,
    return
  }
  func.func @transform_0(%arg0: i32) -> (i32, i32, i32) {
    %c0_i32 = arith.constant 0 : i32
    %c0_i32_0 = arith.constant 0 : i32
    %c0_i32_1 = arith.constant 0 : i32
    return %arg0, %c0_i32, %c0_i32_0 : i32, i32, i32
  }
  func.func @transform_1(%arg0: i32) -> (i32, i32) {
    %c0_i32 = arith.constant 0 : i32
    %c0_i32_0 = arith.constant 0 : i32
    %c0_i32_1 = arith.constant 0 : i32
    return %c0_i32, %c0_i32_0 : i32, i32
  }
  func.func @transform_2(%arg0: i32) -> (i32, i32) {
    %c0_i32 = arith.constant 0 : i32
    %c0_i32_0 = arith.constant 0 : i32
    %c0_i32_1 = arith.constant 0 : i32
    return %c0_i32, %c0_i32_0 : i32, i32
  }
  func.func @transform_3(%arg0: i32) -> (i32, i32) {
    %c0_i32 = arith.constant 0 : i32
    %c0_i32_0 = arith.constant 0 : i32
    %c0_i32_1 = arith.constant 0 : i32
    return %c0_i32, %c0_i32_0 : i32, i32
  }
  func.func @transform_4(%arg0: i32) -> (i32, i32) {
    %c0_i32 = arith.constant 0 : i32
    %c0_i32_0 = arith.constant 0 : i32
    %c0_i32_1 = arith.constant 0 : i32
    return %c0_i32, %c0_i32_0 : i32, i32
  }
  func.func @transform_5(%arg0: i32) -> (i32, i32, i32) {
    %c0_i32 = arith.constant 0 : i32
    %c0_i32_0 = arith.constant 0 : i32
    %c0_i32_1 = arith.constant 0 : i32
    return %arg0, %c0_i32, %c0_i32_0 : i32, i32, i32
  }
}

</mosaic_0001>

<bundles_post_ra>
// kernel: dqn_forward.4
= control target key start
LH: loop header
LB: loop body
LE: loop exit
PB: predicated region body
PF: predicated region fallthrough
CT: control target
= control target key end

     0   :  { %s1535_s12 = smov 0   ;;  %s1845_s0 = inlined_call_operand.vmem [shape: bf16[2,400,256], index: 0, kind: input, shape index: {}]   ;;  %s1846_s1 = inlined_call_operand.vmem [shape: bf16[256,32], index: 1, kind: input, shape index: {}]   ;;  %s1847_s2 = inlined_call_operand.vmem [shape: f32[1,32], index: 2, kind: input, shape index: {}]   ;;  %s1848_s3 = inlined_call_operand.vmem [shape: bf16[2,400,32], index: 3, kind: output, shape index: {}]  }
   0x1 LB: > { %s1196_s13 = sadd.s32 4294967295, %s1512_s12   ;;  %p1200_p0 = scmp.ge.s32.totalorder %s1512_s12, 1  ;;  %s1512_s12 = sphi %s1535_s12, %s13_s12  }
   0x2   : > { %p137_p1 = scmp.lt.s32.totalorder %s1512_s12, 3 }
   0x4   : > { %p138_p2 = pnand %p1200_p0, %p137_p1 }
   0x5   : > { %v1415_v0 = vld [vmem:[%s1846_s1] sm:$0xff] (!%p138_p2)   ;;  %v1514_v1 = vmov (!%p138_p2), 0   ;;  %v1416_v2 = vld [vmem:[%s1846_s1 + $0x8] sm:$0xff] (!%p138_p2)   ;;  %p161_p3 = scmp.lt.s32.totalorder (!%p138_p2), %s1196_s13, 1  ;;  %v1417_v3 = vld [vmem:[%s1846_s1 + $0x10] sm:$0xff] (!%p138_p2)   ;;  %vm1090_vm0 = vcmask (!%p138_p2), 257024  }
   0x6   : > { %141 = sbr.rel (%p138_p2) target bundleno = 387 (0x183), region = 32  ;;  %607 = vmatprep.subr.bf16.mxu0 (!%p138_p2), %v1514_v1  ;;  %1372 = vmatprep.subr.bf16.mxu1 (!%p138_p2), %v1514_v1  ;;  %v1418_v4 = vld [vmem:[%s1846_s1 + $0x18] sm:$0xff] (!%p138_p2)   ;;  %v1419_v5 = vld [vmem:[%s1846_s1 + $0x20] sm:$0xff] (!%p138_p2)   ;;  %v1420_v7 = vld [vmem:[%s1846_s1 + $0x28] sm:$0xff] (!%p138_p2)  }
   0x7   : > { %608 = vmatpush1.bf16.msra.mxu0 (!%p138_p2), %v1415_v0  ;;  %1388 = vmatpush1.bf16.msra.mxu1 (!%p138_p2), %v1415_v0  ;;  %v1421_v9 = vld [vmem:[%s1846_s1 + $0x30] sm:$0xff] (!%p138_p2)   ;;  %v1422_v10 = vld [vmem:[%s1846_s1 + $0x38] sm:$0xff] (!%p138_p2)   ;;  %v1423_v11 = vld [vmem:[%s1846_s1 + $0x40] sm:$0xff] (!%p138_p2)  }
   0x8   : > { %609 = vmatprep.subr.bf16.mxu0 (!%p138_p2), %v1514_v1  ;;  %1373 = vmatprep.subr.bf16.mxu1 (!%p138_p2), %v1514_v1  ;;  %v1424_v12 = vld [vmem:[%s1846_s1 + $0x48] sm:$0xff] (!%p138_p2)   ;;  %v1425_v13 = vld [vmem:[%s1846_s1 + $0x50] sm:$0xff] (!%p138_p2)   ;;  %v1426_v14 = vld [vmem:[%s1846_s1 + $0x58] sm:$0xff] (!%p138_p2)  }
   0x9   : > { %v1427_v15 = vld [vmem:[%s1846_s1 + $0x60] sm:$0xff] (!%p138_p2)   ;;  %v1428_v16 = vld [vmem:[%s1846_s1 + $0x68] sm:$0xff] (!%p138_p2)   ;;  %v1429_v17 = vld [vmem:[%s1846_s1 + $0x70] sm:$0xff] (!%p138_p2)  }
   0xa   : > { %v1430_v18 = vld [vmem:[%s1846_s1 + $0x78] sm:$0xff] (!%p138_p2)  }
   0xb   : > { %610 = vmatpush1.bf16.msra.mxu0 (!%p138_p2), %v1416_v2  ;;  %1389 = vmatpush1.bf16.msra.mxu1 (!%p138_p2), %v1416_v2 }
   0xc   : > { %611 = vmatprep.subr.bf16.mxu0 (!%p138_p2), %v1514_v1  ;;  %1374 = vmatprep.subr.bf16.mxu1 (!%p138_p2), %v1514_v1 }
   0xd   : > { %s1850_s13 = smov (!%p161_p3, %s1196_s13), 1 }
   0xe   : > { %s1404_s22 = smul.u32 400, %s1850_s13 }
   0xf   : > { %612 = vmatpush1.bf16.msra.mxu0 %v1417_v3  ;;  %1390 = vmatpush1.bf16.msra.mxu1 %v1417_v3  ;;  %v1684_v3 = vld [vmem:[%s1847_s2] ss:$0 sm:$0xff]  ;;  %s1405_s28 = smul.u32 200, %s1850_s13 }
  0x10   : > { %613 = vmatprep.subr.bf16.mxu0 %v1514_v1  ;;  %1375 = vmatprep.subr.bf16.mxu1 %v1514_v1  ;;  %s1572_s27 = scalar_lea.vmem %s1845_s0, %s1404_s22 }
  0x11   : > { %v1433_v6 = vld [vmem:[%s1572_s27 + $0x4] ss:$8 sps:$4 sm:$0xff]   ;;  %v1436_v8 = vld [vmem:[%s1572_s27 + $0xd4] ss:$8 sps:$4 sm:$0xff]   ;;  %v1431_v19 = vld [vmem:[%s1572_s27] ss:$8 sps:$4 sm:$0xff]   ;;  %s1694_s29 = scalar_lea.vmem %s1848_s3, %s1405_s28 }
  0x12   : > { %639 = vmatprep.mubr.bf16.mxu0 %v1433_v6  ;;  %743 = vmatprep.mubr.bf16.mxu1 %v1436_v8  ;;  %v1434_v20 = vld [vmem:[%s1572_s27 + $0xd0] ss:$8 sps:$4 sm:$0xff]   ;;  %v1437_v21 = vld [vmem:[%s1572_s27 + $0x14] ss:$8 sps:$4 sm:$0xff]   ;;  %v1440_v22 = vld [vmem:[%s1572_s27 + $0xe4] ss:$8 sps:$4 sm:$0xff]  }
  0x13   : > { %614 = vmatpush1.bf16.msra.mxu0 %v1418_v4  ;;  %1391 = vmatpush1.bf16.msra.mxu1 %v1418_v4  ;;  %v1439_v23 = vld [vmem:[%s1572_s27 + $0x10] ss:$8 sps:$4 sm:$0xff]   ;;  %v1442_v24 = vld [vmem:[%s1572_s27 + $0xe0] ss:$8 sps:$4 sm:$0xff]   ;;  %v1443_v25 = vld [vmem:[%s1572_s27 + $0x24] ss:$8 sps:$4 sm:$0xff]  }
  0x14   : > { %615 = vmatprep.subr.bf16.mxu0 %v1514_v1  ;;  %1376 = vmatprep.subr.bf16.mxu1 %v1514_v1  ;;  %v1446_v26 = vld [vmem:[%s1572_s27 + $0xf4] ss:$8 sps:$4 sm:$0xff]   ;;  %v1445_v27 = vld [vmem:[%s1572_s27 + $0x20] ss:$8 sps:$4 sm:$0xff]   ;;  %v1448_v28 = vld [vmem:[%s1572_s27 + $0xf0] ss:$8 sps:$4 sm:$0xff]  }
  0x15   : > { %v1449_v29 = vld [vmem:[%s1572_s27 + $0x34] ss:$8 sps:$4 sm:$0xff]   ;;  %v1452_v30 = vld [vmem:[%s1572_s27 + $0x104] ss:$8 sps:$4 sm:$0xff]   ;;  %v1451_v31 = vld [vmem:[%s1572_s27 + $0x30] ss:$8 sps:$4 sm:$0xff]  }
  0x16   : > { %v1454_v32 = vld [vmem:[%s1572_s27 + $0x100] ss:$8 sps:$4 sm:$0xff]   ;;  %v1455_v33 = vld [vmem:[%s1572_s27 + $0x44] ss:$8 sps:$4 sm:$0xff]   ;;  %v1458_v34 = vld [vmem:[%s1572_s27 + $0x114] ss:$8 sps:$4 sm:$0xff]  }
  0x17   : > { %616 = vmatpush1.bf16.msra.mxu0 %v1419_v5  ;;  %1392 = vmatpush1.bf16.msra.mxu1 %v1419_v5  ;;  %v1457_v35 = vld [vmem:[%s1572_s27 + $0x40] ss:$8 sps:$4 sm:$0xff]   ;;  %v1460_v36 = vld [vmem:[%s1572_s27 + $0x110] ss:$8 sps:$4 sm:$0xff]   ;;  %v1461_v37 = vld [vmem:[%s1572_s27 + $0x54] ss:$8 sps:$4 sm:$0xff]  }
  0x18   : > { %617 = vmatprep.subr.bf16.mxu0 %v1514_v1  ;;  %1377 = vmatprep.subr.bf16.mxu1 %v1514_v1  ;;  %v1464_v38 = vld [vmem:[%s1572_s27 + $0x124] ss:$8 sps:$4 sm:$0xff]   ;;  %v1463_v39 = vld [vmem:[%s1572_s27 + $0x50] ss:$8 sps:$4 sm:$0xff]   ;;  %v1466_v40 = vld [vmem:[%s1572_s27 + $0x120] ss:$8 sps:$4 sm:$0xff]  }
  0x19   : > { %v1467_v41 = vld [vmem:[%s1572_s27 + $0x64] ss:$8 sps:$4 sm:$0xff]   ;;  %v1470_v42 = vld [vmem:[%s1572_s27 + $0x134] ss:$8 sps:$4 sm:$0xff]   ;;  %v1469_v43 = vld [vmem:[%s1572_s27 + $0x60] ss:$8 sps:$4 sm:$0xff]  }
  0x1a   : > { %v1472_v44 = vld [vmem:[%s1572_s27 + $0x130] ss:$8 sps:$4 sm:$0xff]   ;;  %v1473_v45 = vld [vmem:[%s1572_s27 + $0x74] ss:$8 sps:$4 sm:$0xff]   ;;  %v1476_v46 = vld [vmem:[%s1572_s27 + $0x144] ss:$8 sps:$4 sm:$0xff]  }
  0x1b   : > { %618 = vmatpush1.bf16.msra.mxu0 %v1420_v7  ;;  %1393 = vmatpush1.bf16.msra.mxu1 %v1420_v7  ;;  %v1475_v47 = vld [vmem:[%s1572_s27 + $0x70] ss:$8 sps:$4 sm:$0xff]   ;;  %v1478_v48 = vld [vmem:[%s1572_s27 + $0x140] ss:$8 sps:$4 sm:$0xff]   ;;  %v1479_v49 = vld [vmem:[%s1572_s27 + $0x84] ss:$8 sps:$4 sm:$0xff]  }
  0x1c   : > { %619 = vmatprep.subr.bf16.mxu0 %v1514_v1  ;;  %1378 = vmatprep.subr.bf16.mxu1 %v1514_v1  ;;  %v1482_v50 = vld [vmem:[%s1572_s27 + $0x154] ss:$8 sps:$4 sm:$0xff]   ;;  %v1481_v51 = vld [vmem:[%s1572_s27 + $0x80] ss:$8 sps:$4 sm:$0xff]   ;;  %v1484_v52 = vld [vmem:[%s1572_s27 + $0x150] ss:$8 sps:$4 sm:$0xff]  }
  0x1d   : > { %v1485_v53 = vld [vmem:[%s1572_s27 + $0x94] ss:$8 sps:$4 sm:$0xff]   ;;  %v1488_v54 = vld [vmem:[%s1572_s27 + $0x164] ss:$8 sps:$4 sm:$0xff]   ;;  %v1487_v55 = vld [vmem:[%s1572_s27 + $0x90] ss:$8 sps:$4 sm:$0xff]  }
  0x1e   : > { %v1490_v56 = vld [vmem:[%s1572_s27 + $0x160] ss:$8 sps:$4 sm:$0xff]   ;;  %v1491_v57 = vld [vmem:[%s1572_s27 + $0xa4] ss:$8 sps:$4 sm:$0xff]   ;;  %v1494_v58 = vld [vmem:[%s1572_s27 + $0x174] ss:$8 sps:$4 sm:$0xff]  }
  0x1f   : > { %620 = vmatpush1.bf16.msra.mxu0 %v1421_v9  ;;  %1394 = vmatpush1.bf16.msra.mxu1 %v1421_v9  ;;  %v1493_v59 = vld [vmem:[%s1572_s27 + $0xa0] ss:$8 sps:$4 sm:$0xff]   ;;  %v1496_v60 = vld [vmem:[%s1572_s27 + $0x170] ss:$8 sps:$4 sm:$0xff]   ;;  %v1497_v61 = vld [vmem:[%s1572_s27 + $0xb4] ss:$8 sps:$4 sm:$0xff]  }
  0x20   : > { %621 = vmatprep.subr.bf16.mxu0 %v1514_v1  ;;  %1379 = vmatprep.subr.bf16.mxu1 %v1514_v1  ;;  %v1500_v62 = vld [vmem:[%s1572_s27 + $0x184] ss:$8 sps:$4 sm:$0xff]   ;;  %v1499_v63 = vld [vmem:[%s1572_s27 + $0xb0] ss:$8 sps:$4 sm:$0xff]   ;;  %v1502_v0 = vld [vmem:[%s1572_s27 + $0x180] ss:$8 sps:$4 sm:$0xff]  }
  0x21   : > { %v1505_v2 = vld [vmem:[%s1572_s27 + $0xc0] ss:$8 sps:$4 sm:$0xff]  }
  0x23   : > { %622 = vmatpush1.bf16.msra.mxu0 %v1422_v10  ;;  %1395 = vmatpush1.bf16.msra.mxu1 %v1422_v10 }
  0x24   : > { %623 = vmatprep.subr.bf16.mxu0 %v1514_v1  ;;  %1380 = vmatprep.subr.bf16.mxu1 %v1514_v1 }
  0x27   : > { %624 = vmatpush1.bf16.msra.mxu0 %v1423_v11  ;;  %1396 = vmatpush1.bf16.msra.mxu1 %v1423_v11 }
  0x28   : > { %625 = vmatprep.subr.bf16.mxu0 %v1514_v1  ;;  %1381 = vmatprep.subr.bf16.mxu1 %v1514_v1 }
  0x2b   : > { %626 = vmatpush1.bf16.msra.mxu0 %v1424_v12  ;;  %1397 = vmatpush1.bf16.msra.mxu1 %v1424_v12 }
  0x2c   : > { %627 = vmatprep.subr.bf16.mxu0 %v1514_v1  ;;  %1382 = vmatprep.subr.bf16.mxu1 %v1514_v1 }
  0x2f   : > { %628 = vmatpush1.bf16.msra.mxu0 %v1425_v13  ;;  %1398 = vmatpush1.bf16.msra.mxu1 %v1425_v13 }
  0x30   : > { %629 = vmatprep.subr.bf16.mxu0 %v1514_v1  ;;  %1383 = vmatprep.subr.bf16.mxu1 %v1514_v1 }
  0x33   : > { %630 = vmatpush1.bf16.msra.mxu0 %v1426_v14  ;;  %1399 = vmatpush1.bf16.msra.mxu1 %v1426_v14 }
  0x34   : > { %631 = vmatprep.subr.bf16.mxu0 %v1514_v1  ;;  %1384 = vmatprep.subr.bf16.mxu1 %v1514_v1 }
  0x37   : > { %632 = vmatpush1.bf16.msra.mxu0 %v1427_v15  ;;  %1400 = vmatpush1.bf16.msra.mxu1 %v1427_v15 }
  0x38   : > { %633 = vmatprep.subr.bf16.mxu0 %v1514_v1  ;;  %1385 = vmatprep.subr.bf16.mxu1 %v1514_v1 }
  0x3b   : > { %634 = vmatpush1.bf16.msra.mxu0 %v1428_v16  ;;  %1401 = vmatpush1.bf16.msra.mxu1 %v1428_v16 }
  0x3c   : > { %635 = vmatprep.subr.bf16.mxu0 %v1514_v1  ;;  %1386 = vmatprep.subr.bf16.mxu1 %v1514_v1 }
  0x3f   : > { %636 = vmatpush1.bf16.msra.mxu0 %v1429_v17  ;;  %1402 = vmatpush1.bf16.msra.mxu1 %v1429_v17 }
  0x40   : > { %637 = vmatprep.subr.bf16.mxu0 %v1514_v1  ;;  %1387 = vmatprep.subr.bf16.mxu1 %v1514_v1  ;;  %v1503_v1 = vld [vmem:[%s1572_s27 + $0xc4] ss:$8 sps:$4 sm:$0xff]  }
  0x43   : > { %638 = vmatpush1.bf16.msra.mxu0 %v1430_v18  ;;  %1403 = vmatpush1.bf16.msra.mxu1 %v1430_v18 }
  0x46   : > { %640 = vmatmul.mubr.bf16.vlgmr.msra.gmra.mrb[0].mxu0 %v1431_v19  ;;  %744 = vmatmul.mubr.bf16.vlgmr.msra.gmra.mrb[0].mxu1 %v1434_v20 }
  0x47   : > { %647 = vmatprep.mubr.bf16.mxu0 %v1437_v21  ;;  %751 = vmatprep.mubr.bf16.mxu1 %v1440_v22 }
  0x4e   : > { %648 = vmatmul.mubr.bf16.gmra.mrb[4].mxu0 %v1439_v23  ;;  %752 = vmatmul.mubr.bf16.gmra.mrb[4].mxu1 %v1442_v24 }
  0x4f   : > { %655 = vmatprep.mubr.bf16.mxu0 %v1443_v25  ;;  %759 = vmatprep.mubr.bf16.mxu1 %v1446_v26 }
  0x56   : > { %656 = vmatmul.mubr.bf16.gmra.mrb[8].mxu0 %v1445_v27  ;;  %760 = vmatmul.mubr.bf16.gmra.mrb[8].mxu1 %v1448_v28 }
  0x57   : > { %663 = vmatprep.mubr.bf16.mxu0 %v1449_v29  ;;  %767 = vmatprep.mubr.bf16.mxu1 %v1452_v30 }
  0x5e   : > { %664 = vmatmul.mubr.bf16.gmra.mrb[12].mxu0 %v1451_v31  ;;  %768 = vmatmul.mubr.bf16.gmra.mrb[12].mxu1 %v1454_v32 }
  0x5f   : > { %671 = vmatprep.mubr.bf16.mxu0 %v1455_v33  ;;  %775 = vmatprep.mubr.bf16.mxu1 %v1458_v34 }
  0x66   : > { %672 = vmatmul.mubr.bf16.gmra.mrb[16].mxu0 %v1457_v35  ;;  %776 = vmatmul.mubr.bf16.gmra.mrb[16].mxu1 %v1460_v36 }
  0x67   : > { %679 = vmatprep.mubr.bf16.mxu0 %v1461_v37  ;;  %783 = vmatprep.mubr.bf16.mxu1 %v1464_v38 }
  0x6e   : > { %680 = vmatmul.mubr.bf16.gmra.mrb[20].mxu0 %v1463_v39  ;;  %784 = vmatmul.mubr.bf16.gmra.mrb[20].mxu1 %v1466_v40 }
  0x6f   : > { %687 = vmatprep.mubr.bf16.mxu0 %v1467_v41  ;;  %791 = vmatprep.mubr.bf16.mxu1 %v1470_v42 }
  0x76   : > { %688 = vmatmul.mubr.bf16.gmra.mrb[24].mxu0 %v1469_v43  ;;  %792 = vmatmul.mubr.bf16.gmra.mrb[24].mxu1 %v1472_v44 }
  0x77   : > { %695 = vmatprep.mubr.bf16.mxu0 %v1473_v45  ;;  %799 = vmatprep.mubr.bf16.mxu1 %v1476_v46 }
  0x7e   : > { %696 = vmatmul.mubr.bf16.gmra.mrb[28].mxu0 %v1475_v47  ;;  %800 = vmatmul.mubr.bf16.gmra.mrb[28].mxu1 %v1478_v48 }
  0x7f   : > { %703 = vmatprep.mubr.bf16.mxu0 %v1479_v49  ;;  %807 = vmatprep.mubr.bf16.mxu1 %v1482_v50 }
  0x86   : > { %704 = vmatmul.mubr.bf16.gmra.mrb[32].mxu0 %v1481_v51  ;;  %808 = vmatmul.mubr.bf16.gmra.mrb[32].mxu1 %v1484_v52 }
  0x87   : > { %711 = vmatprep.mubr.bf16.mxu0 %v1485_v53  ;;  %815 = vmatprep.mubr.bf16.mxu1 %v1488_v54 }
  0x8e   : > { %712 = vmatmul.mubr.bf16.gmra.mrb[36].mxu0 %v1487_v55  ;;  %816 = vmatmul.mubr.bf16.gmra.mrb[36].mxu1 %v1490_v56 }
  0x8f   : > { %719 = vmatprep.mubr.bf16.mxu0 %v1491_v57  ;;  %823 = vmatprep.mubr.bf16.mxu1 %v1494_v58 }
  0x96   : > { %720 = vmatmul.mubr.bf16.gmra.mrb[40].mxu0 %v1493_v59  ;;  %824 = vmatmul.mubr.bf16.gmra.mrb[40].mxu1 %v1496_v60 }
  0x97   : > { %727 = vmatprep.mubr.bf16.mxu0 %v1497_v61  ;;  %831 = vmatprep.mubr.bf16.mxu1 %v1500_v62 }
  0x9e   : > { %728 = vmatmul.mubr.bf16.gmra.mrb[44].mxu0 %v1499_v63  ;;  %832 = vmatmul.mubr.bf16.gmra.mrb[44].mxu1 %v1502_v0 }
  0x9f   : > { %735 = vmatprep.mubr.bf16.mxu0 %v1503_v1 }
  0xa6   : > { %736 = vmatmul.mubr.bf16.gmra.mrb[48].mxu0 %v1505_v2 }
 0x119   : > { %v641_v4 = vpop.f32.mrb[0].mxu0  ;;  %v745_v5 = vpop.f32.mrb[0].mxu1 }
 0x11a   : > { %v642_v6 = vadd.f32 %v1684_v3, %v641_v4  ;;  %v643_v7 = vpop.f32.mrb[1].mxu0  ;;  %v746_v8 = vadd.f32 %v1684_v3, %v745_v5  ;;  %v747_v9 = vpop.f32.mrb[1].mxu1 }
 0x11b   : > { %v644_v10 = vpop.f32.mrb[2].mxu0  ;;  %v748_v11 = vpop.f32.mrb[2].mxu1 }
 0x11c   : > { %v840_v12 = vmax.f32 %v642_v6, 0.0  ;;  %v645_v13 = vadd.f32 %v1684_v3, %v644_v10  ;;  %v646_v14 = vpop.f32.mrb[3].mxu0  ;;  %v866_v15 = vmax.f32 %v746_v8, 0.0  ;;  %v749_v16 = vadd.f32 %v1684_v3, %v748_v11  ;;  %v750_v17 = vpop.f32.mrb[3].mxu1 }
 0x11e   : > { %v1322_v18 = vpack.c.bf16 %v840_v12, %v840_v12  ;;  %v841_v19 = vmax.f32 %v645_v13, 0.0  ;;  %v1348_v20 = vpack.c.bf16 %v866_v15, %v866_v15  ;;  %v867_v21 = vmax.f32 %v749_v16, 0.0 }
 0x120   : > { %1091 = vst.msk [vmem:[%s1694_s29] sm:$0xf] %vm1090_vm0, %v1322_v18  ;;  %v1323_v22 = vpack.c.bf16 %v841_v19, %v841_v19  ;;  %1117 = vst.msk [vmem:[%s1694_s29 + $0x68] sm:$0xf] %vm1090_vm0, %v1348_v20  ;;  %v1349_v23 = vpack.c.bf16 %v867_v21, %v867_v21 }
 0x121   : > { %v649_v24 = vpop.f32.mrb[4].mxu0  ;;  %v753_v25 = vpop.f32.mrb[4].mxu1 }
 0x122   : > { %1092 = vst.msk [vmem:[%s1694_s29 + $0x4] sm:$0xf] %vm1090_vm0, %v1323_v22  ;;  %1118 = vst.msk [vmem:[%s1694_s29 + $0x6c] sm:$0xf] %vm1090_vm0, %v1349_v23  ;;  %v650_v26 = vadd.f32 %v1684_v3, %v649_v24  ;;  %v651_v27 = vpop.f32.mrb[5].mxu0  ;;  %v754_v28 = vadd.f32 %v1684_v3, %v753_v25  ;;  %v755_v29 = vpop.f32.mrb[5].mxu1 }
 0x123   : > { %v652_v30 = vpop.f32.mrb[6].mxu0  ;;  %v756_v31 = vpop.f32.mrb[6].mxu1 }
 0x124   : > { %v842_v32 = vmax.f32 %v650_v26, 0.0  ;;  %v653_v33 = vadd.f32 %v1684_v3, %v652_v30  ;;  %v654_v34 = vpop.f32.mrb[7].mxu0  ;;  %v868_v35 = vmax.f32 %v754_v28, 0.0  ;;  %v757_v36 = vadd.f32 %v1684_v3, %v756_v31  ;;  %v758_v37 = vpop.f32.mrb[7].mxu1 }
 0x126   : > { %v1324_v38 = vpack.c.bf16 %v842_v32, %v842_v32  ;;  %v843_v39 = vmax.f32 %v653_v33, 0.0  ;;  %v1350_v40 = vpack.c.bf16 %v868_v35, %v868_v35  ;;  %v869_v41 = vmax.f32 %v757_v36, 0.0 }
 0x128   : > { %1093 = vst.msk [vmem:[%s1694_s29 + $0x8] sm:$0xf] %vm1090_vm0, %v1324_v38  ;;  %v1325_v42 = vpack.c.bf16 %v843_v39, %v843_v39  ;;  %1119 = vst.msk [vmem:[%s1694_s29 + $0x70] sm:$0xf] %vm1090_vm0, %v1350_v40  ;;  %v1351_v43 = vpack.c.bf16 %v869_v41, %v869_v41 }
 0x129   : > { %v657_v44 = vpop.f32.mrb[8].mxu0  ;;  %v761_v45 = vpop.f32.mrb[8].mxu1 }
 0x12a   : > { %1094 = vst.msk [vmem:[%s1694_s29 + $0xc] sm:$0xf] %vm1090_vm0, %v1325_v42  ;;  %1120 = vst.msk [vmem:[%s1694_s29 + $0x74] sm:$0xf] %vm1090_vm0, %v1351_v43  ;;  %v658_v46 = vadd.f32 %v1684_v3, %v657_v44  ;;  %v659_v47 = vpop.f32.mrb[9].mxu0  ;;  %v762_v48 = vadd.f32 %v1684_v3, %v761_v45  ;;  %v763_v49 = vpop.f32.mrb[9].mxu1 }
 0x12b   : > { %v660_v50 = vpop.f32.mrb[10].mxu0  ;;  %v764_v51 = vpop.f32.mrb[10].mxu1 }
 0x12c   : > { %v844_v52 = vmax.f32 %v658_v46, 0.0  ;;  %v661_v53 = vadd.f32 %v1684_v3, %v660_v50  ;;  %v662_v54 = vpop.f32.mrb[11].mxu0  ;;  %v870_v55 = vmax.f32 %v762_v48, 0.0  ;;  %v765_v56 = vadd.f32 %v1684_v3, %v764_v51  ;;  %v766_v57 = vpop.f32.mrb[11].mxu1 }
 0x12e   : > { %v1326_v58 = vpack.c.bf16 %v844_v52, %v844_v52  ;;  %v845_v59 = vmax.f32 %v661_v53, 0.0  ;;  %v1352_v60 = vpack.c.bf16 %v870_v55, %v870_v55  ;;  %v871_v61 = vmax.f32 %v765_v56, 0.0 }
 0x130   : > { %1095 = vst.msk [vmem:[%s1694_s29 + $0x10] sm:$0xf] %vm1090_vm0, %v1326_v58  ;;  %v1327_v62 = vpack.c.bf16 %v845_v59, %v845_v59  ;;  %1121 = vst.msk [vmem:[%s1694_s29 + $0x78] sm:$0xf] %vm1090_vm0, %v1352_v60  ;;  %v1353_v63 = vpack.c.bf16 %v871_v61, %v871_v61 }
 0x131   : > { %v665_v0 = vpop.f32.mrb[12].mxu0  ;;  %v769_v1 = vpop.f32.mrb[12].mxu1 }
 0x132   : > { %1096 = vst.msk [vmem:[%s1694_s29 + $0x14] sm:$0xf] %vm1090_vm0, %v1327_v62  ;;  %1122 = vst.msk [vmem:[%s1694_s29 + $0x7c] sm:$0xf] %vm1090_vm0, %v1353_v63  ;;  %v666_v2 = vadd.f32 %v1684_v3, %v665_v0  ;;  %v667_v4 = vpop.f32.mrb[13].mxu0  ;;  %v770_v5 = vadd.f32 %v1684_v3, %v769_v1  ;;  %v771_v6 = vpop.f32.mrb[13].mxu1 }
 0x133   : > { %v668_v7 = vpop.f32.mrb[14].mxu0  ;;  %v772_v8 = vpop.f32.mrb[14].mxu1 }
 0x134   : > { %v846_v9 = vmax.f32 %v666_v2, 0.0  ;;  %v669_v10 = vadd.f32 %v1684_v3, %v668_v7  ;;  %v670_v11 = vpop.f32.mrb[15].mxu0  ;;  %v872_v12 = vmax.f32 %v770_v5, 0.0  ;;  %v773_v13 = vadd.f32 %v1684_v3, %v772_v8  ;;  %v774_v14 = vpop.f32.mrb[15].mxu1 }
 0x136   : > { %v1328_v15 = vpack.c.bf16 %v846_v9, %v846_v9  ;;  %v847_v16 = vmax.f32 %v669_v10, 0.0  ;;  %v1354_v17 = vpack.c.bf16 %v872_v12, %v872_v12  ;;  %v873_v18 = vmax.f32 %v773_v13, 0.0 }
 0x138   : > { %1097 = vst.msk [vmem:[%s1694_s29 + $0x18] sm:$0xf] %vm1090_vm0, %v1328_v15  ;;  %v1329_v19 = vpack.c.bf16 %v847_v16, %v847_v16  ;;  %1123 = vst.msk [vmem:[%s1694_s29 + $0x80] sm:$0xf] %vm1090_vm0, %v1354_v17  ;;  %v1355_v20 = vpack.c.bf16 %v873_v18, %v873_v18 }
 0x139   : > { %v673_v21 = vpop.f32.mrb[16].mxu0  ;;  %v777_v22 = vpop.f32.mrb[16].mxu1 }
 0x13a   : > { %1098 = vst.msk [vmem:[%s1694_s29 + $0x1c] sm:$0xf] %vm1090_vm0, %v1329_v19  ;;  %1124 = vst.msk [vmem:[%s1694_s29 + $0x84] sm:$0xf] %vm1090_vm0, %v1355_v20  ;;  %v674_v23 = vadd.f32 %v1684_v3, %v673_v21  ;;  %v675_v24 = vpop.f32.mrb[17].mxu0  ;;  %v778_v25 = vadd.f32 %v1684_v3, %v777_v22  ;;  %v779_v26 = vpop.f32.mrb[17].mxu1 }
 0x13b   : > { %v676_v27 = vpop.f32.mrb[18].mxu0  ;;  %v780_v28 = vpop.f32.mrb[18].mxu1 }
 0x13c   : > { %v848_v29 = vmax.f32 %v674_v23, 0.0  ;;  %v677_v30 = vadd.f32 %v1684_v3, %v676_v27  ;;  %v678_v31 = vpop.f32.mrb[19].mxu0  ;;  %v874_v32 = vmax.f32 %v778_v25, 0.0  ;;  %v781_v33 = vadd.f32 %v1684_v3, %v780_v28  ;;  %v782_v34 = vpop.f32.mrb[19].mxu1 }
 0x13e   : > { %v1330_v35 = vpack.c.bf16 %v848_v29, %v848_v29  ;;  %v849_v36 = vmax.f32 %v677_v30, 0.0  ;;  %v1356_v37 = vpack.c.bf16 %v874_v32, %v874_v32  ;;  %v875_v38 = vmax.f32 %v781_v33, 0.0 }
 0x140   : > { %1099 = vst.msk [vmem:[%s1694_s29 + $0x20] sm:$0xf] %vm1090_vm0, %v1330_v35  ;;  %v1331_v39 = vpack.c.bf16 %v849_v36, %v849_v36  ;;  %1125 = vst.msk [vmem:[%s1694_s29 + $0x88] sm:$0xf] %vm1090_vm0, %v1356_v37  ;;  %v1357_v40 = vpack.c.bf16 %v875_v38, %v875_v38 }
 0x141   : > { %v681_v41 = vpop.f32.mrb[20].mxu0  ;;  %v785_v42 = vpop.f32.mrb[20].mxu1 }
 0x142   : > { %1100 = vst.msk [vmem:[%s1694_s29 + $0x24] sm:$0xf] %vm1090_vm0, %v1331_v39  ;;  %1126 = vst.msk [vmem:[%s1694_s29 + $0x8c] sm:$0xf] %vm1090_vm0, %v1357_v40  ;;  %v682_v43 = vadd.f32 %v1684_v3, %v681_v41  ;;  %v683_v44 = vpop.f32.mrb[21].mxu0  ;;  %v786_v45 = vadd.f32 %v1684_v3, %v785_v42  ;;  %v787_v46 = vpop.f32.mrb[21].mxu1 }
 0x143   : > { %v684_v47 = vpop.f32.mrb[22].mxu0  ;;  %v788_v48 = vpop.f32.mrb[22].mxu1 }
 0x144   : > { %v850_v49 = vmax.f32 %v682_v43, 0.0  ;;  %v685_v50 = vadd.f32 %v1684_v3, %v684_v47  ;;  %v686_v51 = vpop.f32.mrb[23].mxu0  ;;  %v876_v52 = vmax.f32 %v786_v45, 0.0  ;;  %v789_v53 = vadd.f32 %v1684_v3, %v788_v48  ;;  %v790_v54 = vpop.f32.mrb[23].mxu1 }
 0x146   : > { %v1332_v55 = vpack.c.bf16 %v850_v49, %v850_v49  ;;  %v851_v56 = vmax.f32 %v685_v50, 0.0  ;;  %v1358_v57 = vpack.c.bf16 %v876_v52, %v876_v52  ;;  %v877_v58 = vmax.f32 %v789_v53, 0.0 }
 0x148   : > { %1101 = vst.msk [vmem:[%s1694_s29 + $0x28] sm:$0xf] %vm1090_vm0, %v1332_v55  ;;  %v1333_v59 = vpack.c.bf16 %v851_v56, %v851_v56  ;;  %1127 = vst.msk [vmem:[%s1694_s29 + $0x90] sm:$0xf] %vm1090_vm0, %v1358_v57  ;;  %v1359_v60 = vpack.c.bf16 %v877_v58, %v877_v58 }
 0x149   : > { %v689_v61 = vpop.f32.mrb[24].mxu0  ;;  %v793_v62 = vpop.f32.mrb[24].mxu1 }
 0x14a   : > { %1102 = vst.msk [vmem:[%s1694_s29 + $0x2c] sm:$0xf] %vm1090_vm0, %v1333_v59  ;;  %1128 = vst.msk [vmem:[%s1694_s29 + $0x94] sm:$0xf] %vm1090_vm0, %v1359_v60  ;;  %v690_v63 = vadd.f32 %v1684_v3, %v689_v61  ;;  %v691_v0 = vpop.f32.mrb[25].mxu0  ;;  %v794_v1 = vadd.f32 %v1684_v3, %v793_v62  ;;  %v795_v2 = vpop.f32.mrb[25].mxu1 }
 0x14b   : > { %v692_v4 = vpop.f32.mrb[26].mxu0  ;;  %v796_v5 = vpop.f32.mrb[26].mxu1 }
 0x14c   : > { %v852_v6 = vmax.f32 %v690_v63, 0.0  ;;  %v693_v7 = vadd.f32 %v1684_v3, %v692_v4  ;;  %v694_v8 = vpop.f32.mrb[27].mxu0  ;;  %v878_v9 = vmax.f32 %v794_v1, 0.0  ;;  %v797_v10 = vadd.f32 %v1684_v3, %v796_v5  ;;  %v798_v11 = vpop.f32.mrb[27].mxu1 }
 0x14e   : > { %v1334_v12 = vpack.c.bf16 %v852_v6, %v852_v6  ;;  %v853_v13 = vmax.f32 %v693_v7, 0.0  ;;  %v1360_v14 = vpack.c.bf16 %v878_v9, %v878_v9  ;;  %v879_v15 = vmax.f32 %v797_v10, 0.0 }
 0x150   : > { %1103 = vst.msk [vmem:[%s1694_s29 + $0x30] sm:$0xf] %vm1090_vm0, %v1334_v12  ;;  %v1335_v16 = vpack.c.bf16 %v853_v13, %v853_v13  ;;  %1129 = vst.msk [vmem:[%s1694_s29 + $0x98] sm:$0xf] %vm1090_vm0, %v1360_v14  ;;  %v1361_v17 = vpack.c.bf16 %v879_v15, %v879_v15 }
 0x151   : > { %v697_v18 = vpop.f32.mrb[28].mxu0  ;;  %v801_v19 = vpop.f32.mrb[28].mxu1 }
 0x152   : > { %1104 = vst.msk [vmem:[%s1694_s29 + $0x34] sm:$0xf] %vm1090_vm0, %v1335_v16  ;;  %1130 = vst.msk [vmem:[%s1694_s29 + $0x9c] sm:$0xf] %vm1090_vm0, %v1361_v17  ;;  %v698_v20 = vadd.f32 %v1684_v3, %v697_v18  ;;  %v699_v21 = vpop.f32.mrb[29].mxu0  ;;  %v802_v22 = vadd.f32 %v1684_v3, %v801_v19  ;;  %v803_v23 = vpop.f32.mrb[29].mxu1 }
 0x153   : > { %v700_v24 = vpop.f32.mrb[30].mxu0  ;;  %v804_v25 = vpop.f32.mrb[30].mxu1 }
 0x154   : > { %v854_v26 = vmax.f32 %v698_v20, 0.0  ;;  %v701_v27 = vadd.f32 %v1684_v3, %v700_v24  ;;  %v702_v28 = vpop.f32.mrb[31].mxu0  ;;  %v880_v29 = vmax.f32 %v802_v22, 0.0  ;;  %v805_v30 = vadd.f32 %v1684_v3, %v804_v25  ;;  %v806_v31 = vpop.f32.mrb[31].mxu1 }
 0x156   : > { %v1336_v32 = vpack.c.bf16 %v854_v26, %v854_v26  ;;  %v855_v33 = vmax.f32 %v701_v27, 0.0  ;;  %v1362_v34 = vpack.c.bf16 %v880_v29, %v880_v29  ;;  %v881_v35 = vmax.f32 %v805_v30, 0.0 }
 0x158   : > { %1105 = vst.msk [vmem:[%s1694_s29 + $0x38] sm:$0xf] %vm1090_vm0, %v1336_v32  ;;  %v1337_v36 = vpack.c.bf16 %v855_v33, %v855_v33  ;;  %1131 = vst.msk [vmem:[%s1694_s29 + $0xa0] sm:$0xf] %vm1090_vm0, %v1362_v34  ;;  %v1363_v37 = vpack.c.bf16 %v881_v35, %v881_v35 }
 0x159   : > { %v705_v38 = vpop.f32.mrb[32].mxu0  ;;  %v809_v39 = vpop.f32.mrb[32].mxu1 }
 0x15a   : > { %1106 = vst.msk [vmem:[%s1694_s29 + $0x3c] sm:$0xf] %vm1090_vm0, %v1337_v36  ;;  %1132 = vst.msk [vmem:[%s1694_s29 + $0xa4] sm:$0xf] %vm1090_vm0, %v1363_v37  ;;  %v706_v40 = vadd.f32 %v1684_v3, %v705_v38  ;;  %v707_v41 = vpop.f32.mrb[33].mxu0  ;;  %v810_v42 = vadd.f32 %v1684_v3, %v809_v39  ;;  %v811_v43 = vpop.f32.mrb[33].mxu1 }
 0x15b   : > { %v708_v44 = vpop.f32.mrb[34].mxu0  ;;  %v812_v45 = vpop.f32.mrb[34].mxu1 }
 0x15c   : > { %v856_v46 = vmax.f32 %v706_v40, 0.0  ;;  %v709_v47 = vadd.f32 %v1684_v3, %v708_v44  ;;  %v710_v48 = vpop.f32.mrb[35].mxu0  ;;  %v882_v49 = vmax.f32 %v810_v42, 0.0  ;;  %v813_v50 = vadd.f32 %v1684_v3, %v812_v45  ;;  %v814_v51 = vpop.f32.mrb[35].mxu1 }
 0x15e   : > { %v1338_v52 = vpack.c.bf16 %v856_v46, %v856_v46  ;;  %v857_v53 = vmax.f32 %v709_v47, 0.0  ;;  %v1364_v54 = vpack.c.bf16 %v882_v49, %v882_v49  ;;  %v883_v55 = vmax.f32 %v813_v50, 0.0 }
 0x160   : > { %1107 = vst.msk [vmem:[%s1694_s29 + $0x40] sm:$0xf] %vm1090_vm0, %v1338_v52  ;;  %v1339_v56 = vpack.c.bf16 %v857_v53, %v857_v53  ;;  %1133 = vst.msk [vmem:[%s1694_s29 + $0xa8] sm:$0xf] %vm1090_vm0, %v1364_v54  ;;  %v1365_v57 = vpack.c.bf16 %v883_v55, %v883_v55 }
 0x161   : > { %v713_v58 = vpop.f32.mrb[36].mxu0  ;;  %v817_v59 = vpop.f32.mrb[36].mxu1 }
 0x162   : > { %1108 = vst.msk [vmem:[%s1694_s29 + $0x44] sm:$0xf] %vm1090_vm0, %v1339_v56  ;;  %1134 = vst.msk [vmem:[%s1694_s29 + $0xac] sm:$0xf] %vm1090_vm0, %v1365_v57  ;;  %v714_v60 = vadd.f32 %v1684_v3, %v713_v58  ;;  %v715_v61 = vpop.f32.mrb[37].mxu0  ;;  %v818_v62 = vadd.f32 %v1684_v3, %v817_v59  ;;  %v819_v63 = vpop.f32.mrb[37].mxu1 }
 0x163   : > { %v716_v0 = vpop.f32.mrb[38].mxu0  ;;  %v820_v1 = vpop.f32.mrb[38].mxu1 }
 0x164   : > { %v858_v2 = vmax.f32 %v714_v60, 0.0  ;;  %v717_v4 = vadd.f32 %v1684_v3, %v716_v0  ;;  %v718_v5 = vpop.f32.mrb[39].mxu0  ;;  %v884_v6 = vmax.f32 %v818_v62, 0.0  ;;  %v821_v7 = vadd.f32 %v1684_v3, %v820_v1  ;;  %v822_v8 = vpop.f32.mrb[39].mxu1 }
 0x166   : > { %v1340_v9 = vpack.c.bf16 %v858_v2, %v858_v2  ;;  %v859_v10 = vmax.f32 %v717_v4, 0.0  ;;  %v1366_v11 = vpack.c.bf16 %v884_v6, %v884_v6  ;;  %v885_v12 = vmax.f32 %v821_v7, 0.0 }
 0x168   : > { %1109 = vst.msk [vmem:[%s1694_s29 + $0x48] sm:$0xf] %vm1090_vm0, %v1340_v9  ;;  %v1341_v13 = vpack.c.bf16 %v859_v10, %v859_v10  ;;  %1135 = vst.msk [vmem:[%s1694_s29 + $0xb0] sm:$0xf] %vm1090_vm0, %v1366_v11  ;;  %v1367_v14 = vpack.c.bf16 %v885_v12, %v885_v12 }
 0x169   : > { %v721_v15 = vpop.f32.mrb[40].mxu0  ;;  %v825_v16 = vpop.f32.mrb[40].mxu1 }
 0x16a   : > { %1110 = vst.msk [vmem:[%s1694_s29 + $0x4c] sm:$0xf] %vm1090_vm0, %v1341_v13  ;;  %1136 = vst.msk [vmem:[%s1694_s29 + $0xb4] sm:$0xf] %vm1090_vm0, %v1367_v14  ;;  %v722_v17 = vadd.f32 %v1684_v3, %v721_v15  ;;  %v723_v18 = vpop.f32.mrb[41].mxu0  ;;  %v826_v19 = vadd.f32 %v1684_v3, %v825_v16  ;;  %v827_v20 = vpop.f32.mrb[41].mxu1 }
 0x16b   : > { %v724_v21 = vpop.f32.mrb[42].mxu0  ;;  %v828_v22 = vpop.f32.mrb[42].mxu1 }
 0x16c   : > { %v860_v23 = vmax.f32 %v722_v17, 0.0  ;;  %v725_v24 = vadd.f32 %v1684_v3, %v724_v21  ;;  %v726_v25 = vpop.f32.mrb[43].mxu0  ;;  %v886_v26 = vmax.f32 %v826_v19, 0.0  ;;  %v829_v27 = vadd.f32 %v1684_v3, %v828_v22  ;;  %v830_v28 = vpop.f32.mrb[43].mxu1 }
 0x16e   : > { %v1342_v29 = vpack.c.bf16 %v860_v23, %v860_v23  ;;  %v861_v30 = vmax.f32 %v725_v24, 0.0  ;;  %v1368_v31 = vpack.c.bf16 %v886_v26, %v886_v26  ;;  %v887_v32 = vmax.f32 %v829_v27, 0.0 }
 0x170   : > { %1111 = vst.msk [vmem:[%s1694_s29 + $0x50] sm:$0xf] %vm1090_vm0, %v1342_v29  ;;  %v1343_v33 = vpack.c.bf16 %v861_v30, %v861_v30  ;;  %1137 = vst.msk [vmem:[%s1694_s29 + $0xb8] sm:$0xf] %vm1090_vm0, %v1368_v31  ;;  %v1369_v34 = vpack.c.bf16 %v887_v32, %v887_v32 }
 0x171   : > { %v729_v35 = vpop.f32.mrb[44].mxu0  ;;  %v833_v36 = vpop.f32.mrb[44].mxu1 }
 0x172   : > { %1112 = vst.msk [vmem:[%s1694_s29 + $0x54] sm:$0xf] %vm1090_vm0, %v1343_v33  ;;  %1138 = vst.msk [vmem:[%s1694_s29 + $0xbc] sm:$0xf] %vm1090_vm0, %v1369_v34  ;;  %v730_v37 = vadd.f32 %v1684_v3, %v729_v35  ;;  %v731_v38 = vpop.f32.mrb[45].mxu0  ;;  %v834_v39 = vadd.f32 %v1684_v3, %v833_v36  ;;  %v835_v40 = vpop.f32.mrb[45].mxu1 }
 0x173   : > { %v732_v41 = vpop.f32.mrb[46].mxu0  ;;  %v836_v42 = vpop.f32.mrb[46].mxu1 }
 0x174   : > { %v862_v43 = vmax.f32 %v730_v37, 0.0  ;;  %v733_v44 = vadd.f32 %v1684_v3, %v732_v41  ;;  %v734_v45 = vpop.f32.mrb[47].mxu0  ;;  %v888_v46 = vmax.f32 %v834_v39, 0.0  ;;  %v837_v47 = vadd.f32 %v1684_v3, %v836_v42  ;;  %v838_v48 = vpop.f32.mrb[47].mxu1 }
 0x176   : > { %v1344_v49 = vpack.c.bf16 %v862_v43, %v862_v43  ;;  %v863_v50 = vmax.f32 %v733_v44, 0.0  ;;  %v1370_v51 = vpack.c.bf16 %v888_v46, %v888_v46  ;;  %v889_v52 = vmax.f32 %v837_v47, 0.0 }
 0x178   : > { %1113 = vst.msk [vmem:[%s1694_s29 + $0x58] sm:$0xf] %vm1090_vm0, %v1344_v49  ;;  %v1345_v53 = vpack.c.bf16 %v863_v50, %v863_v50  ;;  %1139 = vst.msk [vmem:[%s1694_s29 + $0xc0] sm:$0xf] %vm1090_vm0, %v1370_v51  ;;  %v1371_v54 = vpack.c.bf16 %v889_v52, %v889_v52 }
 0x179   : > { %v737_v55 = vpop.f32.mrb[48].mxu0 }
 0x17a   : > { %1114 = vst.msk [vmem:[%s1694_s29 + $0x5c] sm:$0xf] %vm1090_vm0, %v1345_v53  ;;  %1140 = vst.msk [vmem:[%s1694_s29 + $0xc4] sm:$0xf] %vm1090_vm0, %v1371_v54  ;;  %v738_v56 = vadd.f32 %v1684_v3, %v737_v55  ;;  %v739_v57 = vpop.f32.mrb[49].mxu0 }
 0x17b   : > { %v740_v58 = vpop.f32.mrb[50].mxu0 }
 0x17c   : > { %v864_v59 = vmax.f32 %v738_v56, 0.0  ;;  %v741_v60 = vadd.f32 %v1684_v3, %v740_v58  ;;  %v742_v61 = vpop.f32.mrb[51].mxu0 }
 0x17e   : > { %v1346_v62 = vpack.c.bf16 %v864_v59, %v864_v59  ;;  %v865_v63 = vmax.f32 %v741_v60, 0.0 }
 0x180   : > { %1115 = vst.msk [vmem:[%s1694_s29 + $0x60] sm:$0xf] %vm1090_vm0, %v1346_v62  ;;  %v1347_v0 = vpack.c.bf16 %v865_v63, %v865_v63 }
 0x182   : > { %1116 = vst.msk [vmem:[%s1694_s29 + $0x64] sm:$0xf] %vm1090_vm0, %v1347_v0 }
 0x183 PF: > { %s13_s12 = sadd.s32 1, %s1512_s12  }
 0x184   : > { %p10_p4 = scmp.ge.s32.totalorder %s13_s12, 4  }
 0x186   :  { %12 = sbr.rel (!%p10_p4) target bundleno = 1 (0x1), region = 62 }

// kernel: dqn_forward.5
= control target key start
LH: loop header
LB: loop body
LE: loop exit
PB: predicated region body
PF: predicated region fallthrough
CT: control target
= control target key end

     0   :  { %s1155_s12 = smov 0   ;;  %s1340_s0 = inlined_call_operand.vmem [shape: bf16[2,81,512], index: 0, kind: input, shape index: {}]   ;;  %s1341_s1 = inlined_call_operand.vmem [shape: bf16[512,64], index: 1, kind: input, shape index: {}]   ;;  %s1342_s2 = inlined_call_operand.vmem [shape: f32[1,64], index: 2, kind: input, shape index: {}]   ;;  %s1343_s3 = inlined_call_operand.vmem [shape: bf16[2,81,64], index: 3, kind: output, shape index: {}]  }
   0x1 LB: > { %s859_s13 = sadd.s32 4294967295, %s1133_s12   ;;  %p863_p0 = scmp.ge.s32.totalorder %s1133_s12, 1  ;;  %s1133_s12 = sphi %s1155_s12, %s13_s12  }
   0x2   : > { %p137_p1 = scmp.lt.s32.totalorder %s1133_s12, 3 }
   0x4   : > { %p138_p2 = pnand %p863_p0, %p137_p1 }
   0x5   : > { %v1061_v0 = vld [vmem:[%s1341_s1 + $0x40] sm:$0xff] (!%p138_p2)   ;;  %v1065_v4 = vld [vmem:[%s1341_s1 + $0x48] sm:$0xff] (!%p138_p2)   ;;  %v1069_v8 = vld [vmem:[%s1341_s1 + $0x50] sm:$0xff] (!%p138_p2)   ;;  %p161_p3 = scmp.lt.s32.totalorder (!%p138_p2), %s859_s13, 1  ;;  %vm787_vm0 = vcmask (!%p138_p2), 519168   ;;  %vm798_vm1 = vcmask (!%p138_p2), 516096  }
   0x6   : > { %141 = sbr.rel (%p138_p2) target bundleno = 304 (0x130), region = 32  ;;  %v1062_v1 = vld [vmem:[%s1341_s1 + $0xc0] sm:$0xff] (!%p138_p2)   ;;  %947 = vmatprep.subr.bf16.mxu0 (!%p138_p2), %v1061_v0  ;;  %v1066_v5 = vld [vmem:[%s1341_s1 + $0xc8] sm:$0xff] (!%p138_p2)   ;;  %v1070_v9 = vld [vmem:[%s1341_s1 + $0xd0] sm:$0xff] (!%p138_p2)   ;;  %vm799_vm2 = vsmask.f32 (!%p138_p2), 256 }
   0x7   : > { %v1063_v2 = vld [vmem:[%s1341_s1] sm:$0xff] (!%p138_p2)   ;;  %999 = vmatprep.subr.bf16.mxu1 (!%p138_p2), %v1062_v1  ;;  %v1067_v6 = vld [vmem:[%s1341_s1 + $0x8] sm:$0xff] (!%p138_p2)   ;;  %v1071_v10 = vld [vmem:[%s1341_s1 + $0x10] sm:$0xff] (!%p138_p2)  }
   0x8   : > { %v1064_v3 = vld [vmem:[%s1341_s1 + $0x80] sm:$0xff] (!%p138_p2)   ;;  %948 = vmatpush3.bf16.msra.mxu0 (!%p138_p2), %v1063_v2  ;;  %v1068_v7 = vld [vmem:[%s1341_s1 + $0x88] sm:$0xff] (!%p138_p2)   ;;  %v1072_v11 = vld [vmem:[%s1341_s1 + $0x90] sm:$0xff] (!%p138_p2)  }
   0x9   : > { %1000 = vmatpush3.bf16.msra.mxu1 (!%p138_p2), %v1064_v3  ;;  %949 = vmatprep.subr.bf16.mxu0 (!%p138_p2), %v1065_v4  ;;  %v1073_v12 = vld [vmem:[%s1341_s1 + $0x58] sm:$0xff] (!%p138_p2)   ;;  %v1077_v16 = vld [vmem:[%s1341_s1 + $0x60] sm:$0xff] (!%p138_p2)   ;;  %v1081_v20 = vld [vmem:[%s1341_s1 + $0x68] sm:$0xff] (!%p138_p2)  }
   0xa   : > { %1001 = vmatprep.subr.bf16.mxu1 (!%p138_p2), %v1066_v5  ;;  %v1074_v13 = vld [vmem:[%s1341_s1 + $0xd8] sm:$0xff] (!%p138_p2)   ;;  %v1078_v17 = vld [vmem:[%s1341_s1 + $0xe0] sm:$0xff] (!%p138_p2)   ;;  %v1082_v21 = vld [vmem:[%s1341_s1 + $0xe8] sm:$0xff] (!%p138_p2)  }
   0xb   : > { %v1075_v14 = vld [vmem:[%s1341_s1 + $0x18] sm:$0xff] (!%p138_p2)   ;;  %v1079_v18 = vld [vmem:[%s1341_s1 + $0x20] sm:$0xff] (!%p138_p2)   ;;  %v1083_v22 = vld [vmem:[%s1341_s1 + $0x28] sm:$0xff] (!%p138_p2)  }
   0xc   : > { %950 = vmatpush3.bf16.msra.mxu0 (!%p138_p2), %v1067_v6  ;;  %v1076_v15 = vld [vmem:[%s1341_s1 + $0x98] sm:$0xff] (!%p138_p2)   ;;  %v1080_v19 = vld [vmem:[%s1341_s1 + $0xa0] sm:$0xff] (!%p138_p2)   ;;  %v1084_v23 = vld [vmem:[%s1341_s1 + $0xa8] sm:$0xff] (!%p138_p2)  }
   0xd   : > { %1002 = vmatpush3.bf16.msra.mxu1 %v1068_v7  ;;  %951 = vmatprep.subr.bf16.mxu0 %v1069_v8  ;;  %s1345_s13 = smov (!%p161_p3, %s859_s13), 1  ;;  %v1085_v24 = vld [vmem:[%s1341_s1 + $0x70] sm:$0xff]   ;;  %v1089_v28 = vld [vmem:[%s1341_s1 + $0x78] sm:$0xff]   ;;  %v1296_v60 = vld [vmem:[%s1342_s2] ss:$0 sm:$0xff] }
   0xe   : > { %1003 = vmatprep.subr.bf16.mxu1 %v1070_v9  ;;  %v1086_v25 = vld [vmem:[%s1341_s1 + $0xf0] sm:$0xff]   ;;  %s1051_s16 = smul.u32 176, %s1345_s13  ;;  %v1090_v29 = vld [vmem:[%s1341_s1 + $0xf8] sm:$0xff]   ;;  %vm800_vm3 = vmand %vm798_vm1, %vm799_vm2 }
   0xf   : > { %v1087_v26 = vld [vmem:[%s1341_s1 + $0x30] sm:$0xff]   ;;  %v1091_v30 = vld [vmem:[%s1341_s1 + $0x38] sm:$0xff]   ;;  %s1052_s7 = smul.u32 44, %s1345_s13 }
  0x10   : > { %952 = vmatpush3.bf16.msra.mxu0 %v1071_v10  ;;  %v1088_v27 = vld [vmem:[%s1341_s1 + $0xb0] sm:$0xff]   ;;  %s1263_s27 = scalar_lea.vmem %s1340_s0, %s1051_s16  ;;  %v1092_v31 = vld [vmem:[%s1341_s1 + $0xb8] sm:$0xff]  }
  0x11   : > { %1004 = vmatpush3.bf16.msra.mxu1 %v1072_v11  ;;  %953 = vmatprep.subr.bf16.mxu0 %v1073_v12  ;;  %v1093_v32 = vld [vmem:[%s1263_s27] ss:$16 sps:$4 sm:$0xff]   ;;  %v1095_v33 = vld [vmem:[%s1263_s27 + $0x4] ss:$16 sps:$4 sm:$0xff]   ;;  %v1096_v34 = vld [vmem:[%s1263_s27 + $0x8] ss:$16 sps:$4 sm:$0xff]   ;;  %s1304_s10 = scalar_lea.vmem %s1343_s3, %s1052_s7 }
  0x12   : > { %1005 = vmatprep.subr.bf16.mxu1 %v1074_v13  ;;  %v1098_v35 = vld [vmem:[%s1263_s27 + $0xc] ss:$16 sps:$4 sm:$0xff]   ;;  %603 = vmatprep.mubr.bf16.mxu0 %v1095_v33  ;;  %v1099_v36 = vld [vmem:[%s1263_s27 + $0x24] ss:$16 sps:$4 sm:$0xff]   ;;  %v1103_v38 = vld [vmem:[%s1263_s27 + $0x20] ss:$16 sps:$4 sm:$0xff]  }
  0x13   : > { %683 = vmatprep.mubr.bf16.mxu1 %v1098_v35  ;;  %v1101_v37 = vld [vmem:[%s1263_s27 + $0x2c] ss:$16 sps:$4 sm:$0xff]   ;;  %v1104_v39 = vld [vmem:[%s1263_s27 + $0x28] ss:$16 sps:$4 sm:$0xff]   ;;  %v1105_v40 = vld [vmem:[%s1263_s27 + $0x44] ss:$16 sps:$4 sm:$0xff]  }
  0x14   : > { %954 = vmatpush3.bf16.msra.mxu0 %v1075_v14  ;;  %v1107_v41 = vld [vmem:[%s1263_s27 + $0x4c] ss:$16 sps:$4 sm:$0xff]   ;;  %v1109_v42 = vld [vmem:[%s1263_s27 + $0x40] ss:$16 sps:$4 sm:$0xff]   ;;  %v1110_v43 = vld [vmem:[%s1263_s27 + $0x48] ss:$16 sps:$4 sm:$0xff]  }
  0x15   : > { %1006 = vmatpush3.bf16.msra.mxu1 %v1076_v15  ;;  %955 = vmatprep.subr.bf16.mxu0 %v1077_v16  ;;  %v1111_v44 = vld [vmem:[%s1263_s27 + $0x64] ss:$16 sps:$4 sm:$0xff]   ;;  %v1113_v45 = vld [vmem:[%s1263_s27 + $0x6c] ss:$16 sps:$4 sm:$0xff]   ;;  %v1115_v46 = vld [vmem:[%s1263_s27 + $0x60] ss:$16 sps:$4 sm:$0xff]  }
  0x16   : > { %1007 = vmatprep.subr.bf16.mxu1 %v1078_v17  ;;  %v1116_v47 = vld [vmem:[%s1263_s27 + $0x68] ss:$16 sps:$4 sm:$0xff]   ;;  %v1117_v48 = vld [vmem:[%s1263_s27 + $0x84] ss:$16 sps:$4 sm:$0xff]   ;;  %v1119_v49 = vld [vmem:[%s1263_s27 + $0x8c] ss:$16 sps:$4 sm:$0xff]  }
  0x17   : > { %v257_v50 = vld [vmem:[%s1263_s27 + $0xa0] sm:$0x11]  ;;  %v258_v51 = vld [vmem:[%s1263_s27 + $0xa8] sm:$0x11] }
  0x18   : > { %956 = vmatpush3.bf16.msra.mxu0 %v1079_v18  ;;  %v1121_v52 = vld [vmem:[%s1263_s27 + $0x80] ss:$16 sps:$4 sm:$0xff]   ;;  %v1122_v53 = vld [vmem:[%s1263_s27 + $0x88] ss:$16 sps:$4 sm:$0xff]   ;;  %v888_v54 = vcombine.high %v257_v50, %v257_v50  ;;  %v890_v55 = vcombine.high %v258_v51, %v258_v51  ;;  %v887_v56 = vcombine.low %v257_v50, %v257_v50  ;;  %v889_v57 = vcombine.low %v258_v51, %v258_v51 }
  0x19   : > { %1008 = vmatpush3.bf16.msra.mxu1 %v1080_v19  ;;  %957 = vmatprep.subr.bf16.mxu0 %v1081_v20 }
  0x1a   : > { %1009 = vmatprep.subr.bf16.mxu1 %v1082_v21 }
  0x1c   : > { %958 = vmatpush3.bf16.msra.mxu0 %v1083_v22 }
  0x1d   : > { %1010 = vmatpush3.bf16.msra.mxu1 %v1084_v23  ;;  %959 = vmatprep.subr.bf16.mxu0 %v1085_v24 }
  0x1e   : > { %1011 = vmatprep.subr.bf16.mxu1 %v1086_v25 }
  0x20   : > { %960 = vmatpush3.bf16.msra.mxu0 %v1087_v26 }
  0x21   : > { %1012 = vmatpush3.bf16.msra.mxu1 %v1088_v27  ;;  %961 = vmatprep.subr.bf16.mxu0 %v1089_v28 }
  0x22   : > { %1013 = vmatprep.subr.bf16.mxu1 %v1090_v29 }
  0x24   : > { %962 = vmatpush3.bf16.msra.mxu0 %v1091_v30 }
  0x25   : > { %1014 = vmatpush3.bf16.msra.mxu1 %v1092_v31 }
  0x27   : > { %604 = vmatmul.mubr.bf16.vlgmr.msra.gmra.mrb[0].mxu0 %v1093_v32 }
  0x28   : > { %684 = vmatmul.mubr.bf16.vlgmr.msra.gmra.mrb[0].mxu1 %v1096_v34  ;;  %611 = vmatprep.mubr.bf16.mxu0 %v1099_v36 }
  0x29   : > { %691 = vmatprep.mubr.bf16.mxu1 %v1101_v37 }
  0x2f   : > { %612 = vmatmul.mubr.bf16.gmra.mrb[4].mxu0 %v1103_v38 }
  0x30   : > { %692 = vmatmul.mubr.bf16.gmra.mrb[4].mxu1 %v1104_v39  ;;  %619 = vmatprep.mubr.bf16.mxu0 %v1105_v40 }
  0x31   : > { %699 = vmatprep.mubr.bf16.mxu1 %v1107_v41 }
  0x37   : > { %620 = vmatmul.mubr.bf16.gmra.mrb[8].mxu0 %v1109_v42 }
  0x38   : > { %700 = vmatmul.mubr.bf16.gmra.mrb[8].mxu1 %v1110_v43  ;;  %627 = vmatprep.mubr.bf16.mxu0 %v1111_v44 }
  0x39   : > { %707 = vmatprep.mubr.bf16.mxu1 %v1113_v45 }
  0x3f   : > { %628 = vmatmul.mubr.bf16.gmra.mrb[12].mxu0 %v1115_v46 }
  0x40   : > { %708 = vmatmul.mubr.bf16.gmra.mrb[12].mxu1 %v1116_v47  ;;  %635 = vmatprep.mubr.bf16.mxu0 %v1117_v48 }
  0x41   : > { %715 = vmatprep.mubr.bf16.mxu1 %v1119_v49 }
  0x47   : > { %636 = vmatmul.mubr.bf16.gmra.mrb[16].mxu0 %v1121_v52 }
  0x48   : > { %716 = vmatmul.mubr.bf16.gmra.mrb[16].mxu1 %v1122_v53  ;;  %643 = vmatprep.mubr.bf16.mxu0 %v888_v54 }
  0x49   : > { %723 = vmatprep.mubr.bf16.mxu1 %v890_v55 }
  0x4f   : > { %644 = vmatmul.mubr.bf16.gmra.mrb[20].mxu0 %v887_v56 }
  0x50   : > { %724 = vmatmul.mubr.bf16.gmra.mrb[20].mxu1 %v889_v57 }
  0xfa   : > { %v963_v58 = vpop.f32.mrb[0].mxu0 }
  0xfb   : > { %v1015_v59 = vpop.f32.mrb[0].mxu1  ;;  %v964_v61 = vpop.f32.mrb[1].mxu0 }
  0xfc   : > { %v965_v62 = vadd.f32 %v964_v61, %v963_v58  ;;  %v1016_v63 = vpop.f32.mrb[1].mxu1  ;;  %v966_v0 = vpop.f32.mrb[2].mxu0 }
  0xfd   : > { %v1017_v1 = vadd.f32 %v1016_v63, %v1015_v59  ;;  %v1018_v2 = vpop.f32.mrb[2].mxu1  ;;  %v967_v3 = vpop.f32.mrb[3].mxu0 }
  0xfe   : > { %v606_v4 = vadd.f32 %v965_v62, %v1296_v60  ;;  %v968_v5 = vadd.f32 %v967_v3, %v966_v0  ;;  %v1019_v6 = vpop.f32.mrb[3].mxu1 }
  0xff   : > { %v1020_v7 = vadd.f32 %v1019_v6, %v1018_v2 }
 0x100   : > { %v686_v8 = vadd.f32 %v1017_v1, %v606_v4  ;;  %v609_v9 = vadd.f32 %v968_v5, %v1296_v60 }
 0x102   : > { %v731_v10 = vmax.f32 %v686_v8, 0.0  ;;  %v689_v11 = vadd.f32 %v1020_v7, %v609_v9  ;;  %v969_v12 = vpop.f32.mrb[4].mxu0 }
 0x103   : > { %v1021_v13 = vpop.f32.mrb[4].mxu1  ;;  %v970_v14 = vpop.f32.mrb[5].mxu0 }
 0x104   : > { %v936_v15 = vpack.c.bf16 %v731_v10, %v731_v10  ;;  %v732_v16 = vmax.f32 %v689_v11, 0.0  ;;  %v971_v17 = vadd.f32 %v970_v14, %v969_v12  ;;  %v1022_v18 = vpop.f32.mrb[5].mxu1  ;;  %v972_v19 = vpop.f32.mrb[6].mxu0 }
 0x105   : > { %v1023_v20 = vadd.f32 %v1022_v18, %v1021_v13  ;;  %v1024_v21 = vpop.f32.mrb[6].mxu1  ;;  %v973_v22 = vpop.f32.mrb[7].mxu0 }
 0x106   : > { %788 = vst.msk [vmem:[%s1304_s10] sm:$0xf] %vm787_vm0, %v936_v15  ;;  %v937_v23 = vpack.c.bf16 %v732_v16, %v732_v16  ;;  %v614_v24 = vadd.f32 %v971_v17, %v1296_v60  ;;  %v974_v25 = vadd.f32 %v973_v22, %v972_v19  ;;  %v1025_v26 = vpop.f32.mrb[7].mxu1 }
 0x107   : > { %v1026_v27 = vadd.f32 %v1025_v26, %v1024_v21 }
 0x108   : > { %789 = vst.msk [vmem:[%s1304_s10 + $0x4] sm:$0xf] %vm787_vm0, %v937_v23  ;;  %v694_v28 = vadd.f32 %v1023_v20, %v614_v24  ;;  %v617_v29 = vadd.f32 %v974_v25, %v1296_v60 }
 0x10a   : > { %v733_v30 = vmax.f32 %v694_v28, 0.0  ;;  %v697_v31 = vadd.f32 %v1026_v27, %v617_v29  ;;  %v975_v32 = vpop.f32.mrb[8].mxu0 }
 0x10b   : > { %v1027_v33 = vpop.f32.mrb[8].mxu1  ;;  %v976_v34 = vpop.f32.mrb[9].mxu0 }
 0x10c   : > { %v938_v35 = vpack.c.bf16 %v733_v30, %v733_v30  ;;  %v734_v36 = vmax.f32 %v697_v31, 0.0  ;;  %v977_v37 = vadd.f32 %v976_v34, %v975_v32  ;;  %v1028_v38 = vpop.f32.mrb[9].mxu1  ;;  %v978_v39 = vpop.f32.mrb[10].mxu0 }
 0x10d   : > { %v1029_v40 = vadd.f32 %v1028_v38, %v1027_v33  ;;  %v1030_v41 = vpop.f32.mrb[10].mxu1  ;;  %v979_v42 = vpop.f32.mrb[11].mxu0 }
 0x10e   : > { %790 = vst.msk [vmem:[%s1304_s10 + $0x8] sm:$0xf] %vm787_vm0, %v938_v35  ;;  %v939_v43 = vpack.c.bf16 %v734_v36, %v734_v36  ;;  %v622_v44 = vadd.f32 %v977_v37, %v1296_v60  ;;  %v980_v45 = vadd.f32 %v979_v42, %v978_v39  ;;  %v1031_v46 = vpop.f32.mrb[11].mxu1 }
 0x10f   : > { %v1032_v47 = vadd.f32 %v1031_v46, %v1030_v41 }
 0x110   : > { %791 = vst.msk [vmem:[%s1304_s10 + $0xc] sm:$0xf] %vm787_vm0, %v939_v43  ;;  %v702_v48 = vadd.f32 %v1029_v40, %v622_v44  ;;  %v625_v49 = vadd.f32 %v980_v45, %v1296_v60  ;;  %v801_v45 = vld [vmem:[%s1304_s10 + $0x28] sm:$0x1] }
 0x112   : > { %v735_v50 = vmax.f32 %v702_v48, 0.0  ;;  %v705_v51 = vadd.f32 %v1032_v47, %v625_v49  ;;  %v981_v52 = vpop.f32.mrb[12].mxu0 }
 0x113   : > { %v1033_v53 = vpop.f32.mrb[12].mxu1  ;;  %v982_v54 = vpop.f32.mrb[13].mxu0 }
 0x114   : > { %v940_v55 = vpack.c.bf16 %v735_v50, %v735_v50  ;;  %v736_v56 = vmax.f32 %v705_v51, 0.0  ;;  %v983_v57 = vadd.f32 %v982_v54, %v981_v52  ;;  %v1034_v58 = vpop.f32.mrb[13].mxu1  ;;  %v984_v59 = vpop.f32.mrb[14].mxu0 }
 0x115   : > { %v1035_v61 = vadd.f32 %v1034_v58, %v1033_v53  ;;  %v1036_v62 = vpop.f32.mrb[14].mxu1  ;;  %v985_v63 = vpop.f32.mrb[15].mxu0 }
 0x116   : > { %792 = vst.msk [vmem:[%s1304_s10 + $0x10] sm:$0xf] %vm787_vm0, %v940_v55  ;;  %v941_v0 = vpack.c.bf16 %v736_v56, %v736_v56  ;;  %v630_v1 = vadd.f32 %v983_v57, %v1296_v60  ;;  %v986_v2 = vadd.f32 %v985_v63, %v984_v59  ;;  %v1037_v3 = vpop.f32.mrb[15].mxu1 }
 0x117   : > { %v1038_v4 = vadd.f32 %v1037_v3, %v1036_v62 }
 0x118   : > { %793 = vst.msk [vmem:[%s1304_s10 + $0x14] sm:$0xf] %vm787_vm0, %v941_v0  ;;  %v710_v5 = vadd.f32 %v1035_v61, %v630_v1  ;;  %v633_v6 = vadd.f32 %v986_v2, %v1296_v60 }
 0x11a   : > { %v737_v7 = vmax.f32 %v710_v5, 0.0  ;;  %v713_v8 = vadd.f32 %v1038_v4, %v633_v6  ;;  %v987_v9 = vpop.f32.mrb[16].mxu0 }
 0x11b   : > { %v1039_v10 = vpop.f32.mrb[16].mxu1  ;;  %v988_v11 = vpop.f32.mrb[17].mxu0 }
 0x11c   : > { %v942_v12 = vpack.c.bf16 %v737_v7, %v737_v7  ;;  %v738_v13 = vmax.f32 %v713_v8, 0.0  ;;  %v989_v14 = vadd.f32 %v988_v11, %v987_v9  ;;  %v1040_v15 = vpop.f32.mrb[17].mxu1  ;;  %v990_v16 = vpop.f32.mrb[18].mxu0 }
 0x11d   : > { %v1041_v17 = vadd.f32 %v1040_v15, %v1039_v10  ;;  %v1042_v18 = vpop.f32.mrb[18].mxu1  ;;  %v991_v19 = vpop.f32.mrb[19].mxu0 }
 0x11e   : > { %794 = vst.msk [vmem:[%s1304_s10 + $0x18] sm:$0xf] %vm787_vm0, %v942_v12  ;;  %v943_v20 = vpack.c.bf16 %v738_v13, %v738_v13  ;;  %v638_v21 = vadd.f32 %v989_v14, %v1296_v60  ;;  %v992_v22 = vadd.f32 %v991_v19, %v990_v16  ;;  %v1043_v23 = vpop.f32.mrb[19].mxu1 }
 0x11f   : > { %v1044_v24 = vadd.f32 %v1043_v23, %v1042_v18 }
 0x120   : > { %795 = vst.msk [vmem:[%s1304_s10 + $0x1c] sm:$0xf] %vm787_vm0, %v943_v20  ;;  %v718_v25 = vadd.f32 %v1041_v17, %v638_v21  ;;  %v641_v26 = vadd.f32 %v992_v22, %v1296_v60 }
 0x122   : > { %v739_v27 = vmax.f32 %v718_v25, 0.0  ;;  %v721_v28 = vadd.f32 %v1044_v24, %v641_v26  ;;  %v993_v29 = vpop.f32.mrb[20].mxu0 }
 0x123   : > { %v1045_v30 = vpop.f32.mrb[20].mxu1  ;;  %v994_v31 = vpop.f32.mrb[21].mxu0 }
 0x124   : > { %v944_v32 = vpack.c.bf16 %v739_v27, %v739_v27  ;;  %v740_v33 = vmax.f32 %v721_v28, 0.0  ;;  %v995_v34 = vadd.f32 %v994_v31, %v993_v29  ;;  %v1046_v35 = vpop.f32.mrb[21].mxu1  ;;  %v996_v36 = vpop.f32.mrb[22].mxu0 }
 0x125   : > { %v1047_v37 = vadd.f32 %v1046_v35, %v1045_v30  ;;  %v1048_v38 = vpop.f32.mrb[22].mxu1  ;;  %v997_v39 = vpop.f32.mrb[23].mxu0 }
 0x126   : > { %796 = vst.msk [vmem:[%s1304_s10 + $0x20] sm:$0xf] %vm787_vm0, %v944_v32  ;;  %v945_v40 = vpack.c.bf16 %v740_v33, %v740_v33  ;;  %v646_v41 = vadd.f32 %v995_v34, %v1296_v60  ;;  %v1049_v42 = vpop.f32.mrb[23].mxu1 }
 0x128   : > { %797 = vst.msk [vmem:[%s1304_s10 + $0x24] sm:$0xf] %vm787_vm0, %v945_v40  ;;  %v726_v43 = vadd.f32 %v1047_v37, %v646_v41 }
 0x12a   : > { %v741_v44 = vmax.f32 %v726_v43, 0.0 }
 0x12c   : > { %v946_v46 = vpack.c.bf16 %v741_v44, %v741_v44 }
 0x12e   : > { %v802_v47 = vsel %vm800_vm3, %v946_v46, %v801_v45 }
 0x12f   : > { %803 = vst [vmem:[%s1304_s10 + $0x28] sm:$0x1] %v802_v47 }
 0x130 PF: > { %s13_s12 = sadd.s32 1, %s1133_s12  }
 0x131   : > { %p10_p4 = scmp.ge.s32.totalorder %s13_s12, 4  }
 0x133   :  { %12 = sbr.rel (!%p10_p4) target bundleno = 1 (0x1), region = 62 }

// kernel: dqn_forward.6
= control target key start
LH: loop header
LB: loop body
LE: loop exit
PB: predicated region body
PF: predicated region fallthrough
CT: control target
= control target key end

     0   :  { %s1185_s12 = smov 0   ;;  %s1362_s0 = inlined_call_operand.vmem [shape: bf16[2,49,576], index: 0, kind: input, shape index: {}]   ;;  %s1363_s1 = inlined_call_operand.vmem [shape: bf16[576,64], index: 1, kind: input, shape index: {}]   ;;  %s1364_s2 = inlined_call_operand.vmem [shape: f32[1,64], index: 2, kind: input, shape index: {}]   ;;  %s1365_s3 = inlined_call_operand.vmem [shape: bf16[2,49,64], index: 3, kind: output, shape index: {}]  }
   0x1 LB: > { %s889_s13 = sadd.s32 4294967295, %s1163_s12   ;;  %p893_p0 = scmp.ge.s32.totalorder %s1163_s12, 1  ;;  %s1163_s12 = sphi %s1185_s12, %s13_s12  }
   0x2   : > { %p137_p1 = scmp.lt.s32.totalorder %s1163_s12, 3 }
   0x4   : > { %p138_p2 = pnand %p893_p0, %p137_p1 }
   0x5   : > { %v1095_v0 = vld [vmem:[%s1363_s1 + $0x40] sm:$0xff] (!%p138_p2)   ;;  %v1099_v4 = vld [vmem:[%s1363_s1 + $0x48] sm:$0xff] (!%p138_p2)   ;;  %v1103_v8 = vld [vmem:[%s1363_s1 + $0x50] sm:$0xff] (!%p138_p2)   ;;  %p161_p3 = scmp.lt.s32.totalorder (!%p138_p2), %s889_s13, 1  ;;  %vm580_vm0 = vcmask (!%p138_p2), 523264   ;;  %vm828_vm1 = vcmask (!%p138_p2), 516096  }
   0x6   : > { %141 = sbr.rel (%p138_p2) target bundleno = 294 (0x126), region = 32  ;;  %v1096_v1 = vld [vmem:[%s1363_s1 + $0xc0] sm:$0xff] (!%p138_p2)   ;;  %973 = vmatprep.subr.bf16.mxu0 (!%p138_p2), %v1095_v0  ;;  %v1100_v5 = vld [vmem:[%s1363_s1 + $0xc8] sm:$0xff] (!%p138_p2)   ;;  %v1104_v9 = vld [vmem:[%s1363_s1 + $0xd0] sm:$0xff] (!%p138_p2)   ;;  %vm829_vm2 = vsmask.f32 (!%p138_p2), 256 }
   0x7   : > { %v1097_v2 = vld [vmem:[%s1363_s1] sm:$0xff] (!%p138_p2)   ;;  %1013 = vmatprep.subr.bf16.mxu1 (!%p138_p2), %v1096_v1  ;;  %v1101_v6 = vld [vmem:[%s1363_s1 + $0x8] sm:$0xff] (!%p138_p2)   ;;  %v1105_v10 = vld [vmem:[%s1363_s1 + $0x10] sm:$0xff] (!%p138_p2)   ;;  %vm821_vm3 = vcmask (!%p138_p2), 519168  }
   0x8   : > { %v1098_v3 = vld [vmem:[%s1363_s1 + $0x80] sm:$0xff] (!%p138_p2)   ;;  %974 = vmatpush3.bf16.msra.mxu0 (!%p138_p2), %v1097_v2  ;;  %v1102_v7 = vld [vmem:[%s1363_s1 + $0x88] sm:$0xff] (!%p138_p2)   ;;  %v1106_v11 = vld [vmem:[%s1363_s1 + $0x90] sm:$0xff] (!%p138_p2)  }
   0x9   : > { %1014 = vmatpush3.bf16.msra.mxu1 (!%p138_p2), %v1098_v3  ;;  %975 = vmatprep.subr.bf16.mxu0 (!%p138_p2), %v1099_v4  ;;  %v1107_v12 = vld [vmem:[%s1363_s1 + $0x58] sm:$0xff] (!%p138_p2)   ;;  %v1111_v16 = vld [vmem:[%s1363_s1 + $0x60] sm:$0xff] (!%p138_p2)   ;;  %v1115_v20 = vld [vmem:[%s1363_s1 + $0x68] sm:$0xff] (!%p138_p2)  }
   0xa   : > { %1015 = vmatprep.subr.bf16.mxu1 (!%p138_p2), %v1100_v5  ;;  %v1108_v13 = vld [vmem:[%s1363_s1 + $0xd8] sm:$0xff] (!%p138_p2)   ;;  %v1112_v17 = vld [vmem:[%s1363_s1 + $0xe0] sm:$0xff] (!%p138_p2)   ;;  %v1116_v21 = vld [vmem:[%s1363_s1 + $0xe8] sm:$0xff] (!%p138_p2)  }
   0xb   : > { %v1109_v14 = vld [vmem:[%s1363_s1 + $0x18] sm:$0xff] (!%p138_p2)   ;;  %v1113_v18 = vld [vmem:[%s1363_s1 + $0x20] sm:$0xff] (!%p138_p2)   ;;  %v1117_v22 = vld [vmem:[%s1363_s1 + $0x28] sm:$0xff] (!%p138_p2)  }
   0xc   : > { %976 = vmatpush3.bf16.msra.mxu0 (!%p138_p2), %v1101_v6  ;;  %v1110_v15 = vld [vmem:[%s1363_s1 + $0x98] sm:$0xff] (!%p138_p2)   ;;  %v1114_v19 = vld [vmem:[%s1363_s1 + $0xa0] sm:$0xff] (!%p138_p2)   ;;  %v1118_v23 = vld [vmem:[%s1363_s1 + $0xa8] sm:$0xff] (!%p138_p2)  }
   0xd   : > { %1016 = vmatpush3.bf16.msra.mxu1 %v1102_v7  ;;  %977 = vmatprep.subr.bf16.mxu0 %v1103_v8  ;;  %s1367_s13 = smov (!%p161_p3, %s889_s13), 1  ;;  %v1119_v24 = vld [vmem:[%s1363_s1 + $0x70] sm:$0xff]   ;;  %v1123_v28 = vld [vmem:[%s1363_s1 + $0x78] sm:$0xff]   ;;  %v1133_v36 = vld [vmem:[%s1363_s1 + $0x100] sm:$0xff]  }
   0xe   : > { %1017 = vmatprep.subr.bf16.mxu1 %v1104_v9  ;;  %v1120_v25 = vld [vmem:[%s1363_s1 + $0xf0] sm:$0xff]   ;;  %s1085_s16 = smul.u32 140, %s1367_s13  ;;  %v1124_v29 = vld [vmem:[%s1363_s1 + $0xf8] sm:$0xff]   ;;  %v1140_v39 = vld [vmem:[%s1363_s1 + $0x108] sm:$0xff]  }
   0xf   : > { %v1121_v26 = vld [vmem:[%s1363_s1 + $0x30] sm:$0xff]   ;;  %v1125_v30 = vld [vmem:[%s1363_s1 + $0x38] sm:$0xff]   ;;  %v896_v60 = vld [vmem:[%s1364_s2] ss:$0 sm:$0xff]  ;;  %s1086_s17 = smul.u32 28, %s1367_s13 }
  0x10   : > { %978 = vmatpush3.bf16.msra.mxu0 %v1105_v10  ;;  %v1122_v27 = vld [vmem:[%s1363_s1 + $0xb0] sm:$0xff]   ;;  %s1293_s27 = scalar_lea.vmem %s1362_s0, %s1085_s16  ;;  %v1126_v31 = vld [vmem:[%s1363_s1 + $0xb8] sm:$0xff]   ;;  %vm830_vm4 = vmand %vm828_vm1, %vm829_vm2 }
  0x11   : > { %1018 = vmatpush3.bf16.msra.mxu1 %v1106_v11  ;;  %979 = vmatprep.subr.bf16.mxu0 %v1107_v12  ;;  %v1127_v32 = vld [vmem:[%s1293_s27] ss:$20 sps:$4 sm:$0xff]   ;;  %v1129_v33 = vld [vmem:[%s1293_s27 + $0x4] ss:$20 sps:$4 sm:$0xff]   ;;  %v1130_v34 = vld [vmem:[%s1293_s27 + $0x8] ss:$20 sps:$4 sm:$0xff]   ;;  %s1340_s20 = scalar_lea.vmem %s1365_s3, %s1086_s17 }
  0x12   : > { %1019 = vmatprep.subr.bf16.mxu1 %v1108_v13  ;;  %v1132_v35 = vld [vmem:[%s1293_s27 + $0xc] ss:$20 sps:$4 sm:$0xff]   ;;  %625 = vmatprep.mubr.bf16.mxu0 %v1129_v33  ;;  %v1136_v38 = vld [vmem:[%s1293_s27 + $0x34] ss:$20 sps:$4 sm:$0xff]   ;;  %v1139_v41 = vld [vmem:[%s1293_s27 + $0x30] ss:$20 sps:$4 sm:$0xff]  }
  0x13   : > { %689 = vmatprep.mubr.bf16.mxu1 %v1132_v35  ;;  %v1134_v37 = vld [vmem:[%s1293_s27 + $0x2c] ss:$20 sps:$4 sm:$0xff]   ;;  %v1138_v40 = vld [vmem:[%s1293_s27 + $0x28] ss:$20 sps:$4 sm:$0xff]   ;;  %v1147_v44 = vld [vmem:[%s1363_s1 + $0x110] sm:$0xff]  }
  0x14   : > { %980 = vmatpush3.bf16.msra.mxu0 %v1109_v14  ;;  %v1141_v42 = vld [vmem:[%s1293_s27 + $0x54] ss:$20 sps:$4 sm:$0xff]   ;;  %v1143_v43 = vld [vmem:[%s1293_s27 + $0x5c] ss:$20 sps:$4 sm:$0xff]   ;;  %v264_v47 = vld [vmem:[%s1293_s27 + $0x80] sm:$0x11] }
  0x15   : > { %1020 = vmatpush3.bf16.msra.mxu1 %v1110_v15  ;;  %981 = vmatprep.subr.bf16.mxu0 %v1111_v16  ;;  %v1152_v45 = vld [vmem:[%s1363_s1 + $0x118] sm:$0xff]   ;;  %v1145_v48 = vld [vmem:[%s1293_s27 + $0x50] ss:$20 sps:$4 sm:$0xff]   ;;  %v915_v51 = vcombine.high %v264_v47, %v264_v47  ;;  %v914_v53 = vcombine.low %v264_v47, %v264_v47  ;;  %v1154_v55 = vld [vmem:[%s1293_s27 + $0x60] ss:$20 sps:$4 sm:$0xff]  }
  0x16   : > { %1021 = vmatprep.subr.bf16.mxu1 %v1112_v17  ;;  %v263_v46 = vld [vmem:[%s1293_s27 + $0x78] sm:$0x11]  ;;  %v1153_v54 = vld [vmem:[%s1293_s27 + $0x10] ss:$20 sps:$4 sm:$0xff]  }
  0x17   : > { %v1146_v49 = vld [vmem:[%s1293_s27 + $0x58] ss:$20 sps:$4 sm:$0xff]   ;;  %v913_v50 = vcombine.high %v263_v46, %v263_v46  ;;  %v912_v52 = vcombine.low %v263_v46, %v263_v46  ;;  %v1156_v57 = vld [vmem:[%s1293_s27 + $0x88] ss:$0 sps:$4 sm:$0x11]  }
  0x18   : > { %982 = vmatpush3.bf16.msra.mxu0 %v1113_v18  ;;  %v1155_v56 = vld [vmem:[%s1293_s27 + $0x38] ss:$20 sps:$4 sm:$0xff]  }
  0x19   : > { %1022 = vmatpush3.bf16.msra.mxu1 %v1114_v19  ;;  %983 = vmatprep.subr.bf16.mxu0 %v1115_v20 }
  0x1a   : > { %1023 = vmatprep.subr.bf16.mxu1 %v1116_v21 }
  0x1c   : > { %984 = vmatpush3.bf16.msra.mxu0 %v1117_v22 }
  0x1d   : > { %1024 = vmatpush3.bf16.msra.mxu1 %v1118_v23  ;;  %985 = vmatprep.subr.bf16.mxu0 %v1119_v24 }
  0x1e   : > { %1025 = vmatprep.subr.bf16.mxu1 %v1120_v25 }
  0x20   : > { %986 = vmatpush3.bf16.msra.mxu0 %v1121_v26 }
  0x21   : > { %1026 = vmatpush3.bf16.msra.mxu1 %v1122_v27  ;;  %987 = vmatprep.subr.bf16.mxu0 %v1123_v28 }
  0x22   : > { %1027 = vmatprep.subr.bf16.mxu1 %v1124_v29 }
  0x24   : > { %988 = vmatpush3.bf16.msra.mxu0 %v1125_v30 }
  0x25   : > { %1028 = vmatpush3.bf16.msra.mxu1 %v1126_v31  ;;  %1061 = vmatprep.subr.bf16.mxu0 %v1133_v36 }
  0x26   : > { %1077 = vmatprep.subr.bf16.mxu1 %v1133_v36 }
  0x27   : > { %626 = vmatmul.mubr.bf16.vlgmr.msra.gmra.mrb[0].mxu0 %v1127_v32 }
  0x28   : > { %690 = vmatmul.mubr.bf16.vlgmr.msra.gmra.mrb[0].mxu1 %v1130_v34  ;;  %1062 = vmatpush3.bf16.msra.mxu0 %v1133_v36 }
  0x29   : > { %1081 = vmatpush3.bf16.msra.mxu1 %v1133_v36  ;;  %633 = vmatprep.mubr.bf16.mxu0 %v1134_v37 }
  0x2a   : > { %697 = vmatprep.mubr.bf16.mxu1 %v1136_v38  ;;  %1063 = vmatprep.subr.bf16.mxu0 %v1140_v39 }
  0x2b   : > { %1078 = vmatprep.subr.bf16.mxu1 %v1140_v39 }
  0x2c   : > { %1064 = vmatpush3.bf16.msra.mxu0 %v1140_v39 }
  0x2d   : > { %1082 = vmatpush3.bf16.msra.mxu1 %v1140_v39  ;;  %1065 = vmatprep.subr.bf16.mxu0 %v1147_v44 }
  0x2e   : > { %1079 = vmatprep.subr.bf16.mxu1 %v1147_v44 }
  0x2f   : > { %634 = vmatmul.mubr.bf16.gmra.mrb[4].mxu0 %v1138_v40 }
  0x30   : > { %698 = vmatmul.mubr.bf16.gmra.mrb[4].mxu1 %v1139_v41  ;;  %641 = vmatprep.mubr.bf16.mxu0 %v1141_v42 }
  0x31   : > { %705 = vmatprep.mubr.bf16.mxu1 %v1143_v43  ;;  %1066 = vmatpush3.bf16.msra.mxu0 %v1147_v44 }
  0x32   : > { %1083 = vmatpush3.bf16.msra.mxu1 %v1147_v44  ;;  %1067 = vmatprep.subr.bf16.mxu0 %v1152_v45 }
  0x33   : > { %1080 = vmatprep.subr.bf16.mxu1 %v1152_v45 }
  0x35   : > { %1068 = vmatpush3.bf16.msra.mxu0 %v1152_v45 }
  0x36   : > { %1084 = vmatpush3.bf16.msra.mxu1 %v1152_v45 }
  0x37   : > { %642 = vmatmul.mubr.bf16.gmra.mrb[8].mxu0 %v1145_v48 }
  0x38   : > { %706 = vmatmul.mubr.bf16.gmra.mrb[8].mxu1 %v1146_v49  ;;  %649 = vmatprep.mubr.bf16.mxu0 %v913_v50 }
  0x39   : > { %713 = vmatprep.mubr.bf16.mxu1 %v915_v51 }
  0x3f   : > { %650 = vmatmul.mubr.bf16.gmra.mrb[12].mxu0 %v912_v52 }
  0x40   : > { %714 = vmatmul.mubr.bf16.gmra.mrb[12].mxu1 %v914_v53  ;;  %1069 = vmatprep.mubr.msk.bf16.mxu0 %vm580_vm0, %v1153_v54 }
  0x41   : > { %1073 = vmatprep.mubr.msk.bf16.mxu1 %vm580_vm0, %v1154_v55 }
  0x47   : > { %1070 = vmatmul.mubr.msk.bf16.vlgmr.msra.gmra.mrb[16].mxu0 %vm580_vm0, %v1155_v56 }
  0x48   : > { %1074 = vmatmul.mubr.msk.bf16.vlgmr.msra.gmra.mrb[16].mxu1 %vm580_vm0, %v1156_v57 }
  0xfa   : > { %v989_v58 = vpop.f32.mrb[0].mxu0 }
  0xfb   : > { %v1029_v59 = vpop.f32.mrb[0].mxu1  ;;  %v990_v61 = vpop.f32.mrb[1].mxu0 }
  0xfc   : > { %v991_v62 = vadd.f32 %v990_v61, %v989_v58  ;;  %v1030_v63 = vpop.f32.mrb[1].mxu1  ;;  %v992_v0 = vpop.f32.mrb[2].mxu0 }
  0xfd   : > { %v1031_v1 = vadd.f32 %v1030_v63, %v1029_v59  ;;  %v1032_v2 = vpop.f32.mrb[2].mxu1  ;;  %v993_v3 = vpop.f32.mrb[3].mxu0 }
  0xfe   : > { %v628_v4 = vadd.f32 %v991_v62, %v896_v60  ;;  %v994_v5 = vadd.f32 %v993_v3, %v992_v0  ;;  %v1033_v6 = vpop.f32.mrb[3].mxu1 }
  0xff   : > { %v1034_v7 = vadd.f32 %v1033_v6, %v1032_v2 }
 0x100   : > { %v631_v8 = vadd.f32 %v994_v5, %v896_v60  ;;  %v692_v9 = vadd.f32 %v1031_v1, %v628_v4 }
 0x102   : > { %v995_v10 = vpop.f32.mrb[4].mxu0  ;;  %v1334_v11 = vadd.f32 %v1034_v7, %v631_v8 }
 0x103   : > { %v1035_v12 = vpop.f32.mrb[4].mxu1  ;;  %v996_v13 = vpop.f32.mrb[5].mxu0 }
 0x104   : > { %v997_v14 = vadd.f32 %v996_v13, %v995_v10  ;;  %v1036_v15 = vpop.f32.mrb[5].mxu1  ;;  %v998_v16 = vpop.f32.mrb[6].mxu0 }
 0x105   : > { %v1037_v17 = vadd.f32 %v1036_v15, %v1035_v12  ;;  %v1038_v18 = vpop.f32.mrb[6].mxu1  ;;  %v999_v19 = vpop.f32.mrb[7].mxu0 }
 0x106   : > { %v636_v20 = vadd.f32 %v997_v14, %v896_v60  ;;  %v1000_v21 = vadd.f32 %v999_v19, %v998_v16  ;;  %v1039_v22 = vpop.f32.mrb[7].mxu1 }
 0x107   : > { %v1040_v23 = vadd.f32 %v1039_v22, %v1038_v18 }
 0x108   : > { %v639_v24 = vadd.f32 %v1000_v21, %v896_v60  ;;  %v700_v25 = vadd.f32 %v1037_v17, %v636_v20 }
 0x10a   : > { %v1001_v26 = vpop.f32.mrb[8].mxu0  ;;  %v703_v27 = vadd.f32 %v1040_v23, %v639_v24 }
 0x10b   : > { %v1041_v28 = vpop.f32.mrb[8].mxu1  ;;  %v1002_v29 = vpop.f32.mrb[9].mxu0 }
 0x10c   : > { %v1003_v30 = vadd.f32 %v1002_v29, %v1001_v26  ;;  %v1042_v31 = vpop.f32.mrb[9].mxu1  ;;  %v1004_v32 = vpop.f32.mrb[10].mxu0 }
 0x10d   : > { %v1043_v33 = vadd.f32 %v1042_v31, %v1041_v28  ;;  %v1044_v34 = vpop.f32.mrb[10].mxu1  ;;  %v1005_v35 = vpop.f32.mrb[11].mxu0 }
 0x10e   : > { %v644_v36 = vadd.f32 %v1003_v30, %v896_v60  ;;  %v1006_v37 = vadd.f32 %v1005_v35, %v1004_v32  ;;  %v1045_v38 = vpop.f32.mrb[11].mxu1 }
 0x10f   : > { %v1046_v39 = vadd.f32 %v1045_v38, %v1044_v34 }
 0x110   : > { %v647_v40 = vadd.f32 %v1006_v37, %v896_v60  ;;  %v708_v41 = vadd.f32 %v1043_v33, %v644_v36 }
 0x112   : > { %v1007_v42 = vpop.f32.mrb[12].mxu0  ;;  %v711_v43 = vadd.f32 %v1046_v39, %v647_v40 }
 0x113   : > { %v1047_v44 = vpop.f32.mrb[12].mxu1  ;;  %v1008_v45 = vpop.f32.mrb[13].mxu0 }
 0x114   : > { %v1009_v46 = vadd.f32 %v1008_v45, %v1007_v42  ;;  %v1048_v47 = vpop.f32.mrb[13].mxu1  ;;  %v1010_v48 = vpop.f32.mrb[14].mxu0 }
 0x115   : > { %v1049_v49 = vadd.f32 %v1048_v47, %v1047_v44  ;;  %v1050_v50 = vpop.f32.mrb[14].mxu1  ;;  %v1011_v51 = vpop.f32.mrb[15].mxu0 }
 0x116   : > { %v652_v52 = vadd.f32 %v1009_v46, %v896_v60  ;;  %v1051_v53 = vpop.f32.mrb[15].mxu1 }
 0x118   : > { %v716_v54 = vadd.f32 %v1049_v49, %v652_v52 }
 0x11a   : > { %v1071_v55 = vpop.f32.mrb[16].mxu0 }
 0x11b   : > { %v764_v56 = vadd.f32 %v1071_v55, %v700_v25  ;;  %v1075_v57 = vpop.f32.mrb[16].mxu1  ;;  %v755_v58 = vpop.f32.mrb[17].mxu0 }
 0x11c   : > { %v780_v59 = vadd.f32 %v1075_v57, %v716_v54  ;;  %v756_v61 = vadd.f32 %v755_v58, %v692_v9  ;;  %v771_v62 = vpop.f32.mrb[17].mxu1  ;;  %v1072_v63 = vpop.f32.mrb[18].mxu0  ;;  %v831_v9 = vld [vmem:[%s1340_s20 + $0x18] sm:$0x1] }
 0x11d   : > { %v787_v60 = vmax.f32 %v764_v56, 0.0  ;;  %v772_v0 = vadd.f32 %v771_v62, %v708_v41  ;;  %v767_v1 = vadd.f32 %v1072_v63, %v703_v27  ;;  %v1076_v2 = vpop.f32.mrb[18].mxu1  ;;  %v758_v3 = vpop.f32.mrb[19].mxu0 }
 0x11e   : > { %v791_v4 = vmax.f32 %v780_v59, 0.0  ;;  %v785_v5 = vmax.f32 %v756_v61, 0.0  ;;  %v759_v6 = vadd.f32 %v758_v3, %v1334_v11  ;;  %v774_v7 = vpop.f32.mrb[19].mxu1 }
 0x11f   : > { %v968_v8 = vpack.c.bf16 %v787_v60, %v787_v60  ;;  %v789_v10 = vmax.f32 %v772_v0, 0.0  ;;  %v788_v12 = vmax.f32 %v767_v1, 0.0  ;;  %v775_v13 = vadd.f32 %v774_v7, %v711_v43 }
 0x120   : > { %v972_v14 = vpack.c.bf16 %v791_v4, %v791_v4  ;;  %v966_v15 = vpack.c.bf16 %v785_v5, %v785_v5  ;;  %v786_v16 = vmax.f32 %v759_v6, 0.0 }
 0x121   : > { %824 = vst.msk [vmem:[%s1340_s20 + $0x8] sm:$0xf] %vm821_vm3, %v968_v8  ;;  %v970_v11 = vpack.c.bf16 %v789_v10, %v789_v10  ;;  %v969_v17 = vpack.c.bf16 %v788_v12, %v788_v12  ;;  %v790_v18 = vmax.f32 %v775_v13, 0.0 }
 0x122   : > { %v832_v19 = vsel %vm830_vm4, %v972_v14, %v831_v9  ;;  %822 = vst.msk [vmem:[%s1340_s20] sm:$0xf] %vm821_vm3, %v966_v15  ;;  %v967_v20 = vpack.c.bf16 %v786_v16, %v786_v16 }
 0x123   : > { %833 = vst [vmem:[%s1340_s20 + $0x18] sm:$0x1] %v832_v19  ;;  %826 = vst.msk [vmem:[%s1340_s20 + $0x10] sm:$0xf] %vm821_vm3, %v970_v11  ;;  %v971_v21 = vpack.c.bf16 %v790_v18, %v790_v18 }
 0x124   : > { %825 = vst.msk [vmem:[%s1340_s20 + $0xc] sm:$0xf] %vm821_vm3, %v969_v17  ;;  %823 = vst.msk [vmem:[%s1340_s20 + $0x4] sm:$0xf] %vm821_vm3, %v967_v20 }
 0x125   : > { %827 = vst.msk [vmem:[%s1340_s20 + $0x14] sm:$0xf] %vm821_vm3, %v971_v21 }
 0x126 PF: > { %s13_s12 = sadd.s32 1, %s1163_s12  }
 0x127   : > { %p10_p4 = scmp.ge.s32.totalorder %s13_s12, 4  }
 0x129   :  { %12 = sbr.rel (!%p10_p4) target bundleno = 1 (0x1), region = 62 }

// kernel: dqn_forward.7
= control target key start
LH: loop header
LB: loop body
LE: loop exit
PB: predicated region body
PF: predicated region fallthrough
CT: control target
= control target key end

     0   :  { %10 = vsyncpa [#allocation3], 0  ;;  %s11642_s0 = inlined_call_operand.vmem [shape: bf16[2,1,3136], index: 0, kind: input, shape index: {}]   ;;  %s11643_s1 = inlined_call_operand.vmem [shape: bf16[3136,512], index: 1, kind: input, shape index: {}]   ;;  %s11644_s2 = inlined_call_operand.vmem [shape: f32[1,512], index: 2, kind: input, shape index: {}]   ;;  %s11645_s3 = inlined_call_operand.vmem [shape: bf16[512,128], index: 3, kind: input, shape index: {}]   ;;  %s11646_s4 = inlined_call_operand.vmem [shape: f32[1,128], index: 4, kind: input, shape index: {}]   ;;  %s11647_s5 = inlined_call_operand.hbm [shape: f32[2,1,128], index: 5, kind: output, shape index: {}]  }
   0x1   :  { %12 = vsyncpa [#allocation3 + $0x1], 0  ;;  %s8953_s18 = smov 0   ;;  %s8955_s19 = smov 0  }
   0x2   :  { %s8957_s20 = smov 0   ;;  %s8959_s21 = smov 0  }
   0x3 LB: > { %s8974_s22 = sadd.s32 4294967295, %s8918_s21   ;;  %s6631_s23 = sadd.s32 4294967294, %s8918_s21   ;;  %s8918_s21 = sphi %s8959_s21, %s11653_s21   ;;  %s8914_s20 = sphi %s8957_s20, %s11652_s20   ;;  %s8910_s19 = sphi %s8955_s19, %s11651_s19   ;;  %s8906_s18 = sphi %s8953_s18, %s11650_s18  }
   0x4   : > { %s8978_s24 = sadd.s32 1, %s8918_s21   ;;  %s135_s25 = sadd.s32 1, %s8914_s20 }
   0x5   : > { %s132_s26 = ssub.s32 %s8918_s21, %s8978_s24  ;;  %p145_p0 = scmp.ne.s32.totalorder %s8914_s20, %s8910_s19 }
   0x6   : > { %p133_p1 = scmp.eq.s32.totalorder %s132_s26, 0  ;;  %p146_p2 = scmp.eq.s32.totalorder %s8974_s22, 1 }
   0x7   : > { %p151_p3 = scmp.ne.s32.totalorder %s8910_s19, %s8906_s18  ;;  %p152_p4 = scmp.eq.s32.totalorder %s6631_s23, 1 }
   0x8   : > { %s8989_s27 = scalar_select %p133_p1, %s8914_s20, %s135_s25  }
   0x9   : > { %p8991_p5 = por %p146_p2, %p145_p0  ;;  %p8995_p6 = por %p152_p4, %p151_p3 }
   0xa   : > { %p6634_p7 = scmp.ge.s32.totalorder %s8918_s21, 1  ;;  %p189_p8 = scmp.lt.s32.totalorder %s8918_s21, 3 }
   0xc   : > { %p190_p9 = pnand %p6634_p7, %p189_p8 }
   0xd   : > { %v7643_v0 = vld [vmem:[%s11643_s1 + $0x4] ss:$16 sps:$4 sm:$0xff] (!%p190_p9)   ;;  %v7645_v1 = vld [vmem:[%s11643_s1 + $0xc] ss:$16 sps:$4 sm:$0xff] (!%p190_p9)   ;;  %v7647_v2 = vld [vmem:[%s11643_s1] ss:$16 sps:$4 sm:$0xff] (!%p190_p9)   ;;  %v1082_v38 = vlaneseq (!%p190_p9) }
   0xe   : > { %193 = sbr.rel (%p190_p9) target bundleno = 1252 (0x4e4), region = 40  ;;  %5208 = vmatprep.subr.bf16.mxu0 (!%p190_p9), %v7643_v0  ;;  %v7648_v3 = vld [vmem:[%s11643_s1 + $0x8] ss:$16 sps:$4 sm:$0xff] (!%p190_p9)   ;;  %5741 = vmatprep.subr.bf16.mxu1 (!%p190_p9), %v7645_v1  ;;  %v7649_v4 = vld [vmem:[%s11643_s1 + $0x24] ss:$16 sps:$4 sm:$0xff] (!%p190_p9)   ;;  %p215_p10 = scmp.lt.s32.totalorder (!%p190_p9), %s8974_s22, 1 }
   0xf   : > { %5209 = vmatpush1.bf16.msra.mxu0 (!%p190_p9), %v7647_v2  ;;  %5742 = vmatpush1.bf16.msra.mxu1 (!%p190_p9), %v7648_v3  ;;  %v7651_v5 = vld [vmem:[%s11643_s1 + $0x2c] ss:$16 sps:$4 sm:$0xff] (!%p190_p9)   ;;  %v7653_v6 = vld [vmem:[%s11643_s1 + $0x20] ss:$16 sps:$4 sm:$0xff] (!%p190_p9)   ;;  %v7654_v7 = vld [vmem:[%s11643_s1 + $0x28] ss:$16 sps:$4 sm:$0xff] (!%p190_p9)  }
  0x10   : > { %5210 = vmatprep.subr.bf16.mxu0 (!%p190_p9), %v7649_v4  ;;  %5743 = vmatprep.subr.bf16.mxu1 (!%p190_p9), %v7651_v5  ;;  %v7655_v8 = vld [vmem:[%s11643_s1 + $0x44] ss:$16 sps:$4 sm:$0xff] (!%p190_p9)   ;;  %v7657_v9 = vld [vmem:[%s11643_s1 + $0x4c] ss:$16 sps:$4 sm:$0xff] (!%p190_p9)   ;;  %v7659_v10 = vld [vmem:[%s11643_s1 + $0x40] ss:$16 sps:$4 sm:$0xff] (!%p190_p9)  }
  0x11   : > { %v7660_v11 = vld [vmem:[%s11643_s1 + $0x48] ss:$16 sps:$4 sm:$0xff] (!%p190_p9)   ;;  %v7661_v12 = vld [vmem:[%s11643_s1 + $0x64] ss:$16 sps:$4 sm:$0xff] (!%p190_p9)   ;;  %v7663_v13 = vld [vmem:[%s11643_s1 + $0x6c] ss:$16 sps:$4 sm:$0xff] (!%p190_p9)  }
  0x12   : > { %v7665_v14 = vld [vmem:[%s11643_s1 + $0x60] ss:$16 sps:$4 sm:$0xff] (!%p190_p9)   ;;  %v7666_v15 = vld [vmem:[%s11643_s1 + $0x68] ss:$16 sps:$4 sm:$0xff] (!%p190_p9)   ;;  %v7667_v16 = vld [vmem:[%s11643_s1 + $0x84] ss:$16 sps:$4 sm:$0xff] (!%p190_p9)  }
  0x13   : > { %5211 = vmatpush1.bf16.msra.mxu0 (!%p190_p9), %v7653_v6  ;;  %5744 = vmatpush1.bf16.msra.mxu1 (!%p190_p9), %v7654_v7  ;;  %v7669_v17 = vld [vmem:[%s11643_s1 + $0x8c] ss:$16 sps:$4 sm:$0xff] (!%p190_p9)   ;;  %v7671_v18 = vld [vmem:[%s11643_s1 + $0x80] ss:$16 sps:$4 sm:$0xff] (!%p190_p9)   ;;  %v7672_v19 = vld [vmem:[%s11643_s1 + $0x88] ss:$16 sps:$4 sm:$0xff] (!%p190_p9)  }
  0x14   : > { %5212 = vmatprep.subr.bf16.mxu0 (!%p190_p9), %v7655_v8  ;;  %5745 = vmatprep.subr.bf16.mxu1 (!%p190_p9), %v7657_v9  ;;  %v7673_v20 = vld [vmem:[%s11643_s1 + $0xa4] ss:$16 sps:$4 sm:$0xff] (!%p190_p9)   ;;  %v7675_v21 = vld [vmem:[%s11643_s1 + $0xac] ss:$16 sps:$4 sm:$0xff] (!%p190_p9)   ;;  %v7677_v22 = vld [vmem:[%s11643_s1 + $0xa0] ss:$16 sps:$4 sm:$0xff] (!%p190_p9)  }
  0x15   : > { %v7678_v23 = vld [vmem:[%s11643_s1 + $0xa8] ss:$16 sps:$4 sm:$0xff]   ;;  %v7679_v24 = vld [vmem:[%s11643_s1 + $0xc4] ss:$16 sps:$4 sm:$0xff]   ;;  %v7681_v25 = vld [vmem:[%s11643_s1 + $0xcc] ss:$16 sps:$4 sm:$0xff]  }
  0x16   : > { %v7683_v26 = vld [vmem:[%s11643_s1 + $0xc0] ss:$16 sps:$4 sm:$0xff]   ;;  %v7684_v27 = vld [vmem:[%s11643_s1 + $0xc8] ss:$16 sps:$4 sm:$0xff]   ;;  %v7685_v28 = vld [vmem:[%s11643_s1 + $0xe4] ss:$16 sps:$4 sm:$0xff]  }
  0x17   : > { %5213 = vmatpush1.bf16.msra.mxu0 %v7659_v10  ;;  %5746 = vmatpush1.bf16.msra.mxu1 %v7660_v11  ;;  %v7687_v29 = vld [vmem:[%s11643_s1 + $0xec] ss:$16 sps:$4 sm:$0xff]   ;;  %v7689_v30 = vld [vmem:[%s11643_s1 + $0xe0] ss:$16 sps:$4 sm:$0xff]   ;;  %v7690_v31 = vld [vmem:[%s11643_s1 + $0xe8] ss:$16 sps:$4 sm:$0xff]  }
  0x18   : > { %5214 = vmatprep.subr.bf16.mxu0 %v7661_v12  ;;  %5747 = vmatprep.subr.bf16.mxu1 %v7663_v13  ;;  %v7691_v32 = vld [vmem:[%s11643_s1 + $0x104] ss:$16 sps:$4 sm:$0xff]   ;;  %v7693_v33 = vld [vmem:[%s11643_s1 + $0x10c] ss:$16 sps:$4 sm:$0xff]   ;;  %v7695_v34 = vld [vmem:[%s11643_s1 + $0x100] ss:$16 sps:$4 sm:$0xff]  }
  0x19   : > { %v7696_v35 = vld [vmem:[%s11643_s1 + $0x108] ss:$16 sps:$4 sm:$0xff]   ;;  %s216_s13 = scalar_select %p215_p10, %s8974_s22, 1  ;;  %v8920_v36 = vmov 1966171168   ;;  %v9120_v43 = vshrl.u32 %v1082_v38, 7 }
  0x1a   : > { %v1080_v37 = vunpack.c.l.s4 %v8920_v36  ;;  %v7697_v39 = vld [vmem:[%s11643_s1 + $0x124] ss:$16 sps:$4 sm:$0xff]   ;;  %v7699_v40 = vld [vmem:[%s11643_s1 + $0x12c] ss:$16 sps:$4 sm:$0xff]   ;;  %v7701_v41 = vld [vmem:[%s11643_s1 + $0x120] ss:$16 sps:$4 sm:$0xff]  }
  0x1b   : > { %5215 = vmatpush1.bf16.msra.mxu0 %v7665_v14  ;;  %5748 = vmatpush1.bf16.msra.mxu1 %v7666_v15  ;;  %s7601_s26 = smul.u32 25, %s216_s13  ;;  %v7702_v44 = vld [vmem:[%s11643_s1 + $0x128] ss:$16 sps:$4 sm:$0xff]   ;;  %v7703_v45 = vld [vmem:[%s11643_s1 + $0x144] ss:$16 sps:$4 sm:$0xff]   ;;  %vm5204_vm0 = vcmask 523264  }
  0x1c   : > { %5216 = vmatprep.subr.bf16.mxu0 %v7667_v16  ;;  %5749 = vmatprep.subr.bf16.mxu1 %v7669_v17  ;;  %v1081_v42 = vunpack.c.0.s8 %v1080_v37  ;;  %v7705_v46 = vld [vmem:[%s11643_s1 + $0x14c] ss:$16 sps:$4 sm:$0xff]   ;;  %v7707_v47 = vld [vmem:[%s11643_s1 + $0x140] ss:$16 sps:$4 sm:$0xff]   ;;  %v7708_v48 = vld [vmem:[%s11643_s1 + $0x148] ss:$16 sps:$4 sm:$0xff]  }
  0x1d   : > { %s9140_s17 = scalar_lea.vmem %s11642_s0, %s7601_s26  ;;  %v7709_v50 = vld [vmem:[%s11643_s1 + $0x164] ss:$16 sps:$4 sm:$0xff]   ;;  %v7711_v51 = vld [vmem:[%s11643_s1 + $0x16c] ss:$16 sps:$4 sm:$0xff]   ;;  %v7713_v53 = vld [vmem:[%s11643_s1 + $0x160] ss:$16 sps:$4 sm:$0xff]  }
  0x1e   : > { %v9143_v49 = vsub.s32 %v1081_v42, %v9120_v43  ;;  %v9152_v52 = vld [vmem:[%s9140_s17] sm:$0xff]  ;;  %v7714_v55 = vld [vmem:[%s11643_s1 + $0x168] ss:$16 sps:$4 sm:$0xff]   ;;  %v7717_v57 = vld [vmem:[%s11643_s1 + $0x18c] ss:$16 sps:$4 sm:$0xff]   ;;  %s213_s14 = sand.u32 1, %s8910_s19  }
  0x1f   : > { %5217 = vmatpush1.bf16.msra.mxu0 %v7671_v18  ;;  %5750 = vmatpush1.bf16.msra.mxu1 %v7672_v19  ;;  %v7715_v56 = vld [vmem:[%s11643_s1 + $0x184] ss:$16 sps:$4 sm:$0xff]   ;;  %v7719_v59 = vld [vmem:[%s11643_s1 + $0x180] ss:$16 sps:$4 sm:$0xff]   ;;  %v7720_v61 = vld [vmem:[%s11643_s1 + $0x188] ss:$16 sps:$4 sm:$0xff]  }
  0x20   : > { %5218 = vmatprep.subr.bf16.mxu0 %v7673_v20  ;;  %5751 = vmatprep.subr.bf16.mxu1 %v7675_v21  ;;  %v1085_v54 = vrot.slane %v9152_v52, %v9143_v49  ;;  %v7721_v62 = vld [vmem:[%s11643_s1 + $0x1a4] ss:$16 sps:$4 sm:$0xff]   ;;  %v7723_v63 = vld [vmem:[%s11643_s1 + $0x1ac] ss:$16 sps:$4 sm:$0xff]   ;;  %v7725_v0 = vld [vmem:[%s11643_s1 + $0x1a0] ss:$16 sps:$4 sm:$0xff]  }
  0x21   : > { %v7726_v1 = vld [vmem:[%s11643_s1 + $0x1a8] ss:$16 sps:$4 sm:$0xff]   ;;  %v7727_v2 = vld [vmem:[%s11643_s1 + $0x1c4] ss:$16 sps:$4 sm:$0xff]   ;;  %v7729_v3 = vld [vmem:[%s11643_s1 + $0x1cc] ss:$16 sps:$4 sm:$0xff]  }
  0x22   : > { %v1093_v58 = vcombine.high %v1085_v54, %v1085_v54  ;;  %v7731_v4 = vld [vmem:[%s11643_s1 + $0x1c0] ss:$16 sps:$4 sm:$0xff]   ;;  %v7732_v5 = vld [vmem:[%s11643_s1 + $0x1c8] ss:$16 sps:$4 sm:$0xff]   ;;  %v7733_v6 = vld [vmem:[%s11643_s1 + $0x1e4] ss:$16 sps:$4 sm:$0xff]   ;;  %v9221_v13 = vrot.slane %v1085_v54, %v9143_v49 }
  0x23   : > { %5219 = vmatpush1.bf16.msra.mxu0 %v7677_v22  ;;  %5752 = vmatpush1.bf16.msra.mxu1 %v7678_v23  ;;  %v7735_v7 = vld [vmem:[%s11643_s1 + $0x1ec] ss:$16 sps:$4 sm:$0xff]   ;;  %v7737_v8 = vld [vmem:[%s11643_s1 + $0x1e0] ss:$16 sps:$4 sm:$0xff]   ;;  %v7738_v9 = vld [vmem:[%s11643_s1 + $0x1e8] ss:$16 sps:$4 sm:$0xff]  }
  0x24   : > { %5220 = vmatprep.subr.bf16.mxu0 %v7679_v24  ;;  %5753 = vmatprep.subr.bf16.mxu1 %v7681_v25  ;;  %v1115_v60 = vrot.slane %v1093_v58, %v9143_v49  ;;  %v7741_v10 = vld [vmem:[%s11643_s1 + $0x204] ss:$16 sps:$4 sm:$0xff]   ;;  %v7744_v11 = vld [vmem:[%s11643_s1 + $0x20c] ss:$16 sps:$4 sm:$0xff]   ;;  %v7739_v12 = vld [vmem:[%s11643_s1 + $0x200] ss:$16 sps:$4 sm:$0xff]  }
  0x25   : > { %v7742_v14 = vld [vmem:[%s11643_s1 + $0x208] ss:$16 sps:$4 sm:$0xff]   ;;  %v7747_v15 = vld [vmem:[%s11643_s1 + $0x224] ss:$16 sps:$4 sm:$0xff]   ;;  %v7750_v16 = vld [vmem:[%s11643_s1 + $0x22c] ss:$16 sps:$4 sm:$0xff]  }
  0x26   : > { %5240 = vmatprep.mubr.bf16.mxu0 %v1115_v60  ;;  %5773 = vmatprep.mubr.bf16.mxu1 %v1115_v60  ;;  %v1125_v17 = vcombine.high %v1115_v60, %v1115_v60  ;;  %v7745_v18 = vld [vmem:[%s11643_s1 + $0x220] ss:$16 sps:$4 sm:$0xff]   ;;  %v7748_v19 = vld [vmem:[%s11643_s1 + $0x228] ss:$16 sps:$4 sm:$0xff]   ;;  %v7753_v20 = vld [vmem:[%s11643_s1 + $0x244] ss:$16 sps:$4 sm:$0xff]  }
  0x27   : > { %5221 = vmatpush1.bf16.msra.mxu0 %v7683_v26  ;;  %5754 = vmatpush1.bf16.msra.mxu1 %v7684_v27  ;;  %v7756_v21 = vld [vmem:[%s11643_s1 + $0x24c] ss:$16 sps:$4 sm:$0xff]   ;;  %v7751_v22 = vld [vmem:[%s11643_s1 + $0x240] ss:$16 sps:$4 sm:$0xff]   ;;  %v7754_v23 = vld [vmem:[%s11643_s1 + $0x248] ss:$16 sps:$4 sm:$0xff]  }
  0x28   : > { %5222 = vmatprep.subr.bf16.mxu0 %v7685_v28  ;;  %5755 = vmatprep.subr.bf16.mxu1 %v7687_v29  ;;  %v7759_v24 = vld [vmem:[%s11643_s1 + $0x264] ss:$16 sps:$4 sm:$0xff]   ;;  %v7762_v25 = vld [vmem:[%s11643_s1 + $0x26c] ss:$16 sps:$4 sm:$0xff]   ;;  %v7757_v26 = vld [vmem:[%s11643_s1 + $0x260] ss:$16 sps:$4 sm:$0xff]  }
  0x29   : > { %v7760_v27 = vld [vmem:[%s11643_s1 + $0x268] ss:$16 sps:$4 sm:$0xff]   ;;  %v7765_v28 = vld [vmem:[%s11643_s1 + $0x284] ss:$16 sps:$4 sm:$0xff]   ;;  %v7768_v29 = vld [vmem:[%s11643_s1 + $0x28c] ss:$16 sps:$4 sm:$0xff]  }
  0x2a   : > { %v7777_v36 = vld [vmem:[%s11643_s1 + $0x2c4] ss:$16 sps:$4 sm:$0xff]   ;;  %v7780_v37 = vld [vmem:[%s11643_s1 + $0x2cc] ss:$16 sps:$4 sm:$0xff]   ;;  %v7775_v38 = vld [vmem:[%s11643_s1 + $0x2c0] ss:$16 sps:$4 sm:$0xff]  }
  0x2b   : > { %5223 = vmatpush1.bf16.msra.mxu0 %v7689_v30  ;;  %5756 = vmatpush1.bf16.msra.mxu1 %v7690_v31  ;;  %v7763_v30 = vld [vmem:[%s11643_s1 + $0x280] ss:$16 sps:$4 sm:$0xff]   ;;  %v7766_v31 = vld [vmem:[%s11643_s1 + $0x288] ss:$16 sps:$4 sm:$0xff]   ;;  %v7810_v60 = vld [vmem:[%s11643_s1 + $0x36c] ss:$16 sps:$4 sm:$0xff]  }
  0x2c   : > { %5224 = vmatprep.subr.bf16.mxu0 %v7691_v32  ;;  %5757 = vmatprep.subr.bf16.mxu1 %v7693_v33  ;;  %v7771_v32 = vld [vmem:[%s11643_s1 + $0x2a4] ss:$16 sps:$4 sm:$0xff]   ;;  %v7774_v33 = vld [vmem:[%s11643_s1 + $0x2ac] ss:$16 sps:$4 sm:$0xff]   ;;  %v7781_v42 = vld [vmem:[%s11643_s1 + $0x2e0] ss:$16 sps:$4 sm:$0xff]  }
  0x2d   : > { %v7796_v54 = vld [vmem:[%s11643_s1 + $0x328] ss:$16 sps:$4 sm:$0xff]   ;;  %s7454_s23 = sshll.u32 %s8974_s22, 4  ;;  %s6564_s7 = scalar_lea.sflag [#allocation3], %s213_s14 }
  0x2e   : > { %v7802_v58 = vld [vmem:[%s11643_s1 + $0x348] ss:$16 sps:$4 sm:$0xff]   ;;  %s11600_s26 = scalar_lea.hbm %s11647_s5, %s7454_s23  ;;  %s8922_s22 = smov [#allocation2]  }
  0x2f   : > { %5225 = vmatpush1.bf16.msra.mxu0 %v7695_v34  ;;  %5758 = vmatpush1.bf16.msra.mxu1 %v7696_v35  ;;  %v7769_v34 = vld [vmem:[%s11643_s1 + $0x2a0] ss:$16 sps:$4 sm:$0xff]   ;;  %v7772_v35 = vld [vmem:[%s11643_s1 + $0x2a8] ss:$16 sps:$4 sm:$0xff]   ;;  %s8860_s9 = sshll.u32 %s8922_s22, 4  ;;  %s8861_s9 = int_to_ptr.vmem [resolvable:$false] %s8860_s9 }
  0x30   : > { %5226 = vmatprep.subr.bf16.mxu0 %v7697_v39  ;;  %5759 = vmatprep.subr.bf16.mxu1 %v7699_v40  ;;  %v7778_v39 = vld [vmem:[%s11643_s1 + $0x2c8] ss:$16 sps:$4 sm:$0xff]   ;;  %v7783_v40 = vld [vmem:[%s11643_s1 + $0x2e4] ss:$16 sps:$4 sm:$0xff]   ;;  %s8862_s10 = scalar_lea.vmem %s8861_s9, 32 }
  0x33   : > { %5227 = vmatpush1.bf16.msra.mxu0 %v7701_v41  ;;  %5760 = vmatpush1.bf16.msra.mxu1 %v7702_v44  ;;  %v7786_v41 = vld [vmem:[%s11643_s1 + $0x2ec] ss:$16 sps:$4 sm:$0xff]   ;;  %v7784_v44 = vld [vmem:[%s11643_s1 + $0x2e8] ss:$16 sps:$4 sm:$0xff]  }
  0x34   : > { %5228 = vmatprep.subr.bf16.mxu0 %v7703_v45  ;;  %5761 = vmatprep.subr.bf16.mxu1 %v7705_v46  ;;  %v7789_v45 = vld [vmem:[%s11643_s1 + $0x304] ss:$16 sps:$4 sm:$0xff]   ;;  %v7792_v46 = vld [vmem:[%s11643_s1 + $0x30c] ss:$16 sps:$4 sm:$0xff]  }
  0x37   : > { %5229 = vmatpush1.bf16.msra.mxu0 %v7707_v47  ;;  %5762 = vmatpush1.bf16.msra.mxu1 %v7708_v48  ;;  %v7787_v47 = vld [vmem:[%s11643_s1 + $0x300] ss:$16 sps:$4 sm:$0xff]   ;;  %v7790_v48 = vld [vmem:[%s11643_s1 + $0x308] ss:$16 sps:$4 sm:$0xff]  }
  0x38   : > { %5230 = vmatprep.subr.bf16.mxu0 %v7709_v50  ;;  %5763 = vmatprep.subr.bf16.mxu1 %v7711_v51  ;;  %v7795_v50 = vld [vmem:[%s11643_s1 + $0x324] ss:$16 sps:$4 sm:$0xff]   ;;  %v7798_v51 = vld [vmem:[%s11643_s1 + $0x32c] ss:$16 sps:$4 sm:$0xff]  }
  0x3b   : > { %5231 = vmatpush1.bf16.msra.mxu0 %v7713_v53  ;;  %5764 = vmatpush1.bf16.msra.mxu1 %v7714_v55  ;;  %v7793_v53 = vld [vmem:[%s11643_s1 + $0x320] ss:$16 sps:$4 sm:$0xff]   ;;  %v7801_v55 = vld [vmem:[%s11643_s1 + $0x344] ss:$16 sps:$4 sm:$0xff]  }
  0x3c   : > { %5232 = vmatprep.subr.bf16.mxu0 %v7715_v56  ;;  %5765 = vmatprep.subr.bf16.mxu1 %v7717_v57  ;;  %v7804_v56 = vld [vmem:[%s11643_s1 + $0x34c] ss:$16 sps:$4 sm:$0xff]   ;;  %v7799_v57 = vld [vmem:[%s11643_s1 + $0x340] ss:$16 sps:$4 sm:$0xff]  }
  0x3f   : > { %5233 = vmatpush1.bf16.msra.mxu0 %v7719_v59  ;;  %5766 = vmatpush1.bf16.msra.mxu1 %v7720_v61  ;;  %v7807_v59 = vld [vmem:[%s11643_s1 + $0x364] ss:$16 sps:$4 sm:$0xff]   ;;  %v7805_v61 = vld [vmem:[%s11643_s1 + $0x360] ss:$16 sps:$4 sm:$0xff]  }
  0x40   : > { %5234 = vmatprep.subr.bf16.mxu0 %v7721_v62  ;;  %5767 = vmatprep.subr.bf16.mxu1 %v7723_v63  ;;  %v7808_v62 = vld [vmem:[%s11643_s1 + $0x368] ss:$16 sps:$4 sm:$0xff]   ;;  %v7813_v63 = vld [vmem:[%s11643_s1 + $0x384] ss:$16 sps:$4 sm:$0xff]  }
  0x43   : > { %5235 = vmatpush1.bf16.msra.mxu0 %v7725_v0  ;;  %5768 = vmatpush1.bf16.msra.mxu1 %v7726_v1  ;;  %v7816_v0 = vld [vmem:[%s11643_s1 + $0x38c] ss:$16 sps:$4 sm:$0xff]   ;;  %v7811_v1 = vld [vmem:[%s11643_s1 + $0x380] ss:$16 sps:$4 sm:$0xff]  }
  0x44   : > { %5236 = vmatprep.subr.bf16.mxu0 %v7727_v2  ;;  %5769 = vmatprep.subr.bf16.mxu1 %v7729_v3  ;;  %v7814_v2 = vld [vmem:[%s11643_s1 + $0x388] ss:$16 sps:$4 sm:$0xff]   ;;  %v7819_v3 = vld [vmem:[%s11643_s1 + $0x3a4] ss:$16 sps:$4 sm:$0xff]  }
  0x47   : > { %5237 = vmatpush1.bf16.msra.mxu0 %v7731_v4  ;;  %5770 = vmatpush1.bf16.msra.mxu1 %v7732_v5  ;;  %v7822_v4 = vld [vmem:[%s11643_s1 + $0x3ac] ss:$16 sps:$4 sm:$0xff]   ;;  %v7817_v5 = vld [vmem:[%s11643_s1 + $0x3a0] ss:$16 sps:$4 sm:$0xff]  }
  0x48   : > { %5238 = vmatprep.subr.bf16.mxu0 %v7733_v6  ;;  %5771 = vmatprep.subr.bf16.mxu1 %v7735_v7  ;;  %v7820_v6 = vld [vmem:[%s11643_s1 + $0x3a8] ss:$16 sps:$4 sm:$0xff]   ;;  %v7825_v7 = vld [vmem:[%s11643_s1 + $0x3c4] ss:$16 sps:$4 sm:$0xff]  }
  0x4b   : > { %5239 = vmatpush1.bf16.msra.mxu0 %v7737_v8  ;;  %5772 = vmatpush1.bf16.msra.mxu1 %v7738_v9  ;;  %v7828_v8 = vld [vmem:[%s11643_s1 + $0x3cc] ss:$16 sps:$4 sm:$0xff]   ;;  %v1078_v9 = vcombine.high %v9152_v52, %v9152_v52 }
  0x4c   : > { %5249 = vmatprep.subr.bf16.mxu0 %v7741_v10  ;;  %5782 = vmatprep.subr.bf16.mxu1 %v7744_v11  ;;  %v7823_v10 = vld [vmem:[%s11643_s1 + $0x3c0] ss:$16 sps:$4 sm:$0xff]   ;;  %v7826_v11 = vld [vmem:[%s11643_s1 + $0x3c8] ss:$16 sps:$4 sm:$0xff]   ;;  %v7834_v52 = vld [vmem:[%s11643_s1 + $0x3ec] ss:$16 sps:$4 sm:$0xff]  }
  0x4e   : > { %5241 = vmatmul.mubr.bf16.vlgmr.msra.gmra.mrb[0].mxu0 %v9221_v13  ;;  %5774 = vmatmul.mubr.bf16.vlgmr.msra.gmra.mrb[0].mxu1 %v9221_v13 }
  0x4f   : > { %5250 = vmatpush1.bf16.msra.mxu0 %v7739_v12  ;;  %5783 = vmatpush1.bf16.msra.mxu1 %v7742_v14  ;;  %v7831_v12 = vld [vmem:[%s11643_s1 + $0x3e4] ss:$16 sps:$4 sm:$0xff]   ;;  %v9405_v14 = vrot.slane %v1078_v9, %v9143_v49  ;;  %v7910_v9 = vld [vmem:[%s11643_s1 + $0x588] ss:$16 sps:$4 sm:$0xff]  }
  0x50   : > { %5251 = vmatprep.subr.bf16.mxu0 %v7747_v15  ;;  %5784 = vmatprep.subr.bf16.mxu1 %v7750_v16  ;;  %v7829_v15 = vld [vmem:[%s11643_s1 + $0x3e0] ss:$16 sps:$4 sm:$0xff]   ;;  %v7832_v16 = vld [vmem:[%s11643_s1 + $0x3e8] ss:$16 sps:$4 sm:$0xff]  }
  0x51   : > { %5281 = vmatprep.mubr.bf16.mxu0 %v1125_v17  ;;  %5814 = vmatprep.mubr.bf16.mxu1 %v1125_v17  ;;  %v7837_v17 = vld [vmem:[%s11643_s1 + $0x404] ss:$16 sps:$4 sm:$0xff]  }
  0x53   : > { %5252 = vmatpush1.bf16.msra.mxu0 %v7745_v18  ;;  %5785 = vmatpush1.bf16.msra.mxu1 %v7748_v19  ;;  %v7840_v18 = vld [vmem:[%s11643_s1 + $0x40c] ss:$16 sps:$4 sm:$0xff]   ;;  %v1094_v19 = vcombine.high %v9405_v14, %v9405_v14 }
  0x54   : > { %5253 = vmatprep.subr.bf16.mxu0 %v7753_v20  ;;  %5786 = vmatprep.subr.bf16.mxu1 %v7756_v21  ;;  %v7835_v20 = vld [vmem:[%s11643_s1 + $0x400] ss:$16 sps:$4 sm:$0xff]   ;;  %v1123_v21 = vcombine.high %v9221_v13, %v9221_v13 }
  0x55   : > { %v7841_v13 = vld [vmem:[%s11643_s1 + $0x420] ss:$16 sps:$4 sm:$0xff]  }
  0x57   : > { %5254 = vmatpush1.bf16.msra.mxu0 %v7751_v22  ;;  %5787 = vmatpush1.bf16.msra.mxu1 %v7754_v23  ;;  %v7838_v22 = vld [vmem:[%s11643_s1 + $0x408] ss:$16 sps:$4 sm:$0xff]   ;;  %v7843_v23 = vld [vmem:[%s11643_s1 + $0x424] ss:$16 sps:$4 sm:$0xff]  }
  0x58   : > { %5255 = vmatprep.subr.bf16.mxu0 %v7759_v24  ;;  %5788 = vmatprep.subr.bf16.mxu1 %v7762_v25  ;;  %v7846_v24 = vld [vmem:[%s11643_s1 + $0x42c] ss:$16 sps:$4 sm:$0xff]   ;;  %v9436_v25 = vrot.slane %v1094_v19, %v9143_v49  ;;  %v7927_v19 = vld [vmem:[%s11643_s1 + $0x5e4] ss:$16 sps:$4 sm:$0xff]  }
  0x5b   : > { %5256 = vmatpush1.bf16.msra.mxu0 %v7757_v26  ;;  %5789 = vmatpush1.bf16.msra.mxu1 %v7760_v27  ;;  %v7844_v26 = vld [vmem:[%s11643_s1 + $0x428] ss:$16 sps:$4 sm:$0xff]   ;;  %v7849_v27 = vld [vmem:[%s11643_s1 + $0x444] ss:$16 sps:$4 sm:$0xff]  }
  0x5c   : > { %5257 = vmatprep.subr.bf16.mxu0 %v7765_v28  ;;  %5790 = vmatprep.subr.bf16.mxu1 %v7768_v29  ;;  %v7852_v28 = vld [vmem:[%s11643_s1 + $0x44c] ss:$16 sps:$4 sm:$0xff]   ;;  %v7847_v29 = vld [vmem:[%s11643_s1 + $0x440] ss:$16 sps:$4 sm:$0xff]  }
  0x5f   : > { %5258 = vmatpush1.bf16.msra.mxu0 %v7763_v30  ;;  %5791 = vmatpush1.bf16.msra.mxu1 %v7766_v31  ;;  %v7850_v30 = vld [vmem:[%s11643_s1 + $0x448] ss:$16 sps:$4 sm:$0xff]   ;;  %v7855_v31 = vld [vmem:[%s11643_s1 + $0x464] ss:$16 sps:$4 sm:$0xff]  }
  0x60   : > { %5259 = vmatprep.subr.bf16.mxu0 %v7771_v32  ;;  %5792 = vmatprep.subr.bf16.mxu1 %v7774_v33  ;;  %v7858_v32 = vld [vmem:[%s11643_s1 + $0x46c] ss:$16 sps:$4 sm:$0xff]   ;;  %v7853_v33 = vld [vmem:[%s11643_s1 + $0x460] ss:$16 sps:$4 sm:$0xff]  }
  0x63   : > { %5260 = vmatpush1.bf16.msra.mxu0 %v7769_v34  ;;  %5793 = vmatpush1.bf16.msra.mxu1 %v7772_v35  ;;  %v7856_v34 = vld [vmem:[%s11643_s1 + $0x468] ss:$16 sps:$4 sm:$0xff]   ;;  %v7861_v35 = vld [vmem:[%s11643_s1 + $0x484] ss:$16 sps:$4 sm:$0xff]  }
  0x64   : > { %5261 = vmatprep.subr.bf16.mxu0 %v7777_v36  ;;  %5794 = vmatprep.subr.bf16.mxu1 %v7780_v37  ;;  %v7864_v36 = vld [vmem:[%s11643_s1 + $0x48c] ss:$16 sps:$4 sm:$0xff]   ;;  %v7859_v37 = vld [vmem:[%s11643_s1 + $0x480] ss:$16 sps:$4 sm:$0xff]  }
  0x67   : > { %5262 = vmatpush1.bf16.msra.mxu0 %v7775_v38  ;;  %5795 = vmatpush1.bf16.msra.mxu1 %v7778_v39  ;;  %v7862_v38 = vld [vmem:[%s11643_s1 + $0x488] ss:$16 sps:$4 sm:$0xff]   ;;  %v7867_v39 = vld [vmem:[%s11643_s1 + $0x4a4] ss:$16 sps:$4 sm:$0xff]  }
  0x68   : > { %5263 = vmatprep.subr.bf16.mxu0 %v7783_v40  ;;  %5796 = vmatprep.subr.bf16.mxu1 %v7786_v41  ;;  %v7870_v40 = vld [vmem:[%s11643_s1 + $0x4ac] ss:$16 sps:$4 sm:$0xff]   ;;  %v7865_v41 = vld [vmem:[%s11643_s1 + $0x4a0] ss:$16 sps:$4 sm:$0xff]  }
  0x6b   : > { %5264 = vmatpush1.bf16.msra.mxu0 %v7781_v42  ;;  %5797 = vmatpush1.bf16.msra.mxu1 %v7784_v44  ;;  %v7868_v42 = vld [vmem:[%s11643_s1 + $0x4a8] ss:$16 sps:$4 sm:$0xff]   ;;  %v7873_v44 = vld [vmem:[%s11643_s1 + $0x4c4] ss:$16 sps:$4 sm:$0xff]  }
  0x6c   : > { %5265 = vmatprep.subr.bf16.mxu0 %v7789_v45  ;;  %5798 = vmatprep.subr.bf16.mxu1 %v7792_v46  ;;  %v7876_v45 = vld [vmem:[%s11643_s1 + $0x4cc] ss:$16 sps:$4 sm:$0xff]   ;;  %v7871_v46 = vld [vmem:[%s11643_s1 + $0x4c0] ss:$16 sps:$4 sm:$0xff]  }
  0x6f   : > { %5266 = vmatpush1.bf16.msra.mxu0 %v7787_v47  ;;  %5799 = vmatpush1.bf16.msra.mxu1 %v7790_v48  ;;  %v7874_v47 = vld [vmem:[%s11643_s1 + $0x4c8] ss:$16 sps:$4 sm:$0xff]   ;;  %v7879_v48 = vld [vmem:[%s11643_s1 + $0x4e4] ss:$16 sps:$4 sm:$0xff]  }
  0x70   : > { %5267 = vmatprep.subr.bf16.mxu0 %v7795_v50  ;;  %5800 = vmatprep.subr.bf16.mxu1 %v7798_v51  ;;  %v7882_v50 = vld [vmem:[%s11643_s1 + $0x4ec] ss:$16 sps:$4 sm:$0xff]   ;;  %v7877_v51 = vld [vmem:[%s11643_s1 + $0x4e0] ss:$16 sps:$4 sm:$0xff]  }
  0x73   : > { %5268 = vmatpush1.bf16.msra.mxu0 %v7793_v53  ;;  %5801 = vmatpush1.bf16.msra.mxu1 %v7796_v54  ;;  %v7880_v53 = vld [vmem:[%s11643_s1 + $0x4e8] ss:$16 sps:$4 sm:$0xff]   ;;  %v7885_v54 = vld [vmem:[%s11643_s1 + $0x504] ss:$16 sps:$4 sm:$0xff]  }
  0x74   : > { %5269 = vmatprep.subr.bf16.mxu0 %v7801_v55  ;;  %5802 = vmatprep.subr.bf16.mxu1 %v7804_v56  ;;  %v7888_v55 = vld [vmem:[%s11643_s1 + $0x50c] ss:$16 sps:$4 sm:$0xff]   ;;  %v7883_v56 = vld [vmem:[%s11643_s1 + $0x500] ss:$16 sps:$4 sm:$0xff]  }
  0x77   : > { %5270 = vmatpush1.bf16.msra.mxu0 %v7799_v57  ;;  %5803 = vmatpush1.bf16.msra.mxu1 %v7802_v58  ;;  %v7886_v57 = vld [vmem:[%s11643_s1 + $0x508] ss:$16 sps:$4 sm:$0xff]   ;;  %v7891_v58 = vld [vmem:[%s11643_s1 + $0x524] ss:$16 sps:$4 sm:$0xff]  }
  0x78   : > { %5271 = vmatprep.subr.bf16.mxu0 %v7807_v59  ;;  %5804 = vmatprep.subr.bf16.mxu1 %v7810_v60  ;;  %v7894_v59 = vld [vmem:[%s11643_s1 + $0x52c] ss:$16 sps:$4 sm:$0xff]   ;;  %v7889_v60 = vld [vmem:[%s11643_s1 + $0x520] ss:$16 sps:$4 sm:$0xff]  }
  0x7b   : > { %5272 = vmatpush1.bf16.msra.mxu0 %v7805_v61  ;;  %5805 = vmatpush1.bf16.msra.mxu1 %v7808_v62  ;;  %v7892_v61 = vld [vmem:[%s11643_s1 + $0x528] ss:$16 sps:$4 sm:$0xff]   ;;  %v7897_v62 = vld [vmem:[%s11643_s1 + $0x544] ss:$16 sps:$4 sm:$0xff]  }
  0x7c   : > { %5273 = vmatprep.subr.bf16.mxu0 %v7813_v63  ;;  %5806 = vmatprep.subr.bf16.mxu1 %v7816_v0  ;;  %v7900_v63 = vld [vmem:[%s11643_s1 + $0x54c] ss:$16 sps:$4 sm:$0xff]   ;;  %v7895_v0 = vld [vmem:[%s11643_s1 + $0x540] ss:$16 sps:$4 sm:$0xff]  }
  0x7f   : > { %5274 = vmatpush1.bf16.msra.mxu0 %v7811_v1  ;;  %5807 = vmatpush1.bf16.msra.mxu1 %v7814_v2  ;;  %v7898_v1 = vld [vmem:[%s11643_s1 + $0x548] ss:$16 sps:$4 sm:$0xff]   ;;  %v7903_v2 = vld [vmem:[%s11643_s1 + $0x564] ss:$16 sps:$4 sm:$0xff]  }
  0x80   : > { %5275 = vmatprep.subr.bf16.mxu0 %v7819_v3  ;;  %5808 = vmatprep.subr.bf16.mxu1 %v7822_v4  ;;  %v7906_v3 = vld [vmem:[%s11643_s1 + $0x56c] ss:$16 sps:$4 sm:$0xff]   ;;  %v7901_v4 = vld [vmem:[%s11643_s1 + $0x560] ss:$16 sps:$4 sm:$0xff]  }
  0x83   : > { %5276 = vmatpush1.bf16.msra.mxu0 %v7817_v5  ;;  %5809 = vmatpush1.bf16.msra.mxu1 %v7820_v6  ;;  %v7904_v5 = vld [vmem:[%s11643_s1 + $0x568] ss:$16 sps:$4 sm:$0xff]   ;;  %v7909_v6 = vld [vmem:[%s11643_s1 + $0x584] ss:$16 sps:$4 sm:$0xff]  }
  0x84   : > { %5277 = vmatprep.subr.bf16.mxu0 %v7825_v7  ;;  %5810 = vmatprep.subr.bf16.mxu1 %v7828_v8  ;;  %v7912_v7 = vld [vmem:[%s11643_s1 + $0x58c] ss:$16 sps:$4 sm:$0xff]   ;;  %v7907_v8 = vld [vmem:[%s11643_s1 + $0x580] ss:$16 sps:$4 sm:$0xff]  }
  0x87   : > { %5278 = vmatpush1.bf16.msra.mxu0 %v7823_v10  ;;  %5811 = vmatpush1.bf16.msra.mxu1 %v7826_v11  ;;  %v7915_v10 = vld [vmem:[%s11643_s1 + $0x5a4] ss:$16 sps:$4 sm:$0xff]   ;;  %v7918_v11 = vld [vmem:[%s11643_s1 + $0x5ac] ss:$16 sps:$4 sm:$0xff]  }
  0x88   : > { %5279 = vmatprep.subr.bf16.mxu0 %v7831_v12  ;;  %5812 = vmatprep.subr.bf16.mxu1 %v7834_v52  ;;  %v7913_v12 = vld [vmem:[%s11643_s1 + $0x5a0] ss:$16 sps:$4 sm:$0xff]   ;;  %v7916_v52 = vld [vmem:[%s11643_s1 + $0x5a8] ss:$16 sps:$4 sm:$0xff]  }
  0x8b   : > { %5280 = vmatpush1.bf16.msra.mxu0 %v7829_v15  ;;  %5813 = vmatpush1.bf16.msra.mxu1 %v7832_v16  ;;  %v7921_v15 = vld [vmem:[%s11643_s1 + $0x5c4] ss:$16 sps:$4 sm:$0xff]   ;;  %v7924_v16 = vld [vmem:[%s11643_s1 + $0x5cc] ss:$16 sps:$4 sm:$0xff]  }
  0x8c   : > { %5290 = vmatprep.subr.bf16.mxu0 %v7837_v17  ;;  %5823 = vmatprep.subr.bf16.mxu1 %v7840_v18  ;;  %v7919_v17 = vld [vmem:[%s11643_s1 + $0x5c0] ss:$16 sps:$4 sm:$0xff]   ;;  %v7922_v18 = vld [vmem:[%s11643_s1 + $0x5c8] ss:$16 sps:$4 sm:$0xff]  }
  0x8e   : > { %5282 = vmatmul.mubr.bf16.vlgmr.msra.gmra.mrb[0].mxu0 %v1123_v21  ;;  %5815 = vmatmul.mubr.bf16.vlgmr.msra.gmra.mrb[0].mxu1 %v1123_v21  ;;  %v7925_v21 = vld [vmem:[%s11643_s1 + $0x5e0] ss:$16 sps:$4 sm:$0xff]  }
  0x8f   : > { %5291 = vmatpush1.bf16.msra.mxu0 %v7835_v20  ;;  %5824 = vmatpush1.bf16.msra.mxu1 %v7838_v22  ;;  %v7930_v20 = vld [vmem:[%s11643_s1 + $0x5ec] ss:$16 sps:$4 sm:$0xff]   ;;  %v7928_v22 = vld [vmem:[%s11643_s1 + $0x5e8] ss:$16 sps:$4 sm:$0xff]  }
  0x90   : > { %5292 = vmatprep.subr.bf16.mxu0 %v7843_v23  ;;  %5825 = vmatprep.subr.bf16.mxu1 %v7846_v24  ;;  %v7934_v23 = vld [vmem:[%s11643_s1 + $0x604] ss:$16 sps:$4 sm:$0xff]   ;;  %v7937_v24 = vld [vmem:[%s11643_s1 + $0x60c] ss:$16 sps:$4 sm:$0xff]  }
  0x91   : > { %5322 = vmatprep.mubr.bf16.mxu0 %v9436_v25  ;;  %5855 = vmatprep.mubr.bf16.mxu1 %v9436_v25 }
  0x93   : > { %5293 = vmatpush1.bf16.msra.mxu0 %v7841_v13  ;;  %5826 = vmatpush1.bf16.msra.mxu1 %v7844_v26  ;;  %v7932_v13 = vld [vmem:[%s11643_s1 + $0x600] ss:$16 sps:$4 sm:$0xff]   ;;  %v9625_v26 = vrot.slane %v9405_v14, %v9143_v49  ;;  %v1126_v14 = vcombine.high %v9436_v25, %v9436_v25  ;;  %v7946_v25 = vld [vmem:[%s11643_s1 + $0x644] ss:$16 sps:$4 sm:$0xff]  }
  0x94   : > { %5294 = vmatprep.subr.bf16.mxu0 %v7849_v27  ;;  %5827 = vmatprep.subr.bf16.mxu1 %v7852_v28  ;;  %v7935_v27 = vld [vmem:[%s11643_s1 + $0x608] ss:$16 sps:$4 sm:$0xff]   ;;  %v7940_v28 = vld [vmem:[%s11643_s1 + $0x624] ss:$16 sps:$4 sm:$0xff]  }
  0x97   : > { %5295 = vmatpush1.bf16.msra.mxu0 %v7847_v29  ;;  %5828 = vmatpush1.bf16.msra.mxu1 %v7850_v30  ;;  %v7943_v29 = vld [vmem:[%s11643_s1 + $0x62c] ss:$16 sps:$4 sm:$0xff]   ;;  %v7938_v30 = vld [vmem:[%s11643_s1 + $0x620] ss:$16 sps:$4 sm:$0xff]  }
  0x98   : > { %5296 = vmatprep.subr.bf16.mxu0 %v7855_v31  ;;  %5829 = vmatprep.subr.bf16.mxu1 %v7858_v32  ;;  %v7941_v31 = vld [vmem:[%s11643_s1 + $0x628] ss:$16 sps:$4 sm:$0xff]   ;;  %v7949_v32 = vld [vmem:[%s11643_s1 + $0x64c] ss:$16 sps:$4 sm:$0xff]  }
  0x9b   : > { %5297 = vmatpush1.bf16.msra.mxu0 %v7853_v33  ;;  %5830 = vmatpush1.bf16.msra.mxu1 %v7856_v34  ;;  %v7944_v33 = vld [vmem:[%s11643_s1 + $0x640] ss:$16 sps:$4 sm:$0xff]   ;;  %v7947_v34 = vld [vmem:[%s11643_s1 + $0x648] ss:$16 sps:$4 sm:$0xff]  }
  0x9c   : > { %5298 = vmatprep.subr.bf16.mxu0 %v7861_v35  ;;  %5831 = vmatprep.subr.bf16.mxu1 %v7864_v36  ;;  %v7952_v35 = vld [vmem:[%s11643_s1 + $0x664] ss:$16 sps:$4 sm:$0xff]   ;;  %v7955_v36 = vld [vmem:[%s11643_s1 + $0x66c] ss:$16 sps:$4 sm:$0xff]  }
  0x9f   : > { %5299 = vmatpush1.bf16.msra.mxu0 %v7859_v37  ;;  %5832 = vmatpush1.bf16.msra.mxu1 %v7862_v38  ;;  %v7950_v37 = vld [vmem:[%s11643_s1 + $0x660] ss:$16 sps:$4 sm:$0xff]   ;;  %v7953_v38 = vld [vmem:[%s11643_s1 + $0x668] ss:$16 sps:$4 sm:$0xff]  }
  0xa0   : > { %5300 = vmatprep.subr.bf16.mxu0 %v7867_v39  ;;  %5833 = vmatprep.subr.bf16.mxu1 %v7870_v40  ;;  %v7958_v39 = vld [vmem:[%s11643_s1 + $0x684] ss:$16 sps:$4 sm:$0xff]   ;;  %v7961_v40 = vld [vmem:[%s11643_s1 + $0x68c] ss:$16 sps:$4 sm:$0xff]  }
  0xa3   : > { %5301 = vmatpush1.bf16.msra.mxu0 %v7865_v41  ;;  %5834 = vmatpush1.bf16.msra.mxu1 %v7868_v42  ;;  %v7956_v41 = vld [vmem:[%s11643_s1 + $0x680] ss:$16 sps:$4 sm:$0xff]   ;;  %v7959_v42 = vld [vmem:[%s11643_s1 + $0x688] ss:$16 sps:$4 sm:$0xff]  }
  0xa4   : > { %5302 = vmatprep.subr.bf16.mxu0 %v7873_v44  ;;  %5835 = vmatprep.subr.bf16.mxu1 %v7876_v45  ;;  %v7964_v44 = vld [vmem:[%s11643_s1 + $0x6a4] ss:$16 sps:$4 sm:$0xff]   ;;  %v7967_v45 = vld [vmem:[%s11643_s1 + $0x6ac] ss:$16 sps:$4 sm:$0xff]  }
  0xa7   : > { %5303 = vmatpush1.bf16.msra.mxu0 %v7871_v46  ;;  %5836 = vmatpush1.bf16.msra.mxu1 %v7874_v47  ;;  %v7962_v46 = vld [vmem:[%s11643_s1 + $0x6a0] ss:$16 sps:$4 sm:$0xff]   ;;  %v7965_v47 = vld [vmem:[%s11643_s1 + $0x6a8] ss:$16 sps:$4 sm:$0xff]  }
  0xa8   : > { %5304 = vmatprep.subr.bf16.mxu0 %v7879_v48  ;;  %5837 = vmatprep.subr.bf16.mxu1 %v7882_v50  ;;  %v7970_v48 = vld [vmem:[%s11643_s1 + $0x6c4] ss:$16 sps:$4 sm:$0xff]   ;;  %v7973_v50 = vld [vmem:[%s11643_s1 + $0x6cc] ss:$16 sps:$4 sm:$0xff]  }
  0xab   : > { %5305 = vmatpush1.bf16.msra.mxu0 %v7877_v51  ;;  %5838 = vmatpush1.bf16.msra.mxu1 %v7880_v53  ;;  %v7968_v51 = vld [vmem:[%s11643_s1 + $0x6c0] ss:$16 sps:$4 sm:$0xff]   ;;  %v7971_v53 = vld [vmem:[%s11643_s1 + $0x6c8] ss:$16 sps:$4 sm:$0xff]  }
  0xac   : > { %5306 = vmatprep.subr.bf16.mxu0 %v7885_v54  ;;  %5839 = vmatprep.subr.bf16.mxu1 %v7888_v55  ;;  %v7976_v54 = vld [vmem:[%s11643_s1 + $0x6e4] ss:$16 sps:$4 sm:$0xff]   ;;  %v7979_v55 = vld [vmem:[%s11643_s1 + $0x6ec] ss:$16 sps:$4 sm:$0xff]  }
  0xaf   : > { %5307 = vmatpush1.bf16.msra.mxu0 %v7883_v56  ;;  %5840 = vmatpush1.bf16.msra.mxu1 %v7886_v57  ;;  %v7974_v56 = vld [vmem:[%s11643_s1 + $0x6e0] ss:$16 sps:$4 sm:$0xff]   ;;  %v7977_v57 = vld [vmem:[%s11643_s1 + $0x6e8] ss:$16 sps:$4 sm:$0xff]  }
  0xb0   : > { %5308 = vmatprep.subr.bf16.mxu0 %v7891_v58  ;;  %5841 = vmatprep.subr.bf16.mxu1 %v7894_v59  ;;  %v7982_v58 = vld [vmem:[%s11643_s1 + $0x704] ss:$16 sps:$4 sm:$0xff]   ;;  %v7985_v59 = vld [vmem:[%s11643_s1 + $0x70c] ss:$16 sps:$4 sm:$0xff]  }
  0xb3   : > { %5309 = vmatpush1.bf16.msra.mxu0 %v7889_v60  ;;  %5842 = vmatpush1.bf16.msra.mxu1 %v7892_v61  ;;  %v7980_v60 = vld [vmem:[%s11643_s1 + $0x700] ss:$16 sps:$4 sm:$0xff]   ;;  %v7983_v61 = vld [vmem:[%s11643_s1 + $0x708] ss:$16 sps:$4 sm:$0xff]  }
  0xb4   : > { %5310 = vmatprep.subr.bf16.mxu0 %v7897_v62  ;;  %5843 = vmatprep.subr.bf16.mxu1 %v7900_v63  ;;  %v7988_v62 = vld [vmem:[%s11643_s1 + $0x724] ss:$16 sps:$4 sm:$0xff]   ;;  %v7991_v63 = vld [vmem:[%s11643_s1 + $0x72c] ss:$16 sps:$4 sm:$0xff]  }
  0xb7   : > { %5311 = vmatpush1.bf16.msra.mxu0 %v7895_v0  ;;  %5844 = vmatpush1.bf16.msra.mxu1 %v7898_v1  ;;  %v7986_v0 = vld [vmem:[%s11643_s1 + $0x720] ss:$16 sps:$4 sm:$0xff]   ;;  %v7989_v1 = vld [vmem:[%s11643_s1 + $0x728] ss:$16 sps:$4 sm:$0xff]  }
  0xb8   : > { %5312 = vmatprep.subr.bf16.mxu0 %v7903_v2  ;;  %5845 = vmatprep.subr.bf16.mxu1 %v7906_v3  ;;  %v7994_v2 = vld [vmem:[%s11643_s1 + $0x744] ss:$16 sps:$4 sm:$0xff]   ;;  %v7997_v3 = vld [vmem:[%s11643_s1 + $0x74c] ss:$16 sps:$4 sm:$0xff]  }
  0xbb   : > { %5313 = vmatpush1.bf16.msra.mxu0 %v7901_v4  ;;  %5846 = vmatpush1.bf16.msra.mxu1 %v7904_v5  ;;  %v7992_v4 = vld [vmem:[%s11643_s1 + $0x740] ss:$16 sps:$4 sm:$0xff]   ;;  %v7995_v5 = vld [vmem:[%s11643_s1 + $0x748] ss:$16 sps:$4 sm:$0xff]  }
  0xbc   : > { %5314 = vmatprep.subr.bf16.mxu0 %v7909_v6  ;;  %5847 = vmatprep.subr.bf16.mxu1 %v7912_v7  ;;  %v8000_v6 = vld [vmem:[%s11643_s1 + $0x764] ss:$16 sps:$4 sm:$0xff]   ;;  %v8003_v7 = vld [vmem:[%s11643_s1 + $0x76c] ss:$16 sps:$4 sm:$0xff]  }
  0xbf   : > { %5315 = vmatpush1.bf16.msra.mxu0 %v7907_v8  ;;  %5848 = vmatpush1.bf16.msra.mxu1 %v7910_v9  ;;  %v7998_v8 = vld [vmem:[%s11643_s1 + $0x760] ss:$16 sps:$4 sm:$0xff]   ;;  %v8001_v9 = vld [vmem:[%s11643_s1 + $0x768] ss:$16 sps:$4 sm:$0xff]  }
  0xc0   : > { %5316 = vmatprep.subr.bf16.mxu0 %v7915_v10  ;;  %5849 = vmatprep.subr.bf16.mxu1 %v7918_v11  ;;  %v8006_v10 = vld [vmem:[%s11643_s1 + $0x784] ss:$16 sps:$4 sm:$0xff]   ;;  %v8009_v11 = vld [vmem:[%s11643_s1 + $0x78c] ss:$16 sps:$4 sm:$0xff]  }
  0xc3   : > { %5317 = vmatpush1.bf16.msra.mxu0 %v7913_v12  ;;  %5850 = vmatpush1.bf16.msra.mxu1 %v7916_v52  ;;  %v8004_v12 = vld [vmem:[%s11643_s1 + $0x780] ss:$16 sps:$4 sm:$0xff]   ;;  %v8007_v52 = vld [vmem:[%s11643_s1 + $0x788] ss:$16 sps:$4 sm:$0xff]  }
  0xc4   : > { %5318 = vmatprep.subr.bf16.mxu0 %v7921_v15  ;;  %5851 = vmatprep.subr.bf16.mxu1 %v7924_v16  ;;  %v8012_v15 = vld [vmem:[%s11643_s1 + $0x7a4] ss:$16 sps:$4 sm:$0xff]   ;;  %v8015_v16 = vld [vmem:[%s11643_s1 + $0x7ac] ss:$16 sps:$4 sm:$0xff]  }
  0xc7   : > { %5319 = vmatpush1.bf16.msra.mxu0 %v7919_v17  ;;  %5852 = vmatpush1.bf16.msra.mxu1 %v7922_v18  ;;  %v8010_v17 = vld [vmem:[%s11643_s1 + $0x7a0] ss:$16 sps:$4 sm:$0xff]   ;;  %v8013_v18 = vld [vmem:[%s11643_s1 + $0x7a8] ss:$16 sps:$4 sm:$0xff]  }
  0xc8   : > { %5320 = vmatprep.subr.bf16.mxu0 %v7927_v19  ;;  %5853 = vmatprep.subr.bf16.mxu1 %v7930_v20  ;;  %v8018_v19 = vld [vmem:[%s11643_s1 + $0x7c4] ss:$16 sps:$4 sm:$0xff]   ;;  %v8021_v20 = vld [vmem:[%s11643_s1 + $0x7cc] ss:$16 sps:$4 sm:$0xff]  }
  0xcb   : > { %5321 = vmatpush1.bf16.msra.mxu0 %v7925_v21  ;;  %5854 = vmatpush1.bf16.msra.mxu1 %v7928_v22  ;;  %v9797_v21 = vld.sshfl [vmem:[%s9140_s17 + $0x8] sm:$0xff pattern:$0x75316420]  ;;  %v8016_v22 = vld [vmem:[%s11643_s1 + $0x7c0] ss:$16 sps:$4 sm:$0xff]  }
  0xcc   : > { %5331 = vmatprep.subr.bf16.mxu0 %v7934_v23  ;;  %5864 = vmatprep.subr.bf16.mxu1 %v7937_v24  ;;  %v8019_v23 = vld [vmem:[%s11643_s1 + $0x7c8] ss:$16 sps:$4 sm:$0xff]   ;;  %v8024_v24 = vld [vmem:[%s11643_s1 + $0x7e4] ss:$16 sps:$4 sm:$0xff]  }
  0xce   : > { %5323 = vmatmul.mubr.bf16.vlgmr.msra.gmra.mrb[0].mxu0 %v9625_v26  ;;  %5856 = vmatmul.mubr.bf16.vlgmr.msra.gmra.mrb[0].mxu1 %v9625_v26 }
  0xcf   : > { %5332 = vmatpush1.bf16.msra.mxu0 %v7932_v13  ;;  %5865 = vmatpush1.bf16.msra.mxu1 %v7935_v27  ;;  %v8027_v13 = vld [vmem:[%s11643_s1 + $0x7ec] ss:$16 sps:$4 sm:$0xff]   ;;  %v8022_v27 = vld [vmem:[%s11643_s1 + $0x7e0] ss:$16 sps:$4 sm:$0xff]  }
  0xd0   : > { %5333 = vmatprep.subr.bf16.mxu0 %v7940_v28  ;;  %5866 = vmatprep.subr.bf16.mxu1 %v7943_v29  ;;  %v8025_v28 = vld [vmem:[%s11643_s1 + $0x7e8] ss:$16 sps:$4 sm:$0xff]   ;;  %v8030_v29 = vld [vmem:[%s11643_s1 + $0x804] ss:$16 sps:$4 sm:$0xff]  }
  0xd1   : > { %5363 = vmatprep.mubr.bf16.mxu0 %v1126_v14  ;;  %5896 = vmatprep.mubr.bf16.mxu1 %v1126_v14  ;;  %v8033_v14 = vld [vmem:[%s11643_s1 + $0x80c] ss:$16 sps:$4 sm:$0xff]  }
  0xd3   : > { %5334 = vmatpush1.bf16.msra.mxu0 %v7938_v30  ;;  %5867 = vmatpush1.bf16.msra.mxu1 %v7941_v31  ;;  %v1142_v30 = vcombine.high %v9797_v21, %v9797_v21  ;;  %v1124_v31 = vcombine.high %v9625_v26, %v9625_v26  ;;  %v8039_v26 = vld [vmem:[%s11643_s1 + $0x82c] ss:$16 sps:$4 sm:$0xff]  }
  0xd4   : > { %5335 = vmatprep.subr.bf16.mxu0 %v7946_v25  ;;  %5868 = vmatprep.subr.bf16.mxu1 %v7949_v32  ;;  %v8028_v25 = vld [vmem:[%s11643_s1 + $0x800] ss:$16 sps:$4 sm:$0xff]   ;;  %v8031_v32 = vld [vmem:[%s11643_s1 + $0x808] ss:$16 sps:$4 sm:$0xff]  }
  0xd7   : > { %5336 = vmatpush1.bf16.msra.mxu0 %v7944_v33  ;;  %5869 = vmatpush1.bf16.msra.mxu1 %v7947_v34  ;;  %v8036_v33 = vld [vmem:[%s11643_s1 + $0x824] ss:$16 sps:$4 sm:$0xff]   ;;  %v9840_v34 = vrot.slane %v1142_v30, %v9143_v49 }
  0xd8   : > { %5337 = vmatprep.subr.bf16.mxu0 %v7952_v35  ;;  %5870 = vmatprep.subr.bf16.mxu1 %v7955_v36  ;;  %v8034_v35 = vld [vmem:[%s11643_s1 + $0x820] ss:$16 sps:$4 sm:$0xff]   ;;  %v8037_v36 = vld [vmem:[%s11643_s1 + $0x828] ss:$16 sps:$4 sm:$0xff]   ;;  %v8120_v30 = vld [vmem:[%s11643_s1 + $0x9e4] ss:$16 sps:$4 sm:$0xff]  }
  0xdb   : > { %5338 = vmatpush1.bf16.msra.mxu0 %v7950_v37  ;;  %5871 = vmatpush1.bf16.msra.mxu1 %v7953_v38  ;;  %v8042_v37 = vld [vmem:[%s11643_s1 + $0x844] ss:$16 sps:$4 sm:$0xff]   ;;  %v8045_v38 = vld [vmem:[%s11643_s1 + $0x84c] ss:$16 sps:$4 sm:$0xff]  }
  0xdc   : > { %5339 = vmatprep.subr.bf16.mxu0 %v7958_v39  ;;  %5872 = vmatprep.subr.bf16.mxu1 %v7961_v40  ;;  %v8040_v39 = vld [vmem:[%s11643_s1 + $0x840] ss:$16 sps:$4 sm:$0xff]   ;;  %v8043_v40 = vld [vmem:[%s11643_s1 + $0x848] ss:$16 sps:$4 sm:$0xff]  }
  0xdf   : > { %5340 = vmatpush1.bf16.msra.mxu0 %v7956_v41  ;;  %5873 = vmatpush1.bf16.msra.mxu1 %v7959_v42  ;;  %v8048_v41 = vld [vmem:[%s11643_s1 + $0x864] ss:$16 sps:$4 sm:$0xff]   ;;  %v8051_v42 = vld [vmem:[%s11643_s1 + $0x86c] ss:$16 sps:$4 sm:$0xff]  }
  0xe0   : > { %5341 = vmatprep.subr.bf16.mxu0 %v7964_v44  ;;  %5874 = vmatprep.subr.bf16.mxu1 %v7967_v45  ;;  %v8046_v44 = vld [vmem:[%s11643_s1 + $0x860] ss:$16 sps:$4 sm:$0xff]   ;;  %v8049_v45 = vld [vmem:[%s11643_s1 + $0x868] ss:$16 sps:$4 sm:$0xff]  }
  0xe3   : > { %5342 = vmatpush1.bf16.msra.mxu0 %v7962_v46  ;;  %5875 = vmatpush1.bf16.msra.mxu1 %v7965_v47  ;;  %v8054_v46 = vld [vmem:[%s11643_s1 + $0x884] ss:$16 sps:$4 sm:$0xff]   ;;  %v8057_v47 = vld [vmem:[%s11643_s1 + $0x88c] ss:$16 sps:$4 sm:$0xff]  }
  0xe4   : > { %5343 = vmatprep.subr.bf16.mxu0 %v7970_v48  ;;  %5876 = vmatprep.subr.bf16.mxu1 %v7973_v50  ;;  %v8052_v48 = vld [vmem:[%s11643_s1 + $0x880] ss:$16 sps:$4 sm:$0xff]   ;;  %v8055_v50 = vld [vmem:[%s11643_s1 + $0x888] ss:$16 sps:$4 sm:$0xff]  }
  0xe7   : > { %5344 = vmatpush1.bf16.msra.mxu0 %v7968_v51  ;;  %5877 = vmatpush1.bf16.msra.mxu1 %v7971_v53  ;;  %v8060_v51 = vld [vmem:[%s11643_s1 + $0x8a4] ss:$16 sps:$4 sm:$0xff]   ;;  %v8063_v53 = vld [vmem:[%s11643_s1 + $0x8ac] ss:$16 sps:$4 sm:$0xff]  }
  0xe8   : > { %5345 = vmatprep.subr.bf16.mxu0 %v7976_v54  ;;  %5878 = vmatprep.subr.bf16.mxu1 %v7979_v55  ;;  %v8058_v54 = vld [vmem:[%s11643_s1 + $0x8a0] ss:$16 sps:$4 sm:$0xff]   ;;  %v8061_v55 = vld [vmem:[%s11643_s1 + $0x8a8] ss:$16 sps:$4 sm:$0xff]  }
  0xeb   : > { %5346 = vmatpush1.bf16.msra.mxu0 %v7974_v56  ;;  %5879 = vmatpush1.bf16.msra.mxu1 %v7977_v57  ;;  %v8066_v56 = vld [vmem:[%s11643_s1 + $0x8c4] ss:$16 sps:$4 sm:$0xff]   ;;  %v8069_v57 = vld [vmem:[%s11643_s1 + $0x8cc] ss:$16 sps:$4 sm:$0xff]  }
  0xec   : > { %5347 = vmatprep.subr.bf16.mxu0 %v7982_v58  ;;  %5880 = vmatprep.subr.bf16.mxu1 %v7985_v59  ;;  %v8064_v58 = vld [vmem:[%s11643_s1 + $0x8c0] ss:$16 sps:$4 sm:$0xff]   ;;  %v8067_v59 = vld [vmem:[%s11643_s1 + $0x8c8] ss:$16 sps:$4 sm:$0xff]  }
  0xef   : > { %5348 = vmatpush1.bf16.msra.mxu0 %v7980_v60  ;;  %5881 = vmatpush1.bf16.msra.mxu1 %v7983_v61  ;;  %v8072_v60 = vld [vmem:[%s11643_s1 + $0x8e4] ss:$16 sps:$4 sm:$0xff]   ;;  %v8075_v61 = vld [vmem:[%s11643_s1 + $0x8ec] ss:$16 sps:$4 sm:$0xff]  }
  0xf0   : > { %5349 = vmatprep.subr.bf16.mxu0 %v7988_v62  ;;  %5882 = vmatprep.subr.bf16.mxu1 %v7991_v63  ;;  %v8070_v62 = vld [vmem:[%s11643_s1 + $0x8e0] ss:$16 sps:$4 sm:$0xff]   ;;  %v8073_v63 = vld [vmem:[%s11643_s1 + $0x8e8] ss:$16 sps:$4 sm:$0xff]  }
  0xf3   : > { %5350 = vmatpush1.bf16.msra.mxu0 %v7986_v0  ;;  %5883 = vmatpush1.bf16.msra.mxu1 %v7989_v1  ;;  %v8078_v0 = vld [vmem:[%s11643_s1 + $0x904] ss:$16 sps:$4 sm:$0xff]   ;;  %v8081_v1 = vld [vmem:[%s11643_s1 + $0x90c] ss:$16 sps:$4 sm:$0xff]  }
  0xf4   : > { %5351 = vmatprep.subr.bf16.mxu0 %v7994_v2  ;;  %5884 = vmatprep.subr.bf16.mxu1 %v7997_v3  ;;  %v8076_v2 = vld [vmem:[%s11643_s1 + $0x900] ss:$16 sps:$4 sm:$0xff]   ;;  %v8079_v3 = vld [vmem:[%s11643_s1 + $0x908] ss:$16 sps:$4 sm:$0xff]  }
  0xf7   : > { %5352 = vmatpush1.bf16.msra.mxu0 %v7992_v4  ;;  %5885 = vmatpush1.bf16.msra.mxu1 %v7995_v5  ;;  %v8084_v4 = vld [vmem:[%s11643_s1 + $0x924] ss:$16 sps:$4 sm:$0xff]   ;;  %v8087_v5 = vld [vmem:[%s11643_s1 + $0x92c] ss:$16 sps:$4 sm:$0xff]  }
  0xf8   : > { %5353 = vmatprep.subr.bf16.mxu0 %v8000_v6  ;;  %5886 = vmatprep.subr.bf16.mxu1 %v8003_v7  ;;  %v8082_v6 = vld [vmem:[%s11643_s1 + $0x920] ss:$16 sps:$4 sm:$0xff]   ;;  %v8085_v7 = vld [vmem:[%s11643_s1 + $0x928] ss:$16 sps:$4 sm:$0xff]  }
  0xfb   : > { %5354 = vmatpush1.bf16.msra.mxu0 %v7998_v8  ;;  %5887 = vmatpush1.bf16.msra.mxu1 %v8001_v9  ;;  %v8090_v8 = vld [vmem:[%s11643_s1 + $0x944] ss:$16 sps:$4 sm:$0xff]   ;;  %v8093_v9 = vld [vmem:[%s11643_s1 + $0x94c] ss:$16 sps:$4 sm:$0xff]  }
  0xfc   : > { %5355 = vmatprep.subr.bf16.mxu0 %v8006_v10  ;;  %5888 = vmatprep.subr.bf16.mxu1 %v8009_v11  ;;  %v8088_v10 = vld [vmem:[%s11643_s1 + $0x940] ss:$16 sps:$4 sm:$0xff]   ;;  %v8091_v11 = vld [vmem:[%s11643_s1 + $0x948] ss:$16 sps:$4 sm:$0xff]  }
  0xff   : > { %5356 = vmatpush1.bf16.msra.mxu0 %v8004_v12  ;;  %5889 = vmatpush1.bf16.msra.mxu1 %v8007_v52  ;;  %v8096_v12 = vld [vmem:[%s11643_s1 + $0x964] ss:$16 sps:$4 sm:$0xff]   ;;  %v8099_v52 = vld [vmem:[%s11643_s1 + $0x96c] ss:$16 sps:$4 sm:$0xff]  }
 0x100   : > { %5357 = vmatprep.subr.bf16.mxu0 %v8012_v15  ;;  %5890 = vmatprep.subr.bf16.mxu1 %v8015_v16  ;;  %v8094_v15 = vld [vmem:[%s11643_s1 + $0x960] ss:$16 sps:$4 sm:$0xff]   ;;  %v8097_v16 = vld [vmem:[%s11643_s1 + $0x968] ss:$16 sps:$4 sm:$0xff]  }
 0x103   : > { %5358 = vmatpush1.bf16.msra.mxu0 %v8010_v17  ;;  %5891 = vmatpush1.bf16.msra.mxu1 %v8013_v18  ;;  %v8102_v17 = vld [vmem:[%s11643_s1 + $0x984] ss:$16 sps:$4 sm:$0xff]   ;;  %v8105_v18 = vld [vmem:[%s11643_s1 + $0x98c] ss:$16 sps:$4 sm:$0xff]  }
 0x104   : > { %5359 = vmatprep.subr.bf16.mxu0 %v8018_v19  ;;  %5892 = vmatprep.subr.bf16.mxu1 %v8021_v20  ;;  %v8100_v19 = vld [vmem:[%s11643_s1 + $0x980] ss:$16 sps:$4 sm:$0xff]   ;;  %v8103_v20 = vld [vmem:[%s11643_s1 + $0x988] ss:$16 sps:$4 sm:$0xff]  }
 0x107   : > { %5360 = vmatpush1.bf16.msra.mxu0 %v8016_v22  ;;  %5893 = vmatpush1.bf16.msra.mxu1 %v8019_v23  ;;  %v8108_v22 = vld [vmem:[%s11643_s1 + $0x9a4] ss:$16 sps:$4 sm:$0xff]   ;;  %v8111_v23 = vld [vmem:[%s11643_s1 + $0x9ac] ss:$16 sps:$4 sm:$0xff]  }
 0x108   : > { %5361 = vmatprep.subr.bf16.mxu0 %v8024_v24  ;;  %5894 = vmatprep.subr.bf16.mxu1 %v8027_v13  ;;  %v8106_v24 = vld [vmem:[%s11643_s1 + $0x9a0] ss:$16 sps:$4 sm:$0xff]   ;;  %v8109_v13 = vld [vmem:[%s11643_s1 + $0x9a8] ss:$16 sps:$4 sm:$0xff]  }
 0x10b   : > { %5362 = vmatpush1.bf16.msra.mxu0 %v8022_v27  ;;  %5895 = vmatpush1.bf16.msra.mxu1 %v8025_v28  ;;  %v8114_v27 = vld [vmem:[%s11643_s1 + $0x9c4] ss:$16 sps:$4 sm:$0xff]   ;;  %v8117_v28 = vld [vmem:[%s11643_s1 + $0x9cc] ss:$16 sps:$4 sm:$0xff]  }
 0x10c   : > { %5372 = vmatprep.subr.bf16.mxu0 %v8030_v29  ;;  %5905 = vmatprep.subr.bf16.mxu1 %v8033_v14  ;;  %v8112_v29 = vld [vmem:[%s11643_s1 + $0x9c0] ss:$16 sps:$4 sm:$0xff]   ;;  %v8115_v14 = vld [vmem:[%s11643_s1 + $0x9c8] ss:$16 sps:$4 sm:$0xff]  }
 0x10e   : > { %5364 = vmatmul.mubr.bf16.vlgmr.msra.gmra.mrb[0].mxu0 %v1124_v31  ;;  %5897 = vmatmul.mubr.bf16.vlgmr.msra.gmra.mrb[0].mxu1 %v1124_v31  ;;  %v8123_v31 = vld [vmem:[%s11643_s1 + $0x9ec] ss:$16 sps:$4 sm:$0xff]  }
 0x10f   : > { %5373 = vmatpush1.bf16.msra.mxu0 %v8028_v25  ;;  %5906 = vmatpush1.bf16.msra.mxu1 %v8031_v32  ;;  %v8118_v25 = vld [vmem:[%s11643_s1 + $0x9e0] ss:$16 sps:$4 sm:$0xff]   ;;  %v8121_v32 = vld [vmem:[%s11643_s1 + $0x9e8] ss:$16 sps:$4 sm:$0xff]  }
 0x110   : > { %5374 = vmatprep.subr.bf16.mxu0 %v8036_v33  ;;  %5907 = vmatprep.subr.bf16.mxu1 %v8039_v26  ;;  %v8126_v33 = vld [vmem:[%s11643_s1 + $0xa04] ss:$16 sps:$4 sm:$0xff]   ;;  %v8129_v26 = vld [vmem:[%s11643_s1 + $0xa0c] ss:$16 sps:$4 sm:$0xff]  }
 0x111   : > { %5404 = vmatprep.mubr.bf16.mxu0 %v9840_v34  ;;  %5937 = vmatprep.mubr.bf16.mxu1 %v9840_v34 }
 0x113   : > { %5375 = vmatpush1.bf16.msra.mxu0 %v8034_v35  ;;  %5908 = vmatpush1.bf16.msra.mxu1 %v8037_v36  ;;  %v10026_v35 = vrot.slane %v9797_v21, %v9143_v49  ;;  %v8124_v36 = vld [vmem:[%s11643_s1 + $0xa00] ss:$16 sps:$4 sm:$0xff]   ;;  %v8135_v21 = vld [vmem:[%s11643_s1 + $0xa2c] ss:$16 sps:$4 sm:$0xff]  }
 0x114   : > { %5376 = vmatprep.subr.bf16.mxu0 %v8042_v37  ;;  %5909 = vmatprep.subr.bf16.mxu1 %v8045_v38  ;;  %v8127_v37 = vld [vmem:[%s11643_s1 + $0xa08] ss:$16 sps:$4 sm:$0xff]   ;;  %v8132_v38 = vld [vmem:[%s11643_s1 + $0xa24] ss:$16 sps:$4 sm:$0xff]  }
 0x117   : > { %5377 = vmatpush1.bf16.msra.mxu0 %v8040_v39  ;;  %5910 = vmatpush1.bf16.msra.mxu1 %v8043_v40  ;;  %v1174_v39 = vcombine.high %v9840_v34, %v9840_v34  ;;  %v8130_v40 = vld [vmem:[%s11643_s1 + $0xa20] ss:$16 sps:$4 sm:$0xff]   ;;  %v8138_v34 = vld [vmem:[%s11643_s1 + $0xa44] ss:$16 sps:$4 sm:$0xff]  }
 0x118   : > { %5378 = vmatprep.subr.bf16.mxu0 %v8048_v41  ;;  %5911 = vmatprep.subr.bf16.mxu1 %v8051_v42  ;;  %v8133_v41 = vld [vmem:[%s11643_s1 + $0xa28] ss:$16 sps:$4 sm:$0xff]   ;;  %v8141_v42 = vld [vmem:[%s11643_s1 + $0xa4c] ss:$16 sps:$4 sm:$0xff]  }
 0x11b   : > { %5379 = vmatpush1.bf16.msra.mxu0 %v8046_v44  ;;  %5912 = vmatpush1.bf16.msra.mxu1 %v8049_v45  ;;  %v8136_v44 = vld [vmem:[%s11643_s1 + $0xa40] ss:$16 sps:$4 sm:$0xff]   ;;  %v8139_v45 = vld [vmem:[%s11643_s1 + $0xa48] ss:$16 sps:$4 sm:$0xff]  }
 0x11c   : > { %5380 = vmatprep.subr.bf16.mxu0 %v8054_v46  ;;  %5913 = vmatprep.subr.bf16.mxu1 %v8057_v47  ;;  %v8144_v46 = vld [vmem:[%s11643_s1 + $0xa64] ss:$16 sps:$4 sm:$0xff]   ;;  %v8147_v47 = vld [vmem:[%s11643_s1 + $0xa6c] ss:$16 sps:$4 sm:$0xff]  }
 0x11f   : > { %5381 = vmatpush1.bf16.msra.mxu0 %v8052_v48  ;;  %5914 = vmatpush1.bf16.msra.mxu1 %v8055_v50  ;;  %v8142_v48 = vld [vmem:[%s11643_s1 + $0xa60] ss:$16 sps:$4 sm:$0xff]   ;;  %v8145_v50 = vld [vmem:[%s11643_s1 + $0xa68] ss:$16 sps:$4 sm:$0xff]  }
 0x120   : > { %5382 = vmatprep.subr.bf16.mxu0 %v8060_v51  ;;  %5915 = vmatprep.subr.bf16.mxu1 %v8063_v53  ;;  %v8150_v51 = vld [vmem:[%s11643_s1 + $0xa84] ss:$16 sps:$4 sm:$0xff]   ;;  %v8153_v53 = vld [vmem:[%s11643_s1 + $0xa8c] ss:$16 sps:$4 sm:$0xff]  }
 0x123   : > { %5383 = vmatpush1.bf16.msra.mxu0 %v8058_v54  ;;  %5916 = vmatpush1.bf16.msra.mxu1 %v8061_v55  ;;  %v8148_v54 = vld [vmem:[%s11643_s1 + $0xa80] ss:$16 sps:$4 sm:$0xff]   ;;  %v8151_v55 = vld [vmem:[%s11643_s1 + $0xa88] ss:$16 sps:$4 sm:$0xff]  }
 0x124   : > { %5384 = vmatprep.subr.bf16.mxu0 %v8066_v56  ;;  %5917 = vmatprep.subr.bf16.mxu1 %v8069_v57  ;;  %v8156_v56 = vld [vmem:[%s11643_s1 + $0xaa4] ss:$16 sps:$4 sm:$0xff]   ;;  %v8159_v57 = vld [vmem:[%s11643_s1 + $0xaac] ss:$16 sps:$4 sm:$0xff]  }
 0x127   : > { %5385 = vmatpush1.bf16.msra.mxu0 %v8064_v58  ;;  %5918 = vmatpush1.bf16.msra.mxu1 %v8067_v59  ;;  %v8154_v58 = vld [vmem:[%s11643_s1 + $0xaa0] ss:$16 sps:$4 sm:$0xff]   ;;  %v8157_v59 = vld [vmem:[%s11643_s1 + $0xaa8] ss:$16 sps:$4 sm:$0xff]  }
 0x128   : > { %5386 = vmatprep.subr.bf16.mxu0 %v8072_v60  ;;  %5919 = vmatprep.subr.bf16.mxu1 %v8075_v61  ;;  %v8162_v60 = vld [vmem:[%s11643_s1 + $0xac4] ss:$16 sps:$4 sm:$0xff]   ;;  %v8165_v61 = vld [vmem:[%s11643_s1 + $0xacc] ss:$16 sps:$4 sm:$0xff]  }
 0x12b   : > { %5387 = vmatpush1.bf16.msra.mxu0 %v8070_v62  ;;  %5920 = vmatpush1.bf16.msra.mxu1 %v8073_v63  ;;  %v8160_v62 = vld [vmem:[%s11643_s1 + $0xac0] ss:$16 sps:$4 sm:$0xff]   ;;  %v8163_v63 = vld [vmem:[%s11643_s1 + $0xac8] ss:$16 sps:$4 sm:$0xff]  }
 0x12c   : > { %5388 = vmatprep.subr.bf16.mxu0 %v8078_v0  ;;  %5921 = vmatprep.subr.bf16.mxu1 %v8081_v1  ;;  %v8168_v0 = vld [vmem:[%s11643_s1 + $0xae4] ss:$16 sps:$4 sm:$0xff]   ;;  %v8171_v1 = vld [vmem:[%s11643_s1 + $0xaec] ss:$16 sps:$4 sm:$0xff]  }
 0x12f   : > { %5389 = vmatpush1.bf16.msra.mxu0 %v8076_v2  ;;  %5922 = vmatpush1.bf16.msra.mxu1 %v8079_v3  ;;  %v8166_v2 = vld [vmem:[%s11643_s1 + $0xae0] ss:$16 sps:$4 sm:$0xff]   ;;  %v8169_v3 = vld [vmem:[%s11643_s1 + $0xae8] ss:$16 sps:$4 sm:$0xff]  }
 0x130   : > { %5390 = vmatprep.subr.bf16.mxu0 %v8084_v4  ;;  %5923 = vmatprep.subr.bf16.mxu1 %v8087_v5  ;;  %v8174_v4 = vld [vmem:[%s11643_s1 + $0xb04] ss:$16 sps:$4 sm:$0xff]   ;;  %v8177_v5 = vld [vmem:[%s11643_s1 + $0xb0c] ss:$16 sps:$4 sm:$0xff]  }
 0x133   : > { %5391 = vmatpush1.bf16.msra.mxu0 %v8082_v6  ;;  %5924 = vmatpush1.bf16.msra.mxu1 %v8085_v7  ;;  %v8172_v6 = vld [vmem:[%s11643_s1 + $0xb00] ss:$16 sps:$4 sm:$0xff]   ;;  %v8175_v7 = vld [vmem:[%s11643_s1 + $0xb08] ss:$16 sps:$4 sm:$0xff]  }
 0x134   : > { %5392 = vmatprep.subr.bf16.mxu0 %v8090_v8  ;;  %5925 = vmatprep.subr.bf16.mxu1 %v8093_v9  ;;  %v8180_v8 = vld [vmem:[%s11643_s1 + $0xb24] ss:$16 sps:$4 sm:$0xff]   ;;  %v8183_v9 = vld [vmem:[%s11643_s1 + $0xb2c] ss:$16 sps:$4 sm:$0xff]  }
 0x137   : > { %5393 = vmatpush1.bf16.msra.mxu0 %v8088_v10  ;;  %5926 = vmatpush1.bf16.msra.mxu1 %v8091_v11  ;;  %v8178_v10 = vld [vmem:[%s11643_s1 + $0xb20] ss:$16 sps:$4 sm:$0xff]   ;;  %v8181_v11 = vld [vmem:[%s11643_s1 + $0xb28] ss:$16 sps:$4 sm:$0xff]  }
 0x138   : > { %5394 = vmatprep.subr.bf16.mxu0 %v8096_v12  ;;  %5927 = vmatprep.subr.bf16.mxu1 %v8099_v52  ;;  %v8186_v12 = vld [vmem:[%s11643_s1 + $0xb44] ss:$16 sps:$4 sm:$0xff]   ;;  %v8189_v52 = vld [vmem:[%s11643_s1 + $0xb4c] ss:$16 sps:$4 sm:$0xff]  }
 0x13b   : > { %5395 = vmatpush1.bf16.msra.mxu0 %v8094_v15  ;;  %5928 = vmatpush1.bf16.msra.mxu1 %v8097_v16  ;;  %v8184_v15 = vld [vmem:[%s11643_s1 + $0xb40] ss:$16 sps:$4 sm:$0xff]   ;;  %v8187_v16 = vld [vmem:[%s11643_s1 + $0xb48] ss:$16 sps:$4 sm:$0xff]  }
 0x13c   : > { %5396 = vmatprep.subr.bf16.mxu0 %v8102_v17  ;;  %5929 = vmatprep.subr.bf16.mxu1 %v8105_v18  ;;  %v8192_v17 = vld [vmem:[%s11643_s1 + $0xb64] ss:$16 sps:$4 sm:$0xff]   ;;  %v8195_v18 = vld [vmem:[%s11643_s1 + $0xb6c] ss:$16 sps:$4 sm:$0xff]  }
 0x13f   : > { %5397 = vmatpush1.bf16.msra.mxu0 %v8100_v19  ;;  %5930 = vmatpush1.bf16.msra.mxu1 %v8103_v20  ;;  %v8190_v19 = vld [vmem:[%s11643_s1 + $0xb60] ss:$16 sps:$4 sm:$0xff]   ;;  %v8193_v20 = vld [vmem:[%s11643_s1 + $0xb68] ss:$16 sps:$4 sm:$0xff]  }
 0x140   : > { %5398 = vmatprep.subr.bf16.mxu0 %v8108_v22  ;;  %5931 = vmatprep.subr.bf16.mxu1 %v8111_v23  ;;  %v8198_v22 = vld [vmem:[%s11643_s1 + $0xb84] ss:$16 sps:$4 sm:$0xff]   ;;  %v8201_v23 = vld [vmem:[%s11643_s1 + $0xb8c] ss:$16 sps:$4 sm:$0xff]  }
 0x143   : > { %5399 = vmatpush1.bf16.msra.mxu0 %v8106_v24  ;;  %5932 = vmatpush1.bf16.msra.mxu1 %v8109_v13  ;;  %v8196_v24 = vld [vmem:[%s11643_s1 + $0xb80] ss:$16 sps:$4 sm:$0xff]   ;;  %v8199_v13 = vld [vmem:[%s11643_s1 + $0xb88] ss:$16 sps:$4 sm:$0xff]  }
 0x144   : > { %5400 = vmatprep.subr.bf16.mxu0 %v8114_v27  ;;  %5933 = vmatprep.subr.bf16.mxu1 %v8117_v28  ;;  %v8204_v27 = vld [vmem:[%s11643_s1 + $0xba4] ss:$16 sps:$4 sm:$0xff]   ;;  %v8207_v28 = vld [vmem:[%s11643_s1 + $0xbac] ss:$16 sps:$4 sm:$0xff]  }
 0x147   : > { %5401 = vmatpush1.bf16.msra.mxu0 %v8112_v29  ;;  %5934 = vmatpush1.bf16.msra.mxu1 %v8115_v14  ;;  %v8202_v29 = vld [vmem:[%s11643_s1 + $0xba0] ss:$16 sps:$4 sm:$0xff]   ;;  %v8205_v14 = vld [vmem:[%s11643_s1 + $0xba8] ss:$16 sps:$4 sm:$0xff]  }
 0x148   : > { %5402 = vmatprep.subr.bf16.mxu0 %v8120_v30  ;;  %5935 = vmatprep.subr.bf16.mxu1 %v8123_v31  ;;  %v8210_v30 = vld [vmem:[%s11643_s1 + $0xbc4] ss:$16 sps:$4 sm:$0xff]   ;;  %v8213_v31 = vld [vmem:[%s11643_s1 + $0xbcc] ss:$16 sps:$4 sm:$0xff]  }
 0x14b   : > { %5403 = vmatpush1.bf16.msra.mxu0 %v8118_v25  ;;  %5936 = vmatpush1.bf16.msra.mxu1 %v8121_v32  ;;  %v8854_v25 = vld [vmem:[%s9140_s17 + $0x8] sm:$0xff] }
 0x14c   : > { %5413 = vmatprep.subr.bf16.mxu0 %v8126_v33  ;;  %5946 = vmatprep.subr.bf16.mxu1 %v8129_v26  ;;  %v1127_v32 = vcombine.high %v8854_v25, %v8854_v25  ;;  %v8208_v33 = vld [vmem:[%s11643_s1 + $0xbc0] ss:$16 sps:$4 sm:$0xff]   ;;  %v8211_v26 = vld [vmem:[%s11643_s1 + $0xbc8] ss:$16 sps:$4 sm:$0xff]  }
 0x14d   : > { %v8292_v25 = vld [vmem:[%s11643_s1 + $0xd80] ss:$16 sps:$4 sm:$0xff]  }
 0x14e   : > { %5405 = vmatmul.mubr.bf16.vlgmr.msra.gmra.mrb[0].mxu0 %v10026_v35  ;;  %5938 = vmatmul.mubr.bf16.vlgmr.msra.gmra.mrb[0].mxu1 %v10026_v35 }
 0x14f   : > { %5414 = vmatpush1.bf16.msra.mxu0 %v8124_v36  ;;  %5947 = vmatpush1.bf16.msra.mxu1 %v8127_v37  ;;  %v8216_v36 = vld [vmem:[%s11643_s1 + $0xbe4] ss:$16 sps:$4 sm:$0xff]   ;;  %v8219_v37 = vld [vmem:[%s11643_s1 + $0xbec] ss:$16 sps:$4 sm:$0xff]  }
 0x150   : > { %5415 = vmatprep.subr.bf16.mxu0 %v8132_v38  ;;  %5948 = vmatprep.subr.bf16.mxu1 %v8135_v21  ;;  %v10214_v38 = vrot.slane %v1127_v32, %v9143_v49  ;;  %v8214_v21 = vld [vmem:[%s11643_s1 + $0xbe0] ss:$16 sps:$4 sm:$0xff]   ;;  %v8295_v32 = vld [vmem:[%s11643_s1 + $0xd88] ss:$16 sps:$4 sm:$0xff]  }
 0x151   : > { %5445 = vmatprep.mubr.bf16.mxu0 %v1174_v39  ;;  %5978 = vmatprep.mubr.bf16.mxu1 %v1174_v39  ;;  %v8217_v39 = vld [vmem:[%s11643_s1 + $0xbe8] ss:$16 sps:$4 sm:$0xff]  }
 0x153   : > { %5416 = vmatpush1.bf16.msra.mxu0 %v8130_v40  ;;  %5949 = vmatpush1.bf16.msra.mxu1 %v8133_v41  ;;  %v8222_v40 = vld [vmem:[%s11643_s1 + $0xc04] ss:$16 sps:$4 sm:$0xff]   ;;  %v8225_v41 = vld [vmem:[%s11643_s1 + $0xc0c] ss:$16 sps:$4 sm:$0xff]  }
 0x154   : > { %5417 = vmatprep.subr.bf16.mxu0 %v8138_v34  ;;  %5950 = vmatprep.subr.bf16.mxu1 %v8141_v42  ;;  %v1143_v34 = vcombine.high %v10214_v38, %v10214_v38  ;;  %v1172_v42 = vcombine.high %v10026_v35, %v10026_v35  ;;  %v8231_v35 = vld [vmem:[%s11643_s1 + $0xc2c] ss:$16 sps:$4 sm:$0xff]  }
 0x157   : > { %5418 = vmatpush1.bf16.msra.mxu0 %v8136_v44  ;;  %5951 = vmatpush1.bf16.msra.mxu1 %v8139_v45  ;;  %v8220_v44 = vld [vmem:[%s11643_s1 + $0xc00] ss:$16 sps:$4 sm:$0xff]   ;;  %v8223_v45 = vld [vmem:[%s11643_s1 + $0xc08] ss:$16 sps:$4 sm:$0xff]  }
 0x158   : > { %5419 = vmatprep.subr.bf16.mxu0 %v8144_v46  ;;  %5952 = vmatprep.subr.bf16.mxu1 %v8147_v47  ;;  %v8228_v46 = vld [vmem:[%s11643_s1 + $0xc24] ss:$16 sps:$4 sm:$0xff]   ;;  %v10245_v47 = vrot.slane %v1143_v34, %v9143_v49 }
 0x159   : > { %v8312_v34 = vld [vmem:[%s11643_s1 + $0xde4] ss:$16 sps:$4 sm:$0xff]  }
 0x15b   : > { %5420 = vmatpush1.bf16.msra.mxu0 %v8142_v48  ;;  %5953 = vmatpush1.bf16.msra.mxu1 %v8145_v50  ;;  %v8226_v48 = vld [vmem:[%s11643_s1 + $0xc20] ss:$16 sps:$4 sm:$0xff]   ;;  %v8229_v50 = vld [vmem:[%s11643_s1 + $0xc28] ss:$16 sps:$4 sm:$0xff]  }
 0x15c   : > { %5421 = vmatprep.subr.bf16.mxu0 %v8150_v51  ;;  %5954 = vmatprep.subr.bf16.mxu1 %v8153_v53  ;;  %v8234_v51 = vld [vmem:[%s11643_s1 + $0xc44] ss:$16 sps:$4 sm:$0xff]   ;;  %v8237_v53 = vld [vmem:[%s11643_s1 + $0xc4c] ss:$16 sps:$4 sm:$0xff]  }
 0x15f   : > { %5422 = vmatpush1.bf16.msra.mxu0 %v8148_v54  ;;  %5955 = vmatpush1.bf16.msra.mxu1 %v8151_v55  ;;  %v8232_v54 = vld [vmem:[%s11643_s1 + $0xc40] ss:$16 sps:$4 sm:$0xff]   ;;  %v8235_v55 = vld [vmem:[%s11643_s1 + $0xc48] ss:$16 sps:$4 sm:$0xff]  }
 0x160   : > { %5423 = vmatprep.subr.bf16.mxu0 %v8156_v56  ;;  %5956 = vmatprep.subr.bf16.mxu1 %v8159_v57  ;;  %v8240_v56 = vld [vmem:[%s11643_s1 + $0xc64] ss:$16 sps:$4 sm:$0xff]   ;;  %v8243_v57 = vld [vmem:[%s11643_s1 + $0xc6c] ss:$16 sps:$4 sm:$0xff]  }
 0x163   : > { %5424 = vmatpush1.bf16.msra.mxu0 %v8154_v58  ;;  %5957 = vmatpush1.bf16.msra.mxu1 %v8157_v59  ;;  %v8238_v58 = vld [vmem:[%s11643_s1 + $0xc60] ss:$16 sps:$4 sm:$0xff]   ;;  %v8241_v59 = vld [vmem:[%s11643_s1 + $0xc68] ss:$16 sps:$4 sm:$0xff]  }
 0x164   : > { %5425 = vmatprep.subr.bf16.mxu0 %v8162_v60  ;;  %5958 = vmatprep.subr.bf16.mxu1 %v8165_v61  ;;  %v8246_v60 = vld [vmem:[%s11643_s1 + $0xc84] ss:$16 sps:$4 sm:$0xff]   ;;  %v8249_v61 = vld [vmem:[%s11643_s1 + $0xc8c] ss:$16 sps:$4 sm:$0xff]  }
 0x167   : > { %5426 = vmatpush1.bf16.msra.mxu0 %v8160_v62  ;;  %5959 = vmatpush1.bf16.msra.mxu1 %v8163_v63  ;;  %v8244_v62 = vld [vmem:[%s11643_s1 + $0xc80] ss:$16 sps:$4 sm:$0xff]   ;;  %v8247_v63 = vld [vmem:[%s11643_s1 + $0xc88] ss:$16 sps:$4 sm:$0xff]  }
 0x168   : > { %5427 = vmatprep.subr.bf16.mxu0 %v8168_v0  ;;  %5960 = vmatprep.subr.bf16.mxu1 %v8171_v1  ;;  %v8252_v0 = vld [vmem:[%s11643_s1 + $0xca4] ss:$16 sps:$4 sm:$0xff]   ;;  %v8255_v1 = vld [vmem:[%s11643_s1 + $0xcac] ss:$16 sps:$4 sm:$0xff]  }
 0x16b   : > { %5428 = vmatpush1.bf16.msra.mxu0 %v8166_v2  ;;  %5961 = vmatpush1.bf16.msra.mxu1 %v8169_v3  ;;  %v8250_v2 = vld [vmem:[%s11643_s1 + $0xca0] ss:$16 sps:$4 sm:$0xff]   ;;  %v8253_v3 = vld [vmem:[%s11643_s1 + $0xca8] ss:$16 sps:$4 sm:$0xff]  }
 0x16c   : > { %5429 = vmatprep.subr.bf16.mxu0 %v8174_v4  ;;  %5962 = vmatprep.subr.bf16.mxu1 %v8177_v5  ;;  %v8258_v4 = vld [vmem:[%s11643_s1 + $0xcc4] ss:$16 sps:$4 sm:$0xff]   ;;  %v8261_v5 = vld [vmem:[%s11643_s1 + $0xccc] ss:$16 sps:$4 sm:$0xff]  }
 0x16f   : > { %5430 = vmatpush1.bf16.msra.mxu0 %v8172_v6  ;;  %5963 = vmatpush1.bf16.msra.mxu1 %v8175_v7  ;;  %v8256_v6 = vld [vmem:[%s11643_s1 + $0xcc0] ss:$16 sps:$4 sm:$0xff]   ;;  %v8259_v7 = vld [vmem:[%s11643_s1 + $0xcc8] ss:$16 sps:$4 sm:$0xff]  }
 0x170   : > { %5431 = vmatprep.subr.bf16.mxu0 %v8180_v8  ;;  %5964 = vmatprep.subr.bf16.mxu1 %v8183_v9  ;;  %v8264_v8 = vld [vmem:[%s11643_s1 + $0xce4] ss:$16 sps:$4 sm:$0xff]   ;;  %v8267_v9 = vld [vmem:[%s11643_s1 + $0xcec] ss:$16 sps:$4 sm:$0xff]  }
 0x173   : > { %5432 = vmatpush1.bf16.msra.mxu0 %v8178_v10  ;;  %5965 = vmatpush1.bf16.msra.mxu1 %v8181_v11  ;;  %v8262_v10 = vld [vmem:[%s11643_s1 + $0xce0] ss:$16 sps:$4 sm:$0xff]   ;;  %v8265_v11 = vld [vmem:[%s11643_s1 + $0xce8] ss:$16 sps:$4 sm:$0xff]  }
 0x174   : > { %5433 = vmatprep.subr.bf16.mxu0 %v8186_v12  ;;  %5966 = vmatprep.subr.bf16.mxu1 %v8189_v52  ;;  %v8270_v12 = vld [vmem:[%s11643_s1 + $0xd04] ss:$16 sps:$4 sm:$0xff]   ;;  %v8273_v52 = vld [vmem:[%s11643_s1 + $0xd0c] ss:$16 sps:$4 sm:$0xff]  }
 0x177   : > { %5434 = vmatpush1.bf16.msra.mxu0 %v8184_v15  ;;  %5967 = vmatpush1.bf16.msra.mxu1 %v8187_v16  ;;  %v8268_v15 = vld [vmem:[%s11643_s1 + $0xd00] ss:$16 sps:$4 sm:$0xff]   ;;  %v8271_v16 = vld [vmem:[%s11643_s1 + $0xd08] ss:$16 sps:$4 sm:$0xff]  }
 0x178   : > { %5435 = vmatprep.subr.bf16.mxu0 %v8192_v17  ;;  %5968 = vmatprep.subr.bf16.mxu1 %v8195_v18  ;;  %v8276_v17 = vld [vmem:[%s11643_s1 + $0xd24] ss:$16 sps:$4 sm:$0xff]   ;;  %v8279_v18 = vld [vmem:[%s11643_s1 + $0xd2c] ss:$16 sps:$4 sm:$0xff]  }
 0x17b   : > { %5436 = vmatpush1.bf16.msra.mxu0 %v8190_v19  ;;  %5969 = vmatpush1.bf16.msra.mxu1 %v8193_v20  ;;  %v8274_v19 = vld [vmem:[%s11643_s1 + $0xd20] ss:$16 sps:$4 sm:$0xff]   ;;  %v8277_v20 = vld [vmem:[%s11643_s1 + $0xd28] ss:$16 sps:$4 sm:$0xff]  }
 0x17c   : > { %5437 = vmatprep.subr.bf16.mxu0 %v8198_v22  ;;  %5970 = vmatprep.subr.bf16.mxu1 %v8201_v23  ;;  %v8282_v22 = vld [vmem:[%s11643_s1 + $0xd44] ss:$16 sps:$4 sm:$0xff]   ;;  %v8285_v23 = vld [vmem:[%s11643_s1 + $0xd4c] ss:$16 sps:$4 sm:$0xff]  }
 0x17f   : > { %5438 = vmatpush1.bf16.msra.mxu0 %v8196_v24  ;;  %5971 = vmatpush1.bf16.msra.mxu1 %v8199_v13  ;;  %v8280_v24 = vld [vmem:[%s11643_s1 + $0xd40] ss:$16 sps:$4 sm:$0xff]   ;;  %v8283_v13 = vld [vmem:[%s11643_s1 + $0xd48] ss:$16 sps:$4 sm:$0xff]  }
 0x180   : > { %5439 = vmatprep.subr.bf16.mxu0 %v8204_v27  ;;  %5972 = vmatprep.subr.bf16.mxu1 %v8207_v28  ;;  %v8288_v27 = vld [vmem:[%s11643_s1 + $0xd64] ss:$16 sps:$4 sm:$0xff]   ;;  %v8291_v28 = vld [vmem:[%s11643_s1 + $0xd6c] ss:$16 sps:$4 sm:$0xff]  }
 0x183   : > { %5440 = vmatpush1.bf16.msra.mxu0 %v8202_v29  ;;  %5973 = vmatpush1.bf16.msra.mxu1 %v8205_v14  ;;  %v8286_v29 = vld [vmem:[%s11643_s1 + $0xd60] ss:$16 sps:$4 sm:$0xff]   ;;  %v8289_v14 = vld [vmem:[%s11643_s1 + $0xd68] ss:$16 sps:$4 sm:$0xff]  }
 0x184   : > { %5441 = vmatprep.subr.bf16.mxu0 %v8210_v30  ;;  %5974 = vmatprep.subr.bf16.mxu1 %v8213_v31  ;;  %v8294_v30 = vld [vmem:[%s11643_s1 + $0xd84] ss:$16 sps:$4 sm:$0xff]   ;;  %v8297_v31 = vld [vmem:[%s11643_s1 + $0xd8c] ss:$16 sps:$4 sm:$0xff]  }
 0x187   : > { %5442 = vmatpush1.bf16.msra.mxu0 %v8208_v33  ;;  %5975 = vmatpush1.bf16.msra.mxu1 %v8211_v26  ;;  %v8300_v33 = vld [vmem:[%s11643_s1 + $0xda4] ss:$16 sps:$4 sm:$0xff]   ;;  %v8303_v26 = vld [vmem:[%s11643_s1 + $0xdac] ss:$16 sps:$4 sm:$0xff]  }
 0x188   : > { %5443 = vmatprep.subr.bf16.mxu0 %v8216_v36  ;;  %5976 = vmatprep.subr.bf16.mxu1 %v8219_v37  ;;  %v8298_v36 = vld [vmem:[%s11643_s1 + $0xda0] ss:$16 sps:$4 sm:$0xff]   ;;  %v8301_v37 = vld [vmem:[%s11643_s1 + $0xda8] ss:$16 sps:$4 sm:$0xff]  }
 0x18b   : > { %5444 = vmatpush1.bf16.msra.mxu0 %v8214_v21  ;;  %5977 = vmatpush1.bf16.msra.mxu1 %v8217_v39  ;;  %v8306_v21 = vld [vmem:[%s11643_s1 + $0xdc4] ss:$16 sps:$4 sm:$0xff]   ;;  %v8309_v39 = vld [vmem:[%s11643_s1 + $0xdcc] ss:$16 sps:$4 sm:$0xff]  }
 0x18c   : > { %5454 = vmatprep.subr.bf16.mxu0 %v8222_v40  ;;  %5987 = vmatprep.subr.bf16.mxu1 %v8225_v41  ;;  %v8304_v40 = vld [vmem:[%s11643_s1 + $0xdc0] ss:$16 sps:$4 sm:$0xff]   ;;  %v8307_v41 = vld [vmem:[%s11643_s1 + $0xdc8] ss:$16 sps:$4 sm:$0xff]  }
 0x18e   : > { %5446 = vmatmul.mubr.bf16.vlgmr.msra.gmra.mrb[0].mxu0 %v1172_v42  ;;  %5979 = vmatmul.mubr.bf16.vlgmr.msra.gmra.mrb[0].mxu1 %v1172_v42  ;;  %v8315_v42 = vld [vmem:[%s11643_s1 + $0xdec] ss:$16 sps:$4 sm:$0xff]  }
 0x18f   : > { %5455 = vmatpush1.bf16.msra.mxu0 %v8220_v44  ;;  %5988 = vmatpush1.bf16.msra.mxu1 %v8223_v45  ;;  %v8310_v44 = vld [vmem:[%s11643_s1 + $0xde0] ss:$16 sps:$4 sm:$0xff]   ;;  %v8313_v45 = vld [vmem:[%s11643_s1 + $0xde8] ss:$16 sps:$4 sm:$0xff]  }
 0x190   : > { %5456 = vmatprep.subr.bf16.mxu0 %v8228_v46  ;;  %5989 = vmatprep.subr.bf16.mxu1 %v8231_v35  ;;  %v8319_v46 = vld [vmem:[%s11643_s1 + $0xe04] ss:$16 sps:$4 sm:$0xff]   ;;  %v8322_v35 = vld [vmem:[%s11643_s1 + $0xe0c] ss:$16 sps:$4 sm:$0xff]  }
 0x191   : > { %5486 = vmatprep.mubr.bf16.mxu0 %v10245_v47  ;;  %6019 = vmatprep.mubr.bf16.mxu1 %v10245_v47 }
 0x193   : > { %5457 = vmatpush1.bf16.msra.mxu0 %v8226_v48  ;;  %5990 = vmatpush1.bf16.msra.mxu1 %v8229_v50  ;;  %v10431_v48 = vrot.slane %v10214_v38, %v9143_v49  ;;  %v8317_v50 = vld [vmem:[%s11643_s1 + $0xe00] ss:$16 sps:$4 sm:$0xff]   ;;  %v8328_v38 = vld [vmem:[%s11643_s1 + $0xe2c] ss:$16 sps:$4 sm:$0xff]  }
 0x194   : > { %5458 = vmatprep.subr.bf16.mxu0 %v8234_v51  ;;  %5991 = vmatprep.subr.bf16.mxu1 %v8237_v53  ;;  %v8320_v51 = vld [vmem:[%s11643_s1 + $0xe08] ss:$16 sps:$4 sm:$0xff]   ;;  %v8325_v53 = vld [vmem:[%s11643_s1 + $0xe24] ss:$16 sps:$4 sm:$0xff]  }
 0x197   : > { %5459 = vmatpush1.bf16.msra.mxu0 %v8232_v54  ;;  %5992 = vmatpush1.bf16.msra.mxu1 %v8235_v55  ;;  %v1175_v54 = vcombine.high %v10245_v47, %v10245_v47  ;;  %v8323_v55 = vld [vmem:[%s11643_s1 + $0xe20] ss:$16 sps:$4 sm:$0xff]   ;;  %v8331_v47 = vld [vmem:[%s11643_s1 + $0xe44] ss:$16 sps:$4 sm:$0xff]  }
 0x198   : > { %5460 = vmatprep.subr.bf16.mxu0 %v8240_v56  ;;  %5993 = vmatprep.subr.bf16.mxu1 %v8243_v57  ;;  %v8326_v56 = vld [vmem:[%s11643_s1 + $0xe28] ss:$16 sps:$4 sm:$0xff]   ;;  %v8334_v57 = vld [vmem:[%s11643_s1 + $0xe4c] ss:$16 sps:$4 sm:$0xff]  }
 0x19b   : > { %5461 = vmatpush1.bf16.msra.mxu0 %v8238_v58  ;;  %5994 = vmatpush1.bf16.msra.mxu1 %v8241_v59  ;;  %v8329_v58 = vld [vmem:[%s11643_s1 + $0xe40] ss:$16 sps:$4 sm:$0xff]   ;;  %v8332_v59 = vld [vmem:[%s11643_s1 + $0xe48] ss:$16 sps:$4 sm:$0xff]  }
 0x19c   : > { %5462 = vmatprep.subr.bf16.mxu0 %v8246_v60  ;;  %5995 = vmatprep.subr.bf16.mxu1 %v8249_v61  ;;  %v8337_v60 = vld [vmem:[%s11643_s1 + $0xe64] ss:$16 sps:$4 sm:$0xff]   ;;  %v8340_v61 = vld [vmem:[%s11643_s1 + $0xe6c] ss:$16 sps:$4 sm:$0xff]  }
 0x19f   : > { %5463 = vmatpush1.bf16.msra.mxu0 %v8244_v62  ;;  %5996 = vmatpush1.bf16.msra.mxu1 %v8247_v63  ;;  %v8335_v62 = vld [vmem:[%s11643_s1 + $0xe60] ss:$16 sps:$4 sm:$0xff]   ;;  %v8338_v63 = vld [vmem:[%s11643_s1 + $0xe68] ss:$16 sps:$4 sm:$0xff]  }
 0x1a0   : > { %5464 = vmatprep.subr.bf16.mxu0 %v8252_v0  ;;  %5997 = vmatprep.subr.bf16.mxu1 %v8255_v1  ;;  %v8343_v0 = vld [vmem:[%s11643_s1 + $0xe84] ss:$16 sps:$4 sm:$0xff]   ;;  %v8346_v1 = vld [vmem:[%s11643_s1 + $0xe8c] ss:$16 sps:$4 sm:$0xff]  }
 0x1a3   : > { %5465 = vmatpush1.bf16.msra.mxu0 %v8250_v2  ;;  %5998 = vmatpush1.bf16.msra.mxu1 %v8253_v3  ;;  %v8341_v2 = vld [vmem:[%s11643_s1 + $0xe80] ss:$16 sps:$4 sm:$0xff]   ;;  %v8344_v3 = vld [vmem:[%s11643_s1 + $0xe88] ss:$16 sps:$4 sm:$0xff]  }
 0x1a4   : > { %5466 = vmatprep.subr.bf16.mxu0 %v8258_v4  ;;  %5999 = vmatprep.subr.bf16.mxu1 %v8261_v5  ;;  %v8349_v4 = vld [vmem:[%s11643_s1 + $0xea4] ss:$16 sps:$4 sm:$0xff]   ;;  %v8352_v5 = vld [vmem:[%s11643_s1 + $0xeac] ss:$16 sps:$4 sm:$0xff]  }
 0x1a7   : > { %5467 = vmatpush1.bf16.msra.mxu0 %v8256_v6  ;;  %6000 = vmatpush1.bf16.msra.mxu1 %v8259_v7  ;;  %v8347_v6 = vld [vmem:[%s11643_s1 + $0xea0] ss:$16 sps:$4 sm:$0xff]   ;;  %v8350_v7 = vld [vmem:[%s11643_s1 + $0xea8] ss:$16 sps:$4 sm:$0xff]  }
 0x1a8   : > { %5468 = vmatprep.subr.bf16.mxu0 %v8264_v8  ;;  %6001 = vmatprep.subr.bf16.mxu1 %v8267_v9  ;;  %v8355_v8 = vld [vmem:[%s11643_s1 + $0xec4] ss:$16 sps:$4 sm:$0xff]   ;;  %v8358_v9 = vld [vmem:[%s11643_s1 + $0xecc] ss:$16 sps:$4 sm:$0xff]  }
 0x1ab   : > { %5469 = vmatpush1.bf16.msra.mxu0 %v8262_v10  ;;  %6002 = vmatpush1.bf16.msra.mxu1 %v8265_v11  ;;  %v8353_v10 = vld [vmem:[%s11643_s1 + $0xec0] ss:$16 sps:$4 sm:$0xff]   ;;  %v8356_v11 = vld [vmem:[%s11643_s1 + $0xec8] ss:$16 sps:$4 sm:$0xff]  }
 0x1ac   : > { %5470 = vmatprep.subr.bf16.mxu0 %v8270_v12  ;;  %6003 = vmatprep.subr.bf16.mxu1 %v8273_v52  ;;  %v8361_v12 = vld [vmem:[%s11643_s1 + $0xee4] ss:$16 sps:$4 sm:$0xff]   ;;  %v8364_v52 = vld [vmem:[%s11643_s1 + $0xeec] ss:$16 sps:$4 sm:$0xff]  }
 0x1af   : > { %5471 = vmatpush1.bf16.msra.mxu0 %v8268_v15  ;;  %6004 = vmatpush1.bf16.msra.mxu1 %v8271_v16  ;;  %v8359_v15 = vld [vmem:[%s11643_s1 + $0xee0] ss:$16 sps:$4 sm:$0xff]   ;;  %v8362_v16 = vld [vmem:[%s11643_s1 + $0xee8] ss:$16 sps:$4 sm:$0xff]  }
 0x1b0   : > { %5472 = vmatprep.subr.bf16.mxu0 %v8276_v17  ;;  %6005 = vmatprep.subr.bf16.mxu1 %v8279_v18  ;;  %v8367_v17 = vld [vmem:[%s11643_s1 + $0xf04] ss:$16 sps:$4 sm:$0xff]   ;;  %v8370_v18 = vld [vmem:[%s11643_s1 + $0xf0c] ss:$16 sps:$4 sm:$0xff]  }
 0x1b3   : > { %5473 = vmatpush1.bf16.msra.mxu0 %v8274_v19  ;;  %6006 = vmatpush1.bf16.msra.mxu1 %v8277_v20  ;;  %v8365_v19 = vld [vmem:[%s11643_s1 + $0xf00] ss:$16 sps:$4 sm:$0xff]   ;;  %v8368_v20 = vld [vmem:[%s11643_s1 + $0xf08] ss:$16 sps:$4 sm:$0xff]  }
 0x1b4   : > { %5474 = vmatprep.subr.bf16.mxu0 %v8282_v22  ;;  %6007 = vmatprep.subr.bf16.mxu1 %v8285_v23  ;;  %v8373_v22 = vld [vmem:[%s11643_s1 + $0xf24] ss:$16 sps:$4 sm:$0xff]   ;;  %v8376_v23 = vld [vmem:[%s11643_s1 + $0xf2c] ss:$16 sps:$4 sm:$0xff]  }
 0x1b7   : > { %5475 = vmatpush1.bf16.msra.mxu0 %v8280_v24  ;;  %6008 = vmatpush1.bf16.msra.mxu1 %v8283_v13  ;;  %v8371_v24 = vld [vmem:[%s11643_s1 + $0xf20] ss:$16 sps:$4 sm:$0xff]   ;;  %v8374_v13 = vld [vmem:[%s11643_s1 + $0xf28] ss:$16 sps:$4 sm:$0xff]  }
 0x1b8   : > { %5476 = vmatprep.subr.bf16.mxu0 %v8288_v27  ;;  %6009 = vmatprep.subr.bf16.mxu1 %v8291_v28  ;;  %v8379_v27 = vld [vmem:[%s11643_s1 + $0xf44] ss:$16 sps:$4 sm:$0xff]   ;;  %v8382_v28 = vld [vmem:[%s11643_s1 + $0xf4c] ss:$16 sps:$4 sm:$0xff]  }
 0x1bb   : > { %5477 = vmatpush1.bf16.msra.mxu0 %v8286_v29  ;;  %6010 = vmatpush1.bf16.msra.mxu1 %v8289_v14  ;;  %v8377_v29 = vld [vmem:[%s11643_s1 + $0xf40] ss:$16 sps:$4 sm:$0xff]   ;;  %v8380_v14 = vld [vmem:[%s11643_s1 + $0xf48] ss:$16 sps:$4 sm:$0xff]  }
 0x1bc   : > { %5478 = vmatprep.subr.bf16.mxu0 %v8294_v30  ;;  %6011 = vmatprep.subr.bf16.mxu1 %v8297_v31  ;;  %v8385_v30 = vld [vmem:[%s11643_s1 + $0xf64] ss:$16 sps:$4 sm:$0xff]   ;;  %v8388_v31 = vld [vmem:[%s11643_s1 + $0xf6c] ss:$16 sps:$4 sm:$0xff]  }
 0x1bf   : > { %5479 = vmatpush1.bf16.msra.mxu0 %v8292_v25  ;;  %6012 = vmatpush1.bf16.msra.mxu1 %v8295_v32  ;;  %v8383_v25 = vld [vmem:[%s11643_s1 + $0xf60] ss:$16 sps:$4 sm:$0xff]   ;;  %v8386_v32 = vld [vmem:[%s11643_s1 + $0xf68] ss:$16 sps:$4 sm:$0xff]  }
 0x1c0   : > { %5480 = vmatprep.subr.bf16.mxu0 %v8300_v33  ;;  %6013 = vmatprep.subr.bf16.mxu1 %v8303_v26  ;;  %v8391_v33 = vld [vmem:[%s11643_s1 + $0xf84] ss:$16 sps:$4 sm:$0xff]   ;;  %v8394_v26 = vld [vmem:[%s11643_s1 + $0xf8c] ss:$16 sps:$4 sm:$0xff]  }
 0x1c3   : > { %5481 = vmatpush1.bf16.msra.mxu0 %v8298_v36  ;;  %6014 = vmatpush1.bf16.msra.mxu1 %v8301_v37  ;;  %v8389_v36 = vld [vmem:[%s11643_s1 + $0xf80] ss:$16 sps:$4 sm:$0xff]   ;;  %v8392_v37 = vld [vmem:[%s11643_s1 + $0xf88] ss:$16 sps:$4 sm:$0xff]  }
 0x1c4   : > { %5482 = vmatprep.subr.bf16.mxu0 %v8306_v21  ;;  %6015 = vmatprep.subr.bf16.mxu1 %v8309_v39  ;;  %v8397_v21 = vld [vmem:[%s11643_s1 + $0xfa4] ss:$16 sps:$4 sm:$0xff]   ;;  %v8400_v39 = vld [vmem:[%s11643_s1 + $0xfac] ss:$16 sps:$4 sm:$0xff]  }
 0x1c7   : > { %5483 = vmatpush1.bf16.msra.mxu0 %v8304_v40  ;;  %6016 = vmatpush1.bf16.msra.mxu1 %v8307_v41  ;;  %v8395_v40 = vld [vmem:[%s11643_s1 + $0xfa0] ss:$16 sps:$4 sm:$0xff]   ;;  %v8398_v41 = vld [vmem:[%s11643_s1 + $0xfa8] ss:$16 sps:$4 sm:$0xff]  }
 0x1c8   : > { %5484 = vmatprep.subr.bf16.mxu0 %v8312_v34  ;;  %6017 = vmatprep.subr.bf16.mxu1 %v8315_v42  ;;  %v8403_v34 = vld [vmem:[%s11643_s1 + $0xfc4] ss:$16 sps:$4 sm:$0xff]   ;;  %v8406_v42 = vld [vmem:[%s11643_s1 + $0xfcc] ss:$16 sps:$4 sm:$0xff]  }
 0x1cb   : > { %5485 = vmatpush1.bf16.msra.mxu0 %v8310_v44  ;;  %6018 = vmatpush1.bf16.msra.mxu1 %v8313_v45  ;;  %v10606_v44 = vld [vmem:[%s9140_s17 + $0x10] sm:$0xff] }
 0x1cc   : > { %5495 = vmatprep.subr.bf16.mxu0 %v8319_v46  ;;  %6028 = vmatprep.subr.bf16.mxu1 %v8322_v35  ;;  %v8401_v45 = vld [vmem:[%s11643_s1 + $0xfc0] ss:$16 sps:$4 sm:$0xff]   ;;  %v8404_v46 = vld [vmem:[%s11643_s1 + $0xfc8] ss:$16 sps:$4 sm:$0xff]   ;;  %v8409_v35 = vld [vmem:[%s11643_s1 + $0xfe4] ss:$16 sps:$4 sm:$0xff]  }
 0x1ce   : > { %5487 = vmatmul.mubr.bf16.vlgmr.msra.gmra.mrb[0].mxu0 %v10431_v48  ;;  %6020 = vmatmul.mubr.bf16.vlgmr.msra.gmra.mrb[0].mxu1 %v10431_v48 }
 0x1cf   : > { %5496 = vmatpush1.bf16.msra.mxu0 %v8317_v50  ;;  %6029 = vmatpush1.bf16.msra.mxu1 %v8320_v51  ;;  %v8412_v50 = vld [vmem:[%s11643_s1 + $0xfec] ss:$16 sps:$4 sm:$0xff]   ;;  %v10622_v51 = vrot.slane %v10606_v44, %v9143_v49 }
 0x1d0   : > { %5497 = vmatprep.subr.bf16.mxu0 %v8325_v53  ;;  %6030 = vmatprep.subr.bf16.mxu1 %v8328_v38  ;;  %v8407_v53 = vld [vmem:[%s11643_s1 + $0xfe0] ss:$16 sps:$4 sm:$0xff]   ;;  %v8410_v38 = vld [vmem:[%s11643_s1 + $0xfe8] ss:$16 sps:$4 sm:$0xff]  }
 0x1d1   : > { %5527 = vmatprep.mubr.bf16.mxu0 %v1175_v54  ;;  %6060 = vmatprep.mubr.bf16.mxu1 %v1175_v54  ;;  %v8415_v54 = vld [vmem:[%s11643_s1 + $0x1004] ss:$16 sps:$4 sm:$0xff]  }
 0x1d3   : > { %5498 = vmatpush1.bf16.msra.mxu0 %v8323_v55  ;;  %6031 = vmatpush1.bf16.msra.mxu1 %v8326_v56  ;;  %v8418_v55 = vld [vmem:[%s11643_s1 + $0x100c] ss:$16 sps:$4 sm:$0xff]   ;;  %v1191_v56 = vcombine.high %v10622_v51, %v10622_v51 }
 0x1d4   : > { %5499 = vmatprep.subr.bf16.mxu0 %v8331_v47  ;;  %6032 = vmatprep.subr.bf16.mxu1 %v8334_v57  ;;  %v1173_v47 = vcombine.high %v10431_v48, %v10431_v48  ;;  %v8413_v57 = vld [vmem:[%s11643_s1 + $0x1000] ss:$16 sps:$4 sm:$0xff]   ;;  %v8424_v48 = vld [vmem:[%s11643_s1 + $0x102c] ss:$16 sps:$4 sm:$0xff]  }
 0x1d7   : > { %5500 = vmatpush1.bf16.msra.mxu0 %v8329_v58  ;;  %6033 = vmatpush1.bf16.msra.mxu1 %v8332_v59  ;;  %v8416_v58 = vld [vmem:[%s11643_s1 + $0x1008] ss:$16 sps:$4 sm:$0xff]   ;;  %v8421_v59 = vld [vmem:[%s11643_s1 + $0x1024] ss:$16 sps:$4 sm:$0xff]  }
 0x1d8   : > { %5501 = vmatprep.subr.bf16.mxu0 %v8337_v60  ;;  %6034 = vmatprep.subr.bf16.mxu1 %v8340_v61  ;;  %v10653_v60 = vrot.slane %v1191_v56, %v9143_v49  ;;  %v8419_v61 = vld [vmem:[%s11643_s1 + $0x1020] ss:$16 sps:$4 sm:$0xff]   ;;  %v8500_v56 = vld [vmem:[%s11643_s1 + $0x11c8] ss:$16 sps:$4 sm:$0xff]  }
 0x1db   : > { %5502 = vmatpush1.bf16.msra.mxu0 %v8335_v62  ;;  %6035 = vmatpush1.bf16.msra.mxu1 %v8338_v63  ;;  %v8422_v62 = vld [vmem:[%s11643_s1 + $0x1028] ss:$16 sps:$4 sm:$0xff]   ;;  %v8427_v63 = vld [vmem:[%s11643_s1 + $0x1044] ss:$16 sps:$4 sm:$0xff]  }
 0x1dc   : > { %5503 = vmatprep.subr.bf16.mxu0 %v8343_v0  ;;  %6036 = vmatprep.subr.bf16.mxu1 %v8346_v1  ;;  %v8430_v0 = vld [vmem:[%s11643_s1 + $0x104c] ss:$16 sps:$4 sm:$0xff]   ;;  %v8425_v1 = vld [vmem:[%s11643_s1 + $0x1040] ss:$16 sps:$4 sm:$0xff]  }
 0x1df   : > { %5504 = vmatpush1.bf16.msra.mxu0 %v8341_v2  ;;  %6037 = vmatpush1.bf16.msra.mxu1 %v8344_v3  ;;  %v8428_v2 = vld [vmem:[%s11643_s1 + $0x1048] ss:$16 sps:$4 sm:$0xff]   ;;  %v8433_v3 = vld [vmem:[%s11643_s1 + $0x1064] ss:$16 sps:$4 sm:$0xff]  }
 0x1e0   : > { %5505 = vmatprep.subr.bf16.mxu0 %v8349_v4  ;;  %6038 = vmatprep.subr.bf16.mxu1 %v8352_v5  ;;  %v8436_v4 = vld [vmem:[%s11643_s1 + $0x106c] ss:$16 sps:$4 sm:$0xff]   ;;  %v8431_v5 = vld [vmem:[%s11643_s1 + $0x1060] ss:$16 sps:$4 sm:$0xff]  }
 0x1e3   : > { %5506 = vmatpush1.bf16.msra.mxu0 %v8347_v6  ;;  %6039 = vmatpush1.bf16.msra.mxu1 %v8350_v7  ;;  %v8434_v6 = vld [vmem:[%s11643_s1 + $0x1068] ss:$16 sps:$4 sm:$0xff]   ;;  %v8439_v7 = vld [vmem:[%s11643_s1 + $0x1084] ss:$16 sps:$4 sm:$0xff]  }
 0x1e4   : > { %5507 = vmatprep.subr.bf16.mxu0 %v8355_v8  ;;  %6040 = vmatprep.subr.bf16.mxu1 %v8358_v9  ;;  %v8442_v8 = vld [vmem:[%s11643_s1 + $0x108c] ss:$16 sps:$4 sm:$0xff]   ;;  %v8437_v9 = vld [vmem:[%s11643_s1 + $0x1080] ss:$16 sps:$4 sm:$0xff]  }
 0x1e7   : > { %5508 = vmatpush1.bf16.msra.mxu0 %v8353_v10  ;;  %6041 = vmatpush1.bf16.msra.mxu1 %v8356_v11  ;;  %v8440_v10 = vld [vmem:[%s11643_s1 + $0x1088] ss:$16 sps:$4 sm:$0xff]   ;;  %v8445_v11 = vld [vmem:[%s11643_s1 + $0x10a4] ss:$16 sps:$4 sm:$0xff]  }
 0x1e8   : > { %5509 = vmatprep.subr.bf16.mxu0 %v8361_v12  ;;  %6042 = vmatprep.subr.bf16.mxu1 %v8364_v52  ;;  %v8448_v12 = vld [vmem:[%s11643_s1 + $0x10ac] ss:$16 sps:$4 sm:$0xff]   ;;  %v8443_v52 = vld [vmem:[%s11643_s1 + $0x10a0] ss:$16 sps:$4 sm:$0xff]  }
 0x1eb   : > { %5510 = vmatpush1.bf16.msra.mxu0 %v8359_v15  ;;  %6043 = vmatpush1.bf16.msra.mxu1 %v8362_v16  ;;  %v8446_v15 = vld [vmem:[%s11643_s1 + $0x10a8] ss:$16 sps:$4 sm:$0xff]   ;;  %v8451_v16 = vld [vmem:[%s11643_s1 + $0x10c4] ss:$16 sps:$4 sm:$0xff]  }
 0x1ec   : > { %5511 = vmatprep.subr.bf16.mxu0 %v8367_v17  ;;  %6044 = vmatprep.subr.bf16.mxu1 %v8370_v18  ;;  %v8454_v17 = vld [vmem:[%s11643_s1 + $0x10cc] ss:$16 sps:$4 sm:$0xff]   ;;  %v8449_v18 = vld [vmem:[%s11643_s1 + $0x10c0] ss:$16 sps:$4 sm:$0xff]  }
 0x1ef   : > { %5512 = vmatpush1.bf16.msra.mxu0 %v8365_v19  ;;  %6045 = vmatpush1.bf16.msra.mxu1 %v8368_v20  ;;  %v8452_v19 = vld [vmem:[%s11643_s1 + $0x10c8] ss:$16 sps:$4 sm:$0xff]   ;;  %v8457_v20 = vld [vmem:[%s11643_s1 + $0x10e4] ss:$16 sps:$4 sm:$0xff]  }
 0x1f0   : > { %5513 = vmatprep.subr.bf16.mxu0 %v8373_v22  ;;  %6046 = vmatprep.subr.bf16.mxu1 %v8376_v23  ;;  %v8460_v22 = vld [vmem:[%s11643_s1 + $0x10ec] ss:$16 sps:$4 sm:$0xff]   ;;  %v8455_v23 = vld [vmem:[%s11643_s1 + $0x10e0] ss:$16 sps:$4 sm:$0xff]  }
 0x1f3   : > { %5514 = vmatpush1.bf16.msra.mxu0 %v8371_v24  ;;  %6047 = vmatpush1.bf16.msra.mxu1 %v8374_v13  ;;  %v8458_v24 = vld [vmem:[%s11643_s1 + $0x10e8] ss:$16 sps:$4 sm:$0xff]   ;;  %v8463_v13 = vld [vmem:[%s11643_s1 + $0x1104] ss:$16 sps:$4 sm:$0xff]  }
 0x1f4   : > { %5515 = vmatprep.subr.bf16.mxu0 %v8379_v27  ;;  %6048 = vmatprep.subr.bf16.mxu1 %v8382_v28  ;;  %v8466_v27 = vld [vmem:[%s11643_s1 + $0x110c] ss:$16 sps:$4 sm:$0xff]   ;;  %v8461_v28 = vld [vmem:[%s11643_s1 + $0x1100] ss:$16 sps:$4 sm:$0xff]  }
 0x1f7   : > { %5516 = vmatpush1.bf16.msra.mxu0 %v8377_v29  ;;  %6049 = vmatpush1.bf16.msra.mxu1 %v8380_v14  ;;  %v8464_v29 = vld [vmem:[%s11643_s1 + $0x1108] ss:$16 sps:$4 sm:$0xff]   ;;  %v8469_v14 = vld [vmem:[%s11643_s1 + $0x1124] ss:$16 sps:$4 sm:$0xff]  }
 0x1f8   : > { %5517 = vmatprep.subr.bf16.mxu0 %v8385_v30  ;;  %6050 = vmatprep.subr.bf16.mxu1 %v8388_v31  ;;  %v8472_v30 = vld [vmem:[%s11643_s1 + $0x112c] ss:$16 sps:$4 sm:$0xff]   ;;  %v8467_v31 = vld [vmem:[%s11643_s1 + $0x1120] ss:$16 sps:$4 sm:$0xff]  }
 0x1fb   : > { %5518 = vmatpush1.bf16.msra.mxu0 %v8383_v25  ;;  %6051 = vmatpush1.bf16.msra.mxu1 %v8386_v32  ;;  %v8470_v25 = vld [vmem:[%s11643_s1 + $0x1128] ss:$16 sps:$4 sm:$0xff]   ;;  %v8475_v32 = vld [vmem:[%s11643_s1 + $0x1144] ss:$16 sps:$4 sm:$0xff]  }
 0x1fc   : > { %5519 = vmatprep.subr.bf16.mxu0 %v8391_v33  ;;  %6052 = vmatprep.subr.bf16.mxu1 %v8394_v26  ;;  %v8478_v33 = vld [vmem:[%s11643_s1 + $0x114c] ss:$16 sps:$4 sm:$0xff]   ;;  %v8473_v26 = vld [vmem:[%s11643_s1 + $0x1140] ss:$16 sps:$4 sm:$0xff]  }
 0x1ff   : > { %5520 = vmatpush1.bf16.msra.mxu0 %v8389_v36  ;;  %6053 = vmatpush1.bf16.msra.mxu1 %v8392_v37  ;;  %v8476_v36 = vld [vmem:[%s11643_s1 + $0x1148] ss:$16 sps:$4 sm:$0xff]   ;;  %v8481_v37 = vld [vmem:[%s11643_s1 + $0x1164] ss:$16 sps:$4 sm:$0xff]  }
 0x200   : > { %5521 = vmatprep.subr.bf16.mxu0 %v8397_v21  ;;  %6054 = vmatprep.subr.bf16.mxu1 %v8400_v39  ;;  %v8484_v21 = vld [vmem:[%s11643_s1 + $0x116c] ss:$16 sps:$4 sm:$0xff]   ;;  %v8479_v39 = vld [vmem:[%s11643_s1 + $0x1160] ss:$16 sps:$4 sm:$0xff]  }
 0x203   : > { %5522 = vmatpush1.bf16.msra.mxu0 %v8395_v40  ;;  %6055 = vmatpush1.bf16.msra.mxu1 %v8398_v41  ;;  %v8482_v40 = vld [vmem:[%s11643_s1 + $0x1168] ss:$16 sps:$4 sm:$0xff]   ;;  %v8487_v41 = vld [vmem:[%s11643_s1 + $0x1184] ss:$16 sps:$4 sm:$0xff]  }
 0x204   : > { %5523 = vmatprep.subr.bf16.mxu0 %v8403_v34  ;;  %6056 = vmatprep.subr.bf16.mxu1 %v8406_v42  ;;  %v8490_v34 = vld [vmem:[%s11643_s1 + $0x118c] ss:$16 sps:$4 sm:$0xff]   ;;  %v8485_v42 = vld [vmem:[%s11643_s1 + $0x1180] ss:$16 sps:$4 sm:$0xff]  }
 0x207   : > { %5524 = vmatpush1.bf16.msra.mxu0 %v8401_v45  ;;  %6057 = vmatpush1.bf16.msra.mxu1 %v8404_v46  ;;  %v8488_v45 = vld [vmem:[%s11643_s1 + $0x1188] ss:$16 sps:$4 sm:$0xff]   ;;  %v8493_v46 = vld [vmem:[%s11643_s1 + $0x11a4] ss:$16 sps:$4 sm:$0xff]  }
 0x208   : > { %5525 = vmatprep.subr.bf16.mxu0 %v8409_v35  ;;  %6058 = vmatprep.subr.bf16.mxu1 %v8412_v50  ;;  %v8496_v35 = vld [vmem:[%s11643_s1 + $0x11ac] ss:$16 sps:$4 sm:$0xff]   ;;  %v8491_v50 = vld [vmem:[%s11643_s1 + $0x11a0] ss:$16 sps:$4 sm:$0xff]  }
 0x20b   : > { %5526 = vmatpush1.bf16.msra.mxu0 %v8407_v53  ;;  %6059 = vmatpush1.bf16.msra.mxu1 %v8410_v38  ;;  %v8494_v53 = vld [vmem:[%s11643_s1 + $0x11a8] ss:$16 sps:$4 sm:$0xff]   ;;  %v8499_v38 = vld [vmem:[%s11643_s1 + $0x11c4] ss:$16 sps:$4 sm:$0xff]  }
 0x20c   : > { %5536 = vmatprep.subr.bf16.mxu0 %v8415_v54  ;;  %6069 = vmatprep.subr.bf16.mxu1 %v8418_v55  ;;  %v8502_v54 = vld [vmem:[%s11643_s1 + $0x11cc] ss:$16 sps:$4 sm:$0xff]   ;;  %v8497_v55 = vld [vmem:[%s11643_s1 + $0x11c0] ss:$16 sps:$4 sm:$0xff]  }
 0x20e   : > { %5528 = vmatmul.mubr.bf16.vlgmr.msra.gmra.mrb[0].mxu0 %v1173_v47  ;;  %6061 = vmatmul.mubr.bf16.vlgmr.msra.gmra.mrb[0].mxu1 %v1173_v47  ;;  %v8505_v47 = vld [vmem:[%s11643_s1 + $0x11e4] ss:$16 sps:$4 sm:$0xff]  }
 0x20f   : > { %5537 = vmatpush1.bf16.msra.mxu0 %v8413_v57  ;;  %6070 = vmatpush1.bf16.msra.mxu1 %v8416_v58  ;;  %v8508_v57 = vld [vmem:[%s11643_s1 + $0x11ec] ss:$16 sps:$4 sm:$0xff]   ;;  %v8503_v58 = vld [vmem:[%s11643_s1 + $0x11e0] ss:$16 sps:$4 sm:$0xff]  }
 0x210   : > { %5538 = vmatprep.subr.bf16.mxu0 %v8421_v59  ;;  %6071 = vmatprep.subr.bf16.mxu1 %v8424_v48  ;;  %v8506_v59 = vld [vmem:[%s11643_s1 + $0x11e8] ss:$16 sps:$4 sm:$0xff]   ;;  %v8511_v48 = vld [vmem:[%s11643_s1 + $0x1204] ss:$16 sps:$4 sm:$0xff]  }
 0x211   : > { %5568 = vmatprep.mubr.bf16.mxu0 %v10653_v60  ;;  %6101 = vmatprep.mubr.bf16.mxu1 %v10653_v60 }
 0x213   : > { %5539 = vmatpush1.bf16.msra.mxu0 %v8419_v61  ;;  %6072 = vmatpush1.bf16.msra.mxu1 %v8422_v62  ;;  %v8514_v61 = vld [vmem:[%s11643_s1 + $0x120c] ss:$16 sps:$4 sm:$0xff]   ;;  %v10839_v62 = vrot.slane %v10622_v51, %v9143_v49 }
 0x214   : > { %5540 = vmatprep.subr.bf16.mxu0 %v8427_v63  ;;  %6073 = vmatprep.subr.bf16.mxu1 %v8430_v0  ;;  %v8509_v63 = vld [vmem:[%s11643_s1 + $0x1200] ss:$16 sps:$4 sm:$0xff]   ;;  %v8512_v0 = vld [vmem:[%s11643_s1 + $0x1208] ss:$16 sps:$4 sm:$0xff]   ;;  %v8520_v51 = vld [vmem:[%s11643_s1 + $0x122c] ss:$16 sps:$4 sm:$0xff]  }
 0x217   : > { %5541 = vmatpush1.bf16.msra.mxu0 %v8425_v1  ;;  %6074 = vmatpush1.bf16.msra.mxu1 %v8428_v2  ;;  %v8517_v1 = vld [vmem:[%s11643_s1 + $0x1224] ss:$16 sps:$4 sm:$0xff]   ;;  %v1223_v2 = vcombine.high %v10653_v60, %v10653_v60 }
 0x218   : > { %5542 = vmatprep.subr.bf16.mxu0 %v8433_v3  ;;  %6075 = vmatprep.subr.bf16.mxu1 %v8436_v4  ;;  %v8515_v3 = vld [vmem:[%s11643_s1 + $0x1220] ss:$16 sps:$4 sm:$0xff]   ;;  %v8518_v4 = vld [vmem:[%s11643_s1 + $0x1228] ss:$16 sps:$4 sm:$0xff]   ;;  %v8523_v60 = vld [vmem:[%s11643_s1 + $0x1244] ss:$16 sps:$4 sm:$0xff]  }
 0x21b   : > { %5543 = vmatpush1.bf16.msra.mxu0 %v8431_v5  ;;  %6076 = vmatpush1.bf16.msra.mxu1 %v8434_v6  ;;  %v8526_v5 = vld [vmem:[%s11643_s1 + $0x124c] ss:$16 sps:$4 sm:$0xff]   ;;  %v8521_v6 = vld [vmem:[%s11643_s1 + $0x1240] ss:$16 sps:$4 sm:$0xff]  }
 0x21c   : > { %5544 = vmatprep.subr.bf16.mxu0 %v8439_v7  ;;  %6077 = vmatprep.subr.bf16.mxu1 %v8442_v8  ;;  %v8524_v7 = vld [vmem:[%s11643_s1 + $0x1248] ss:$16 sps:$4 sm:$0xff]   ;;  %v8529_v8 = vld [vmem:[%s11643_s1 + $0x1264] ss:$16 sps:$4 sm:$0xff]  }
 0x21f   : > { %5545 = vmatpush1.bf16.msra.mxu0 %v8437_v9  ;;  %6078 = vmatpush1.bf16.msra.mxu1 %v8440_v10  ;;  %v8532_v9 = vld [vmem:[%s11643_s1 + $0x126c] ss:$16 sps:$4 sm:$0xff]   ;;  %v8527_v10 = vld [vmem:[%s11643_s1 + $0x1260] ss:$16 sps:$4 sm:$0xff]  }
 0x220   : > { %5546 = vmatprep.subr.bf16.mxu0 %v8445_v11  ;;  %6079 = vmatprep.subr.bf16.mxu1 %v8448_v12  ;;  %v8530_v11 = vld [vmem:[%s11643_s1 + $0x1268] ss:$16 sps:$4 sm:$0xff]   ;;  %v8535_v12 = vld [vmem:[%s11643_s1 + $0x1284] ss:$16 sps:$4 sm:$0xff]  }
 0x223   : > { %5547 = vmatpush1.bf16.msra.mxu0 %v8443_v52  ;;  %6080 = vmatpush1.bf16.msra.mxu1 %v8446_v15  ;;  %v8538_v52 = vld [vmem:[%s11643_s1 + $0x128c] ss:$16 sps:$4 sm:$0xff]   ;;  %v8533_v15 = vld [vmem:[%s11643_s1 + $0x1280] ss:$16 sps:$4 sm:$0xff]  }
 0x224   : > { %5548 = vmatprep.subr.bf16.mxu0 %v8451_v16  ;;  %6081 = vmatprep.subr.bf16.mxu1 %v8454_v17  ;;  %v8536_v16 = vld [vmem:[%s11643_s1 + $0x1288] ss:$16 sps:$4 sm:$0xff]   ;;  %v8541_v17 = vld [vmem:[%s11643_s1 + $0x12a4] ss:$16 sps:$4 sm:$0xff]  }
 0x227   : > { %5549 = vmatpush1.bf16.msra.mxu0 %v8449_v18  ;;  %6082 = vmatpush1.bf16.msra.mxu1 %v8452_v19  ;;  %v8544_v18 = vld [vmem:[%s11643_s1 + $0x12ac] ss:$16 sps:$4 sm:$0xff]   ;;  %v8539_v19 = vld [vmem:[%s11643_s1 + $0x12a0] ss:$16 sps:$4 sm:$0xff]  }
 0x228   : > { %5550 = vmatprep.subr.bf16.mxu0 %v8457_v20  ;;  %6083 = vmatprep.subr.bf16.mxu1 %v8460_v22  ;;  %v8542_v20 = vld [vmem:[%s11643_s1 + $0x12a8] ss:$16 sps:$4 sm:$0xff]   ;;  %v8547_v22 = vld [vmem:[%s11643_s1 + $0x12c4] ss:$16 sps:$4 sm:$0xff]  }
 0x22b   : > { %5551 = vmatpush1.bf16.msra.mxu0 %v8455_v23  ;;  %6084 = vmatpush1.bf16.msra.mxu1 %v8458_v24  ;;  %v8550_v23 = vld [vmem:[%s11643_s1 + $0x12cc] ss:$16 sps:$4 sm:$0xff]   ;;  %v8545_v24 = vld [vmem:[%s11643_s1 + $0x12c0] ss:$16 sps:$4 sm:$0xff]  }
 0x22c   : > { %5552 = vmatprep.subr.bf16.mxu0 %v8463_v13  ;;  %6085 = vmatprep.subr.bf16.mxu1 %v8466_v27  ;;  %v8548_v13 = vld [vmem:[%s11643_s1 + $0x12c8] ss:$16 sps:$4 sm:$0xff]   ;;  %v8553_v27 = vld [vmem:[%s11643_s1 + $0x12e4] ss:$16 sps:$4 sm:$0xff]  }
 0x22f   : > { %5553 = vmatpush1.bf16.msra.mxu0 %v8461_v28  ;;  %6086 = vmatpush1.bf16.msra.mxu1 %v8464_v29  ;;  %v8556_v28 = vld [vmem:[%s11643_s1 + $0x12ec] ss:$16 sps:$4 sm:$0xff]   ;;  %v8551_v29 = vld [vmem:[%s11643_s1 + $0x12e0] ss:$16 sps:$4 sm:$0xff]  }
 0x230   : > { %5554 = vmatprep.subr.bf16.mxu0 %v8469_v14  ;;  %6087 = vmatprep.subr.bf16.mxu1 %v8472_v30  ;;  %v8554_v14 = vld [vmem:[%s11643_s1 + $0x12e8] ss:$16 sps:$4 sm:$0xff]   ;;  %v8559_v30 = vld [vmem:[%s11643_s1 + $0x1304] ss:$16 sps:$4 sm:$0xff]  }
 0x233   : > { %5555 = vmatpush1.bf16.msra.mxu0 %v8467_v31  ;;  %6088 = vmatpush1.bf16.msra.mxu1 %v8470_v25  ;;  %v8562_v31 = vld [vmem:[%s11643_s1 + $0x130c] ss:$16 sps:$4 sm:$0xff]   ;;  %v8557_v25 = vld [vmem:[%s11643_s1 + $0x1300] ss:$16 sps:$4 sm:$0xff]  }
 0x234   : > { %5556 = vmatprep.subr.bf16.mxu0 %v8475_v32  ;;  %6089 = vmatprep.subr.bf16.mxu1 %v8478_v33  ;;  %v8560_v32 = vld [vmem:[%s11643_s1 + $0x1308] ss:$16 sps:$4 sm:$0xff]   ;;  %v8565_v33 = vld [vmem:[%s11643_s1 + $0x1324] ss:$16 sps:$4 sm:$0xff]  }
 0x237   : > { %5557 = vmatpush1.bf16.msra.mxu0 %v8473_v26  ;;  %6090 = vmatpush1.bf16.msra.mxu1 %v8476_v36  ;;  %v8568_v26 = vld [vmem:[%s11643_s1 + $0x132c] ss:$16 sps:$4 sm:$0xff]   ;;  %v8563_v36 = vld [vmem:[%s11643_s1 + $0x1320] ss:$16 sps:$4 sm:$0xff]  }
 0x238   : > { %5558 = vmatprep.subr.bf16.mxu0 %v8481_v37  ;;  %6091 = vmatprep.subr.bf16.mxu1 %v8484_v21  ;;  %v8566_v37 = vld [vmem:[%s11643_s1 + $0x1328] ss:$16 sps:$4 sm:$0xff]   ;;  %v8571_v21 = vld [vmem:[%s11643_s1 + $0x1344] ss:$16 sps:$4 sm:$0xff]  }
 0x23b   : > { %5559 = vmatpush1.bf16.msra.mxu0 %v8479_v39  ;;  %6092 = vmatpush1.bf16.msra.mxu1 %v8482_v40  ;;  %v8574_v39 = vld [vmem:[%s11643_s1 + $0x134c] ss:$16 sps:$4 sm:$0xff]   ;;  %v8569_v40 = vld [vmem:[%s11643_s1 + $0x1340] ss:$16 sps:$4 sm:$0xff]  }
 0x23c   : > { %5560 = vmatprep.subr.bf16.mxu0 %v8487_v41  ;;  %6093 = vmatprep.subr.bf16.mxu1 %v8490_v34  ;;  %v8572_v41 = vld [vmem:[%s11643_s1 + $0x1348] ss:$16 sps:$4 sm:$0xff]   ;;  %v8577_v34 = vld [vmem:[%s11643_s1 + $0x1364] ss:$16 sps:$4 sm:$0xff]  }
 0x23f   : > { %5561 = vmatpush1.bf16.msra.mxu0 %v8485_v42  ;;  %6094 = vmatpush1.bf16.msra.mxu1 %v8488_v45  ;;  %v8580_v42 = vld [vmem:[%s11643_s1 + $0x136c] ss:$16 sps:$4 sm:$0xff]   ;;  %v8575_v45 = vld [vmem:[%s11643_s1 + $0x1360] ss:$16 sps:$4 sm:$0xff]  }
 0x240   : > { %5562 = vmatprep.subr.bf16.mxu0 %v8493_v46  ;;  %6095 = vmatprep.subr.bf16.mxu1 %v8496_v35  ;;  %v8578_v46 = vld [vmem:[%s11643_s1 + $0x1368] ss:$16 sps:$4 sm:$0xff]   ;;  %v8583_v35 = vld [vmem:[%s11643_s1 + $0x1384] ss:$16 sps:$4 sm:$0xff]  }
 0x243   : > { %5563 = vmatpush1.bf16.msra.mxu0 %v8491_v50  ;;  %6096 = vmatpush1.bf16.msra.mxu1 %v8494_v53  ;;  %v8586_v50 = vld [vmem:[%s11643_s1 + $0x138c] ss:$16 sps:$4 sm:$0xff]   ;;  %v8581_v53 = vld [vmem:[%s11643_s1 + $0x1380] ss:$16 sps:$4 sm:$0xff]  }
 0x244   : > { %5564 = vmatprep.subr.bf16.mxu0 %v8499_v38  ;;  %6097 = vmatprep.subr.bf16.mxu1 %v8502_v54  ;;  %v8584_v38 = vld [vmem:[%s11643_s1 + $0x1388] ss:$16 sps:$4 sm:$0xff]   ;;  %v8589_v54 = vld [vmem:[%s11643_s1 + $0x13a4] ss:$16 sps:$4 sm:$0xff]  }
 0x247   : > { %5565 = vmatpush1.bf16.msra.mxu0 %v8497_v55  ;;  %6098 = vmatpush1.bf16.msra.mxu1 %v8500_v56  ;;  %v8592_v55 = vld [vmem:[%s11643_s1 + $0x13ac] ss:$16 sps:$4 sm:$0xff]   ;;  %v8587_v56 = vld [vmem:[%s11643_s1 + $0x13a0] ss:$16 sps:$4 sm:$0xff]  }
 0x248   : > { %5566 = vmatprep.subr.bf16.mxu0 %v8505_v47  ;;  %6099 = vmatprep.subr.bf16.mxu1 %v8508_v57  ;;  %v8590_v47 = vld [vmem:[%s11643_s1 + $0x13a8] ss:$16 sps:$4 sm:$0xff]   ;;  %v8595_v57 = vld [vmem:[%s11643_s1 + $0x13c4] ss:$16 sps:$4 sm:$0xff]  }
 0x24b   : > { %5567 = vmatpush1.bf16.msra.mxu0 %v8503_v58  ;;  %6100 = vmatpush1.bf16.msra.mxu1 %v8506_v59  ;;  %v8598_v58 = vld [vmem:[%s11643_s1 + $0x13cc] ss:$16 sps:$4 sm:$0xff]   ;;  %v1176_v59 = vcombine.high %v10606_v44, %v10606_v44 }
 0x24c   : > { %5577 = vmatprep.subr.bf16.mxu0 %v8511_v48  ;;  %6110 = vmatprep.subr.bf16.mxu1 %v8514_v61  ;;  %v8593_v48 = vld [vmem:[%s11643_s1 + $0x13c0] ss:$16 sps:$4 sm:$0xff]   ;;  %v8596_v61 = vld [vmem:[%s11643_s1 + $0x13c8] ss:$16 sps:$4 sm:$0xff]   ;;  %v8604_v44 = vld [vmem:[%s11643_s1 + $0x13ec] ss:$16 sps:$4 sm:$0xff]  }
 0x24e   : > { %5569 = vmatmul.mubr.bf16.vlgmr.msra.gmra.mrb[0].mxu0 %v10839_v62  ;;  %6102 = vmatmul.mubr.bf16.vlgmr.msra.gmra.mrb[0].mxu1 %v10839_v62 }
 0x24f   : > { %5578 = vmatpush1.bf16.msra.mxu0 %v8509_v63  ;;  %6111 = vmatpush1.bf16.msra.mxu1 %v8512_v0  ;;  %v8601_v63 = vld [vmem:[%s11643_s1 + $0x13e4] ss:$16 sps:$4 sm:$0xff]   ;;  %v11028_v0 = vrot.slane %v1176_v59, %v9143_v49  ;;  %v8680_v59 = vld [vmem:[%s11643_s1 + $0x1588] ss:$16 sps:$4 sm:$0xff]  }
 0x250   : > { %5579 = vmatprep.subr.bf16.mxu0 %v8517_v1  ;;  %6112 = vmatprep.subr.bf16.mxu1 %v8520_v51  ;;  %v8599_v1 = vld [vmem:[%s11643_s1 + $0x13e0] ss:$16 sps:$4 sm:$0xff]   ;;  %v8602_v51 = vld [vmem:[%s11643_s1 + $0x13e8] ss:$16 sps:$4 sm:$0xff]  }
 0x251   : > { %5609 = vmatprep.mubr.bf16.mxu0 %v1223_v2  ;;  %6142 = vmatprep.mubr.bf16.mxu1 %v1223_v2  ;;  %v8607_v2 = vld [vmem:[%s11643_s1 + $0x1404] ss:$16 sps:$4 sm:$0xff]  }
 0x253   : > { %5580 = vmatpush1.bf16.msra.mxu0 %v8515_v3  ;;  %6113 = vmatpush1.bf16.msra.mxu1 %v8518_v4  ;;  %v8610_v3 = vld [vmem:[%s11643_s1 + $0x140c] ss:$16 sps:$4 sm:$0xff]   ;;  %v1192_v4 = vcombine.high %v11028_v0, %v11028_v0 }
 0x254   : > { %5581 = vmatprep.subr.bf16.mxu0 %v8523_v60  ;;  %6114 = vmatprep.subr.bf16.mxu1 %v8526_v5  ;;  %v1221_v60 = vcombine.high %v10839_v62, %v10839_v62  ;;  %v8605_v5 = vld [vmem:[%s11643_s1 + $0x1400] ss:$16 sps:$4 sm:$0xff]   ;;  %v8616_v62 = vld [vmem:[%s11643_s1 + $0x142c] ss:$16 sps:$4 sm:$0xff]  }
 0x257   : > { %5582 = vmatpush1.bf16.msra.mxu0 %v8521_v6  ;;  %6115 = vmatpush1.bf16.msra.mxu1 %v8524_v7  ;;  %v8608_v6 = vld [vmem:[%s11643_s1 + $0x1408] ss:$16 sps:$4 sm:$0xff]   ;;  %v8613_v7 = vld [vmem:[%s11643_s1 + $0x1424] ss:$16 sps:$4 sm:$0xff]  }
 0x258   : > { %5583 = vmatprep.subr.bf16.mxu0 %v8529_v8  ;;  %6116 = vmatprep.subr.bf16.mxu1 %v8532_v9  ;;  %v11059_v8 = vrot.slane %v1192_v4, %v9143_v49  ;;  %v8611_v9 = vld [vmem:[%s11643_s1 + $0x1420] ss:$16 sps:$4 sm:$0xff]   ;;  %v8697_v4 = vld [vmem:[%s11643_s1 + $0x15e4] ss:$16 sps:$4 sm:$0xff]  }
 0x25b   : > { %5584 = vmatpush1.bf16.msra.mxu0 %v8527_v10  ;;  %6117 = vmatpush1.bf16.msra.mxu1 %v8530_v11  ;;  %v8614_v10 = vld [vmem:[%s11643_s1 + $0x1428] ss:$16 sps:$4 sm:$0xff]   ;;  %v8619_v11 = vld [vmem:[%s11643_s1 + $0x1444] ss:$16 sps:$4 sm:$0xff]  }
 0x25c   : > { %5585 = vmatprep.subr.bf16.mxu0 %v8535_v12  ;;  %6118 = vmatprep.subr.bf16.mxu1 %v8538_v52  ;;  %v8622_v12 = vld [vmem:[%s11643_s1 + $0x144c] ss:$16 sps:$4 sm:$0xff]   ;;  %v8617_v52 = vld [vmem:[%s11643_s1 + $0x1440] ss:$16 sps:$4 sm:$0xff]  }
 0x25f   : > { %5586 = vmatpush1.bf16.msra.mxu0 %v8533_v15  ;;  %6119 = vmatpush1.bf16.msra.mxu1 %v8536_v16  ;;  %v8620_v15 = vld [vmem:[%s11643_s1 + $0x1448] ss:$16 sps:$4 sm:$0xff]   ;;  %v8625_v16 = vld [vmem:[%s11643_s1 + $0x1464] ss:$16 sps:$4 sm:$0xff]  }
 0x260   : > { %5587 = vmatprep.subr.bf16.mxu0 %v8541_v17  ;;  %6120 = vmatprep.subr.bf16.mxu1 %v8544_v18  ;;  %v8628_v17 = vld [vmem:[%s11643_s1 + $0x146c] ss:$16 sps:$4 sm:$0xff]   ;;  %v8623_v18 = vld [vmem:[%s11643_s1 + $0x1460] ss:$16 sps:$4 sm:$0xff]  }
 0x263   : > { %5588 = vmatpush1.bf16.msra.mxu0 %v8539_v19  ;;  %6121 = vmatpush1.bf16.msra.mxu1 %v8542_v20  ;;  %v8626_v19 = vld [vmem:[%s11643_s1 + $0x1468] ss:$16 sps:$4 sm:$0xff]   ;;  %v8631_v20 = vld [vmem:[%s11643_s1 + $0x1484] ss:$16 sps:$4 sm:$0xff]  }
 0x264   : > { %5589 = vmatprep.subr.bf16.mxu0 %v8547_v22  ;;  %6122 = vmatprep.subr.bf16.mxu1 %v8550_v23  ;;  %v8634_v22 = vld [vmem:[%s11643_s1 + $0x148c] ss:$16 sps:$4 sm:$0xff]   ;;  %v8629_v23 = vld [vmem:[%s11643_s1 + $0x1480] ss:$16 sps:$4 sm:$0xff]  }
 0x267   : > { %5590 = vmatpush1.bf16.msra.mxu0 %v8545_v24  ;;  %6123 = vmatpush1.bf16.msra.mxu1 %v8548_v13  ;;  %v8632_v24 = vld [vmem:[%s11643_s1 + $0x1488] ss:$16 sps:$4 sm:$0xff]   ;;  %v8637_v13 = vld [vmem:[%s11643_s1 + $0x14a4] ss:$16 sps:$4 sm:$0xff]  }
 0x268   : > { %5591 = vmatprep.subr.bf16.mxu0 %v8553_v27  ;;  %6124 = vmatprep.subr.bf16.mxu1 %v8556_v28  ;;  %v8640_v27 = vld [vmem:[%s11643_s1 + $0x14ac] ss:$16 sps:$4 sm:$0xff]   ;;  %v8635_v28 = vld [vmem:[%s11643_s1 + $0x14a0] ss:$16 sps:$4 sm:$0xff]  }
 0x26b   : > { %5592 = vmatpush1.bf16.msra.mxu0 %v8551_v29  ;;  %6125 = vmatpush1.bf16.msra.mxu1 %v8554_v14  ;;  %v8638_v29 = vld [vmem:[%s11643_s1 + $0x14a8] ss:$16 sps:$4 sm:$0xff]   ;;  %v8643_v14 = vld [vmem:[%s11643_s1 + $0x14c4] ss:$16 sps:$4 sm:$0xff]  }
 0x26c   : > { %5593 = vmatprep.subr.bf16.mxu0 %v8559_v30  ;;  %6126 = vmatprep.subr.bf16.mxu1 %v8562_v31  ;;  %v8646_v30 = vld [vmem:[%s11643_s1 + $0x14cc] ss:$16 sps:$4 sm:$0xff]   ;;  %v8641_v31 = vld [vmem:[%s11643_s1 + $0x14c0] ss:$16 sps:$4 sm:$0xff]  }
 0x26f   : > { %5594 = vmatpush1.bf16.msra.mxu0 %v8557_v25  ;;  %6127 = vmatpush1.bf16.msra.mxu1 %v8560_v32  ;;  %v8644_v25 = vld [vmem:[%s11643_s1 + $0x14c8] ss:$16 sps:$4 sm:$0xff]   ;;  %v8649_v32 = vld [vmem:[%s11643_s1 + $0x14e4] ss:$16 sps:$4 sm:$0xff]  }
 0x270   : > { %5595 = vmatprep.subr.bf16.mxu0 %v8565_v33  ;;  %6128 = vmatprep.subr.bf16.mxu1 %v8568_v26  ;;  %v8652_v33 = vld [vmem:[%s11643_s1 + $0x14ec] ss:$16 sps:$4 sm:$0xff]   ;;  %v8647_v26 = vld [vmem:[%s11643_s1 + $0x14e0] ss:$16 sps:$4 sm:$0xff]  }
 0x273   : > { %5596 = vmatpush1.bf16.msra.mxu0 %v8563_v36  ;;  %6129 = vmatpush1.bf16.msra.mxu1 %v8566_v37  ;;  %v8650_v36 = vld [vmem:[%s11643_s1 + $0x14e8] ss:$16 sps:$4 sm:$0xff]   ;;  %v8655_v37 = vld [vmem:[%s11643_s1 + $0x1504] ss:$16 sps:$4 sm:$0xff]  }
 0x274   : > { %5597 = vmatprep.subr.bf16.mxu0 %v8571_v21  ;;  %6130 = vmatprep.subr.bf16.mxu1 %v8574_v39  ;;  %v8658_v21 = vld [vmem:[%s11643_s1 + $0x150c] ss:$16 sps:$4 sm:$0xff]   ;;  %v8653_v39 = vld [vmem:[%s11643_s1 + $0x1500] ss:$16 sps:$4 sm:$0xff]  }
 0x277   : > { %5598 = vmatpush1.bf16.msra.mxu0 %v8569_v40  ;;  %6131 = vmatpush1.bf16.msra.mxu1 %v8572_v41  ;;  %v8656_v40 = vld [vmem:[%s11643_s1 + $0x1508] ss:$16 sps:$4 sm:$0xff]   ;;  %v8661_v41 = vld [vmem:[%s11643_s1 + $0x1524] ss:$16 sps:$4 sm:$0xff]  }
 0x278   : > { %5599 = vmatprep.subr.bf16.mxu0 %v8577_v34  ;;  %6132 = vmatprep.subr.bf16.mxu1 %v8580_v42  ;;  %v8664_v34 = vld [vmem:[%s11643_s1 + $0x152c] ss:$16 sps:$4 sm:$0xff]   ;;  %v8659_v42 = vld [vmem:[%s11643_s1 + $0x1520] ss:$16 sps:$4 sm:$0xff]  }
 0x27b   : > { %5600 = vmatpush1.bf16.msra.mxu0 %v8575_v45  ;;  %6133 = vmatpush1.bf16.msra.mxu1 %v8578_v46  ;;  %v8662_v45 = vld [vmem:[%s11643_s1 + $0x1528] ss:$16 sps:$4 sm:$0xff]   ;;  %v8667_v46 = vld [vmem:[%s11643_s1 + $0x1544] ss:$16 sps:$4 sm:$0xff]  }
 0x27c   : > { %5601 = vmatprep.subr.bf16.mxu0 %v8583_v35  ;;  %6134 = vmatprep.subr.bf16.mxu1 %v8586_v50  ;;  %v8670_v35 = vld [vmem:[%s11643_s1 + $0x154c] ss:$16 sps:$4 sm:$0xff]   ;;  %v8665_v50 = vld [vmem:[%s11643_s1 + $0x1540] ss:$16 sps:$4 sm:$0xff]  }
 0x27f   : > { %5602 = vmatpush1.bf16.msra.mxu0 %v8581_v53  ;;  %6135 = vmatpush1.bf16.msra.mxu1 %v8584_v38  ;;  %v8668_v53 = vld [vmem:[%s11643_s1 + $0x1548] ss:$16 sps:$4 sm:$0xff]   ;;  %v8673_v38 = vld [vmem:[%s11643_s1 + $0x1564] ss:$16 sps:$4 sm:$0xff]  }
 0x280   : > { %5603 = vmatprep.subr.bf16.mxu0 %v8589_v54  ;;  %6136 = vmatprep.subr.bf16.mxu1 %v8592_v55  ;;  %v8676_v54 = vld [vmem:[%s11643_s1 + $0x156c] ss:$16 sps:$4 sm:$0xff]   ;;  %v8671_v55 = vld [vmem:[%s11643_s1 + $0x1560] ss:$16 sps:$4 sm:$0xff]  }
 0x283   : > { %5604 = vmatpush1.bf16.msra.mxu0 %v8587_v56  ;;  %6137 = vmatpush1.bf16.msra.mxu1 %v8590_v47  ;;  %v8674_v56 = vld [vmem:[%s11643_s1 + $0x1568] ss:$16 sps:$4 sm:$0xff]   ;;  %v8679_v47 = vld [vmem:[%s11643_s1 + $0x1584] ss:$16 sps:$4 sm:$0xff]  }
 0x284   : > { %5605 = vmatprep.subr.bf16.mxu0 %v8595_v57  ;;  %6138 = vmatprep.subr.bf16.mxu1 %v8598_v58  ;;  %v8682_v57 = vld [vmem:[%s11643_s1 + $0x158c] ss:$16 sps:$4 sm:$0xff]   ;;  %v8677_v58 = vld [vmem:[%s11643_s1 + $0x1580] ss:$16 sps:$4 sm:$0xff]  }
 0x287   : > { %5606 = vmatpush1.bf16.msra.mxu0 %v8593_v48  ;;  %6139 = vmatpush1.bf16.msra.mxu1 %v8596_v61  ;;  %v8685_v48 = vld [vmem:[%s11643_s1 + $0x15a4] ss:$16 sps:$4 sm:$0xff]   ;;  %v8688_v61 = vld [vmem:[%s11643_s1 + $0x15ac] ss:$16 sps:$4 sm:$0xff]  }
 0x288   : > { %5607 = vmatprep.subr.bf16.mxu0 %v8601_v63  ;;  %6140 = vmatprep.subr.bf16.mxu1 %v8604_v44  ;;  %v8683_v63 = vld [vmem:[%s11643_s1 + $0x15a0] ss:$16 sps:$4 sm:$0xff]   ;;  %v8686_v44 = vld [vmem:[%s11643_s1 + $0x15a8] ss:$16 sps:$4 sm:$0xff]  }
 0x28b   : > { %5608 = vmatpush1.bf16.msra.mxu0 %v8599_v1  ;;  %6141 = vmatpush1.bf16.msra.mxu1 %v8602_v51  ;;  %v8691_v1 = vld [vmem:[%s11643_s1 + $0x15c4] ss:$16 sps:$4 sm:$0xff]   ;;  %v8694_v51 = vld [vmem:[%s11643_s1 + $0x15cc] ss:$16 sps:$4 sm:$0xff]  }
 0x28c   : > { %5618 = vmatprep.subr.bf16.mxu0 %v8607_v2  ;;  %6151 = vmatprep.subr.bf16.mxu1 %v8610_v3  ;;  %v8689_v2 = vld [vmem:[%s11643_s1 + $0x15c0] ss:$16 sps:$4 sm:$0xff]   ;;  %v8692_v3 = vld [vmem:[%s11643_s1 + $0x15c8] ss:$16 sps:$4 sm:$0xff]  }
 0x28e   : > { %5610 = vmatmul.mubr.bf16.vlgmr.msra.gmra.mrb[0].mxu0 %v1221_v60  ;;  %6143 = vmatmul.mubr.bf16.vlgmr.msra.gmra.mrb[0].mxu1 %v1221_v60  ;;  %v8700_v60 = vld [vmem:[%s11643_s1 + $0x15ec] ss:$16 sps:$4 sm:$0xff]  }
 0x28f   : > { %5619 = vmatpush1.bf16.msra.mxu0 %v8605_v5  ;;  %6152 = vmatpush1.bf16.msra.mxu1 %v8608_v6  ;;  %v8695_v5 = vld [vmem:[%s11643_s1 + $0x15e0] ss:$16 sps:$4 sm:$0xff]   ;;  %v8698_v6 = vld [vmem:[%s11643_s1 + $0x15e8] ss:$16 sps:$4 sm:$0xff]  }
 0x290   : > { %5620 = vmatprep.subr.bf16.mxu0 %v8613_v7  ;;  %6153 = vmatprep.subr.bf16.mxu1 %v8616_v62  ;;  %v8704_v7 = vld [vmem:[%s11643_s1 + $0x1604] ss:$16 sps:$4 sm:$0xff]   ;;  %v8707_v62 = vld [vmem:[%s11643_s1 + $0x160c] ss:$16 sps:$4 sm:$0xff]  }
 0x291   : > { %5650 = vmatprep.mubr.bf16.mxu0 %v11059_v8  ;;  %6183 = vmatprep.mubr.bf16.mxu1 %v11059_v8 }
 0x293   : > { %5621 = vmatpush1.bf16.msra.mxu0 %v8611_v9  ;;  %6154 = vmatpush1.bf16.msra.mxu1 %v8614_v10  ;;  %v11245_v9 = vrot.slane %v11028_v0, %v9143_v49  ;;  %v8702_v10 = vld [vmem:[%s11643_s1 + $0x1600] ss:$16 sps:$4 sm:$0xff]   ;;  %v8713_v0 = vld [vmem:[%s11643_s1 + $0x162c] ss:$16 sps:$4 sm:$0xff]  }
 0x294   : > { %5622 = vmatprep.subr.bf16.mxu0 %v8619_v11  ;;  %6155 = vmatprep.subr.bf16.mxu1 %v8622_v12  ;;  %v8705_v11 = vld [vmem:[%s11643_s1 + $0x1608] ss:$16 sps:$4 sm:$0xff]   ;;  %v8710_v12 = vld [vmem:[%s11643_s1 + $0x1624] ss:$16 sps:$4 sm:$0xff]  }
 0x297   : > { %5623 = vmatpush1.bf16.msra.mxu0 %v8617_v52  ;;  %6156 = vmatpush1.bf16.msra.mxu1 %v8620_v15  ;;  %v1224_v52 = vcombine.high %v11059_v8, %v11059_v8  ;;  %v8708_v15 = vld [vmem:[%s11643_s1 + $0x1620] ss:$16 sps:$4 sm:$0xff]   ;;  %v8716_v8 = vld [vmem:[%s11643_s1 + $0x1644] ss:$16 sps:$4 sm:$0xff]  }
 0x298   : > { %5624 = vmatprep.subr.bf16.mxu0 %v8625_v16  ;;  %6157 = vmatprep.subr.bf16.mxu1 %v8628_v17  ;;  %v8711_v16 = vld [vmem:[%s11643_s1 + $0x1628] ss:$16 sps:$4 sm:$0xff]   ;;  %v8719_v17 = vld [vmem:[%s11643_s1 + $0x164c] ss:$16 sps:$4 sm:$0xff]  }
 0x29b   : > { %5625 = vmatpush1.bf16.msra.mxu0 %v8623_v18  ;;  %6158 = vmatpush1.bf16.msra.mxu1 %v8626_v19  ;;  %v8714_v18 = vld [vmem:[%s11643_s1 + $0x1640] ss:$16 sps:$4 sm:$0xff]   ;;  %v8717_v19 = vld [vmem:[%s11643_s1 + $0x1648] ss:$16 sps:$4 sm:$0xff]  }
 0x29c   : > { %5626 = vmatprep.subr.bf16.mxu0 %v8631_v20  ;;  %6159 = vmatprep.subr.bf16.mxu1 %v8634_v22  ;;  %v8722_v20 = vld [vmem:[%s11643_s1 + $0x1664] ss:$16 sps:$4 sm:$0xff]   ;;  %v8725_v22 = vld [vmem:[%s11643_s1 + $0x166c] ss:$16 sps:$4 sm:$0xff]  }
 0x29f   : > { %5627 = vmatpush1.bf16.msra.mxu0 %v8629_v23  ;;  %6160 = vmatpush1.bf16.msra.mxu1 %v8632_v24  ;;  %v8720_v23 = vld [vmem:[%s11643_s1 + $0x1660] ss:$16 sps:$4 sm:$0xff]   ;;  %v8723_v24 = vld [vmem:[%s11643_s1 + $0x1668] ss:$16 sps:$4 sm:$0xff]  }
 0x2a0   : > { %5628 = vmatprep.subr.bf16.mxu0 %v8637_v13  ;;  %6161 = vmatprep.subr.bf16.mxu1 %v8640_v27  ;;  %v8728_v13 = vld [vmem:[%s11643_s1 + $0x1684] ss:$16 sps:$4 sm:$0xff]   ;;  %v8731_v27 = vld [vmem:[%s11643_s1 + $0x168c] ss:$16 sps:$4 sm:$0xff]  }
 0x2a3   : > { %5629 = vmatpush1.bf16.msra.mxu0 %v8635_v28  ;;  %6162 = vmatpush1.bf16.msra.mxu1 %v8638_v29  ;;  %v8726_v28 = vld [vmem:[%s11643_s1 + $0x1680] ss:$16 sps:$4 sm:$0xff]   ;;  %v8729_v29 = vld [vmem:[%s11643_s1 + $0x1688] ss:$16 sps:$4 sm:$0xff]  }
 0x2a4   : > { %5630 = vmatprep.subr.bf16.mxu0 %v8643_v14  ;;  %6163 = vmatprep.subr.bf16.mxu1 %v8646_v30  ;;  %v8734_v14 = vld [vmem:[%s11643_s1 + $0x16a4] ss:$16 sps:$4 sm:$0xff]   ;;  %v8737_v30 = vld [vmem:[%s11643_s1 + $0x16ac] ss:$16 sps:$4 sm:$0xff]  }
 0x2a7   : > { %5631 = vmatpush1.bf16.msra.mxu0 %v8641_v31  ;;  %6164 = vmatpush1.bf16.msra.mxu1 %v8644_v25  ;;  %v8732_v31 = vld [vmem:[%s11643_s1 + $0x16a0] ss:$16 sps:$4 sm:$0xff]   ;;  %v8735_v25 = vld [vmem:[%s11643_s1 + $0x16a8] ss:$16 sps:$4 sm:$0xff]  }
 0x2a8   : > { %5632 = vmatprep.subr.bf16.mxu0 %v8649_v32  ;;  %6165 = vmatprep.subr.bf16.mxu1 %v8652_v33  ;;  %v8740_v32 = vld [vmem:[%s11643_s1 + $0x16c4] ss:$16 sps:$4 sm:$0xff]   ;;  %v8743_v33 = vld [vmem:[%s11643_s1 + $0x16cc] ss:$16 sps:$4 sm:$0xff]  }
 0x2ab   : > { %5633 = vmatpush1.bf16.msra.mxu0 %v8647_v26  ;;  %6166 = vmatpush1.bf16.msra.mxu1 %v8650_v36  ;;  %v8738_v26 = vld [vmem:[%s11643_s1 + $0x16c0] ss:$16 sps:$4 sm:$0xff]   ;;  %v8741_v36 = vld [vmem:[%s11643_s1 + $0x16c8] ss:$16 sps:$4 sm:$0xff]  }
 0x2ac   : > { %5634 = vmatprep.subr.bf16.mxu0 %v8655_v37  ;;  %6167 = vmatprep.subr.bf16.mxu1 %v8658_v21  ;;  %v8746_v37 = vld [vmem:[%s11643_s1 + $0x16e4] ss:$16 sps:$4 sm:$0xff]   ;;  %v8749_v21 = vld [vmem:[%s11643_s1 + $0x16ec] ss:$16 sps:$4 sm:$0xff]  }
 0x2af   : > { %5635 = vmatpush1.bf16.msra.mxu0 %v8653_v39  ;;  %6168 = vmatpush1.bf16.msra.mxu1 %v8656_v40  ;;  %v8744_v39 = vld [vmem:[%s11643_s1 + $0x16e0] ss:$16 sps:$4 sm:$0xff]   ;;  %v8747_v40 = vld [vmem:[%s11643_s1 + $0x16e8] ss:$16 sps:$4 sm:$0xff]  }
 0x2b0   : > { %5636 = vmatprep.subr.bf16.mxu0 %v8661_v41  ;;  %6169 = vmatprep.subr.bf16.mxu1 %v8664_v34  ;;  %v8752_v41 = vld [vmem:[%s11643_s1 + $0x1704] ss:$16 sps:$4 sm:$0xff]   ;;  %v8755_v34 = vld [vmem:[%s11643_s1 + $0x170c] ss:$16 sps:$4 sm:$0xff]  }
 0x2b3   : > { %5637 = vmatpush1.bf16.msra.mxu0 %v8659_v42  ;;  %6170 = vmatpush1.bf16.msra.mxu1 %v8662_v45  ;;  %v8750_v42 = vld [vmem:[%s11643_s1 + $0x1700] ss:$16 sps:$4 sm:$0xff]   ;;  %v8753_v45 = vld [vmem:[%s11643_s1 + $0x1708] ss:$16 sps:$4 sm:$0xff]  }
 0x2b4   : > { %5638 = vmatprep.subr.bf16.mxu0 %v8667_v46  ;;  %6171 = vmatprep.subr.bf16.mxu1 %v8670_v35  ;;  %v8758_v46 = vld [vmem:[%s11643_s1 + $0x1724] ss:$16 sps:$4 sm:$0xff]   ;;  %v8761_v35 = vld [vmem:[%s11643_s1 + $0x172c] ss:$16 sps:$4 sm:$0xff]  }
 0x2b7   : > { %5639 = vmatpush1.bf16.msra.mxu0 %v8665_v50  ;;  %6172 = vmatpush1.bf16.msra.mxu1 %v8668_v53  ;;  %v8756_v50 = vld [vmem:[%s11643_s1 + $0x1720] ss:$16 sps:$4 sm:$0xff]   ;;  %v8759_v53 = vld [vmem:[%s11643_s1 + $0x1728] ss:$16 sps:$4 sm:$0xff]  }
 0x2b8   : > { %5640 = vmatprep.subr.bf16.mxu0 %v8673_v38  ;;  %6173 = vmatprep.subr.bf16.mxu1 %v8676_v54  ;;  %v8764_v38 = vld [vmem:[%s11643_s1 + $0x1744] ss:$16 sps:$4 sm:$0xff]   ;;  %v8767_v54 = vld [vmem:[%s11643_s1 + $0x174c] ss:$16 sps:$4 sm:$0xff]  }
 0x2bb   : > { %5641 = vmatpush1.bf16.msra.mxu0 %v8671_v55  ;;  %6174 = vmatpush1.bf16.msra.mxu1 %v8674_v56  ;;  %v8762_v55 = vld [vmem:[%s11643_s1 + $0x1740] ss:$16 sps:$4 sm:$0xff]   ;;  %v8765_v56 = vld [vmem:[%s11643_s1 + $0x1748] ss:$16 sps:$4 sm:$0xff]  }
 0x2bc   : > { %5642 = vmatprep.subr.bf16.mxu0 %v8679_v47  ;;  %6175 = vmatprep.subr.bf16.mxu1 %v8682_v57  ;;  %v8770_v47 = vld [vmem:[%s11643_s1 + $0x1764] ss:$16 sps:$4 sm:$0xff]   ;;  %v8773_v57 = vld [vmem:[%s11643_s1 + $0x176c] ss:$16 sps:$4 sm:$0xff]  }
 0x2bf   : > { %5643 = vmatpush1.bf16.msra.mxu0 %v8677_v58  ;;  %6176 = vmatpush1.bf16.msra.mxu1 %v8680_v59  ;;  %v8768_v58 = vld [vmem:[%s11643_s1 + $0x1760] ss:$16 sps:$4 sm:$0xff]   ;;  %v8771_v59 = vld [vmem:[%s11643_s1 + $0x1768] ss:$16 sps:$4 sm:$0xff]  }
 0x2c0   : > { %5644 = vmatprep.subr.bf16.mxu0 %v8685_v48  ;;  %6177 = vmatprep.subr.bf16.mxu1 %v8688_v61  ;;  %v8776_v48 = vld [vmem:[%s11643_s1 + $0x1784] ss:$16 sps:$4 sm:$0xff]   ;;  %v8779_v61 = vld [vmem:[%s11643_s1 + $0x178c] ss:$16 sps:$4 sm:$0xff]  }
 0x2c3   : > { %5645 = vmatpush1.bf16.msra.mxu0 %v8683_v63  ;;  %6178 = vmatpush1.bf16.msra.mxu1 %v8686_v44  ;;  %v8774_v63 = vld [vmem:[%s11643_s1 + $0x1780] ss:$16 sps:$4 sm:$0xff]   ;;  %v8777_v44 = vld [vmem:[%s11643_s1 + $0x1788] ss:$16 sps:$4 sm:$0xff]  }
 0x2c4   : > { %5646 = vmatprep.subr.bf16.mxu0 %v8691_v1  ;;  %6179 = vmatprep.subr.bf16.mxu1 %v8694_v51  ;;  %v8782_v1 = vld [vmem:[%s11643_s1 + $0x17a4] ss:$16 sps:$4 sm:$0xff]   ;;  %v8785_v51 = vld [vmem:[%s11643_s1 + $0x17ac] ss:$16 sps:$4 sm:$0xff]  }
 0x2c7   : > { %5647 = vmatpush1.bf16.msra.mxu0 %v8689_v2  ;;  %6180 = vmatpush1.bf16.msra.mxu1 %v8692_v3  ;;  %v8780_v2 = vld [vmem:[%s11643_s1 + $0x17a0] ss:$16 sps:$4 sm:$0xff]   ;;  %v8783_v3 = vld [vmem:[%s11643_s1 + $0x17a8] ss:$16 sps:$4 sm:$0xff]  }
 0x2c8   : > { %5648 = vmatprep.subr.bf16.mxu0 %v8697_v4  ;;  %6181 = vmatprep.subr.bf16.mxu1 %v8700_v60  ;;  %v8788_v4 = vld [vmem:[%s11643_s1 + $0x17c4] ss:$16 sps:$4 sm:$0xff]   ;;  %v8791_v60 = vld [vmem:[%s11643_s1 + $0x17cc] ss:$16 sps:$4 sm:$0xff]  }
 0x2cb   : > { %5649 = vmatpush1.bf16.msra.mxu0 %v8695_v5  ;;  %6182 = vmatpush1.bf16.msra.mxu1 %v8698_v6  ;;  %v8786_v5 = vld [vmem:[%s11643_s1 + $0x17c0] ss:$16 sps:$4 sm:$0xff]   ;;  %v8789_v6 = vld [vmem:[%s11643_s1 + $0x17c8] ss:$16 sps:$4 sm:$0xff]  }
 0x2cc   : > { %5659 = vmatprep.subr.bf16.mxu0 %v8704_v7  ;;  %6192 = vmatprep.subr.bf16.mxu1 %v8707_v62  ;;  %v8794_v7 = vld [vmem:[%s11643_s1 + $0x17e4] ss:$16 sps:$4 sm:$0xff]   ;;  %v8797_v62 = vld [vmem:[%s11643_s1 + $0x17ec] ss:$16 sps:$4 sm:$0xff]  }
 0x2ce   : > { %5651 = vmatmul.mubr.bf16.vlgmr.msra.gmra.mrb[0].mxu0 %v11245_v9  ;;  %6184 = vmatmul.mubr.bf16.vlgmr.msra.gmra.mrb[0].mxu1 %v11245_v9 }
 0x2cf   : > { %5660 = vmatpush1.bf16.msra.mxu0 %v8702_v10  ;;  %6193 = vmatpush1.bf16.msra.mxu1 %v8705_v11  ;;  %v8792_v10 = vld [vmem:[%s11643_s1 + $0x17e0] ss:$16 sps:$4 sm:$0xff]   ;;  %v8795_v11 = vld [vmem:[%s11643_s1 + $0x17e8] ss:$16 sps:$4 sm:$0xff]  }
 0x2d0   : > { %5661 = vmatprep.subr.bf16.mxu0 %v8710_v12  ;;  %6194 = vmatprep.subr.bf16.mxu1 %v8713_v0  ;;  %v8800_v12 = vld [vmem:[%s11643_s1 + $0x1804] ss:$16 sps:$4 sm:$0xff]   ;;  %v8803_v0 = vld [vmem:[%s11643_s1 + $0x180c] ss:$16 sps:$4 sm:$0xff]  }
 0x2d1   : > { %5691 = vmatprep.mubr.bf16.mxu0 %v1224_v52  ;;  %6224 = vmatprep.mubr.bf16.mxu1 %v1224_v52  ;;  %v1222_v52 = vcombine.high %v11245_v9, %v11245_v9  ;;  %v8809_v9 = vld [vmem:[%s11643_s1 + $0x182c] ss:$16 sps:$4 sm:$0xff]  }
 0x2d3   : > { %5662 = vmatpush1.bf16.msra.mxu0 %v8708_v15  ;;  %6195 = vmatpush1.bf16.msra.mxu1 %v8711_v16  ;;  %v8798_v15 = vld [vmem:[%s11643_s1 + $0x1800] ss:$16 sps:$4 sm:$0xff]   ;;  %v8801_v16 = vld [vmem:[%s11643_s1 + $0x1808] ss:$16 sps:$4 sm:$0xff]  }
 0x2d4   : > { %5663 = vmatprep.subr.bf16.mxu0 %v8716_v8  ;;  %6196 = vmatprep.subr.bf16.mxu1 %v8719_v17  ;;  %v8806_v8 = vld [vmem:[%s11643_s1 + $0x1824] ss:$16 sps:$4 sm:$0xff]   ;;  %v8804_v17 = vld [vmem:[%s11643_s1 + $0x1820] ss:$16 sps:$4 sm:$0xff]  }
 0x2d7   : > { %5664 = vmatpush1.bf16.msra.mxu0 %v8714_v18  ;;  %6197 = vmatpush1.bf16.msra.mxu1 %v8717_v19  ;;  %v8807_v18 = vld [vmem:[%s11643_s1 + $0x1828] ss:$16 sps:$4 sm:$0xff]   ;;  %v8812_v19 = vld [vmem:[%s11643_s1 + $0x1844] ss:$16 sps:$4 sm:$0xff]  }
 0x2d8   : > { %5665 = vmatprep.subr.bf16.mxu0 %v8722_v20  ;;  %6198 = vmatprep.subr.bf16.mxu1 %v8725_v22  ;;  %v8815_v20 = vld [vmem:[%s11643_s1 + $0x184c] ss:$16 sps:$4 sm:$0xff]   ;;  %v8921_v22 = vmov 0  }
 0x2db   : > { %5666 = vmatpush1.bf16.msra.mxu0 %v8720_v23  ;;  %6199 = vmatpush1.bf16.msra.mxu1 %v8723_v24  ;;  %v8810_v23 = vld [vmem:[%s11643_s1 + $0x1840] ss:$16 sps:$4 sm:$0xff]   ;;  %v8813_v24 = vld [vmem:[%s11643_s1 + $0x1848] ss:$16 sps:$4 sm:$0xff]  }
 0x2dc   : > { %5667 = vmatprep.subr.bf16.mxu0 %v8728_v13  ;;  %6200 = vmatprep.subr.bf16.mxu1 %v8731_v27  ;;  %v8818_v13 = vld [vmem:[%s11643_s1 + $0x1864] ss:$16 sps:$4 sm:$0xff]   ;;  %v8821_v27 = vld [vmem:[%s11643_s1 + $0x186c] ss:$16 sps:$4 sm:$0xff]  }
 0x2df   : > { %5668 = vmatpush1.bf16.msra.mxu0 %v8726_v28  ;;  %6201 = vmatpush1.bf16.msra.mxu1 %v8729_v29  ;;  %v8816_v28 = vld [vmem:[%s11643_s1 + $0x1860] ss:$16 sps:$4 sm:$0xff]   ;;  %v8819_v29 = vld [vmem:[%s11643_s1 + $0x1868] ss:$16 sps:$4 sm:$0xff]  }
 0x2e0   : > { %5669 = vmatprep.subr.bf16.mxu0 %v8734_v14  ;;  %6202 = vmatprep.subr.bf16.mxu1 %v8737_v30  ;;  %v6635_v14 = vld.sshfl [vmem:[%s9140_s17 + $0x18] sm:$0x1 pattern:$0x75316420]  ;;  %v8822_v30 = vld [vmem:[%s11645_s3 + $0x40] sm:$0xff]   ;;  %s214_s17 = scalar_lea.vmem [#allocation2], %s213_s14 }
 0x2e1   : > { %s6576_s25 = sshll.u32 %s214_s17, 4  ;;  %s11602_s25 = int_to_ptr.vmem [resolvable:$true] %s6576_s25 }
 0x2e2   : > { %s8856_s8 = scalar_lea.vmem %s11602_s25, 16  ;;  %p8863_p0 = scmp.lt.s32.totalorder %s11602_s25, %s8861_s9 }
 0x2e3   : > { %5670 = vmatpush1.bf16.msra.mxu0 %v8732_v31  ;;  %6203 = vmatpush1.bf16.msra.mxu1 %v8735_v25  ;;  %v8823_v31 = vld [vmem:[%s11645_s3 + $0xc0] sm:$0xff]   ;;  %v1238_v25 = vrot.slane %v6635_v14, %v9143_v49  ;;  %v8827_v49 = vld [vmem:[%s11645_s3 + $0xc8] sm:$0xff]   ;;  %p8857_p11 = scmp.ne.s32.totalorder %s11602_s25, %s8856_s8  ;;  %p8864_p1 = scmp.lt.s32.totalorder %s8862_s10, %s8856_s8 }
 0x2e4   : > { %5671 = vmatprep.subr.bf16.mxu0 %v8740_v32  ;;  %6204 = vmatprep.subr.bf16.mxu1 %v8743_v33  ;;  %v8824_v32 = vld [vmem:[%s11645_s3] sm:$0xff]  }
 0x2e5   : > { %v8825_v33 = vld [vmem:[%s11645_s3 + $0x80] sm:$0xff]   ;;  %p8858_p12 = pnand %p8857_p11, %p8991_p5  ;;  %p8865_p2 = por %p8864_p1, %p8863_p0 }
 0x2e7   : > { %5672 = vmatpush1.bf16.msra.mxu0 %v8738_v26  ;;  %6205 = vmatpush1.bf16.msra.mxu1 %v8741_v36  ;;  %v8826_v26 = vld [vmem:[%s11645_s3 + $0x48] sm:$0xff]   ;;  %p8859_p13 = pneg %p8858_p12 }
 0x2e8   : > { %5673 = vmatprep.subr.bf16.mxu0 %v8746_v37  ;;  %6206 = vmatprep.subr.bf16.mxu1 %v8749_v21  ;;  %v8828_v36 = vld [vmem:[%s11645_s3 + $0x8] sm:$0xff]   ;;  %v8830_v21 = vld [vmem:[%s11645_s3 + $0x50] sm:$0xff]  }
 0x2e9   : > { %v8829_v37 = vld [vmem:[%s11645_s3 + $0x88] sm:$0xff]   ;;  %p8866_p3 = pnand %p8865_p2, %p8859_p13 }
 0x2eb   : > { %5674 = vmatpush1.bf16.msra.mxu0 %v8744_v39  ;;  %6207 = vmatpush1.bf16.msra.mxu1 %v8747_v40  ;;  %v8831_v39 = vld [vmem:[%s11645_s3 + $0xd0] sm:$0xff]  }
 0x2ec   : > { %5675 = vmatprep.subr.bf16.mxu0 %v8752_v41  ;;  %6208 = vmatprep.subr.bf16.mxu1 %v8755_v34  ;;  %v8832_v40 = vld [vmem:[%s11645_s3 + $0x10] sm:$0xff]   ;;  %v8834_v34 = vld [vmem:[%s11645_s3 + $0x58] sm:$0xff]  }
 0x2ed   : > { %v8833_v41 = vld [vmem:[%s11645_s3 + $0x90] sm:$0xff]  }
 0x2ef   : > { %5676 = vmatpush1.bf16.msra.mxu0 %v8750_v42  ;;  %6209 = vmatpush1.bf16.msra.mxu1 %v8753_v45  ;;  %v8835_v42 = vld [vmem:[%s11645_s3 + $0xd8] sm:$0xff]  }
 0x2f0   : > { %5677 = vmatprep.subr.bf16.mxu0 %v8758_v46  ;;  %6210 = vmatprep.subr.bf16.mxu1 %v8761_v35  ;;  %v8836_v45 = vld [vmem:[%s11645_s3 + $0x18] sm:$0xff]   ;;  %v8838_v35 = vld [vmem:[%s11645_s3 + $0x60] sm:$0xff]  }
 0x2f1   : > { %v8837_v46 = vld [vmem:[%s11645_s3 + $0x98] sm:$0xff]  }
 0x2f3   : > { %5678 = vmatpush1.bf16.msra.mxu0 %v8756_v50  ;;  %6211 = vmatpush1.bf16.msra.mxu1 %v8759_v53  ;;  %v8839_v50 = vld [vmem:[%s11645_s3 + $0xe0] sm:$0xff]  }
 0x2f4   : > { %5679 = vmatprep.subr.bf16.mxu0 %v8764_v38  ;;  %6212 = vmatprep.subr.bf16.mxu1 %v8767_v54  ;;  %v8840_v53 = vld [vmem:[%s11645_s3 + $0x20] sm:$0xff]   ;;  %v8842_v54 = vld [vmem:[%s11645_s3 + $0x68] sm:$0xff]  }
 0x2f5   : > { %v8841_v38 = vld [vmem:[%s11645_s3 + $0xa0] sm:$0xff]  }
 0x2f7   : > { %5680 = vmatpush1.bf16.msra.mxu0 %v8762_v55  ;;  %6213 = vmatpush1.bf16.msra.mxu1 %v8765_v56  ;;  %v8843_v55 = vld [vmem:[%s11645_s3 + $0xe8] sm:$0xff]  }
 0x2f8   : > { %5681 = vmatprep.subr.bf16.mxu0 %v8770_v47  ;;  %6214 = vmatprep.subr.bf16.mxu1 %v8773_v57  ;;  %v8844_v56 = vld [vmem:[%s11645_s3 + $0x28] sm:$0xff]   ;;  %v8846_v57 = vld [vmem:[%s11645_s3 + $0x70] sm:$0xff]  }
 0x2f9   : > { %v8845_v47 = vld [vmem:[%s11645_s3 + $0xa8] sm:$0xff]  }
 0x2fb   : > { %5682 = vmatpush1.bf16.msra.mxu0 %v8768_v58  ;;  %6215 = vmatpush1.bf16.msra.mxu1 %v8771_v59  ;;  %v8847_v58 = vld [vmem:[%s11645_s3 + $0xf0] sm:$0xff]  }
 0x2fc   : > { %5683 = vmatprep.subr.bf16.mxu0 %v8776_v48  ;;  %6216 = vmatprep.subr.bf16.mxu1 %v8779_v61  ;;  %v8848_v59 = vld [vmem:[%s11645_s3 + $0x30] sm:$0xff]   ;;  %v8850_v61 = vld [vmem:[%s11645_s3 + $0x78] sm:$0xff]  }
 0x2fd   : > { %v8849_v48 = vld [vmem:[%s11645_s3 + $0xb0] sm:$0xff]  }
 0x2ff   : > { %5684 = vmatpush1.bf16.msra.mxu0 %v8774_v63  ;;  %6217 = vmatpush1.bf16.msra.mxu1 %v8777_v44  ;;  %v8851_v63 = vld [vmem:[%s11645_s3 + $0xf8] sm:$0xff]  }
 0x300   : > { %5685 = vmatprep.subr.bf16.mxu0 %v8782_v1  ;;  %6218 = vmatprep.subr.bf16.mxu1 %v8785_v51  ;;  %v8852_v44 = vld [vmem:[%s11645_s3 + $0x38] sm:$0xff]   ;;  %v5186_v51 = vsub.s32 0, %v9120_v43 }
 0x301   : > { %v8853_v1 = vld [vmem:[%s11645_s3 + $0xb8] sm:$0xff]  }
 0x303   : > { %5686 = vmatpush1.bf16.msra.mxu0 %v8780_v2  ;;  %6219 = vmatpush1.bf16.msra.mxu1 %v8783_v3  ;;  %v5194_v2 = vsub.s32 2, %v9120_v43  ;;  %v1004_v3 = vld [vmem:[%s11644_s2] sm:$0xf] }
 0x304   : > { %5687 = vmatprep.subr.bf16.mxu0 %v8788_v4  ;;  %6220 = vmatprep.subr.bf16.mxu1 %v8791_v60  ;;  %v5190_v4 = vsub.s32 1, %v9120_v43  ;;  %v5198_v60 = vsub.s32 3, %v9120_v43 }
 0x307   : > { %5688 = vmatpush1.bf16.msra.mxu0 %v8786_v5  ;;  %6221 = vmatpush1.bf16.msra.mxu1 %v8789_v6  ;;  %v5187_v5 = vrot.slane %v1004_v3, %v5186_v51  ;;  %v5195_v6 = vrot.slane %v1004_v3, %v5194_v2 }
 0x308   : > { %5689 = vmatprep.subr.bf16.mxu0 %v8794_v7  ;;  %6222 = vmatprep.subr.bf16.mxu1 %v8797_v62  ;;  %v5191_v7 = vrot.slane %v1004_v3, %v5190_v4  ;;  %v5199_v62 = vrot.slane %v1004_v3, %v5198_v60 }
 0x30b   : > { %5690 = vmatpush1.bf16.msra.mxu0 %v8792_v10  ;;  %6223 = vmatpush1.bf16.msra.mxu1 %v8795_v11 }
 0x30c   : > { %5700 = vmatprep.subr.bf16.mxu0 %v8800_v12  ;;  %6233 = vmatprep.subr.bf16.mxu1 %v8803_v0 }
 0x30e   : > { %5692 = vmatmul.mubr.bf16.vlgmr.msra.gmra.mrb[0].mxu0 %v1222_v52  ;;  %6225 = vmatmul.mubr.bf16.vlgmr.msra.gmra.mrb[0].mxu1 %v1222_v52 }
 0x30f   : > { %5701 = vmatpush1.bf16.msra.mxu0 %v8798_v15  ;;  %6234 = vmatpush1.bf16.msra.mxu1 %v8801_v16 }
 0x310   : > { %5702 = vmatprep.subr.bf16.mxu0 %v8806_v8  ;;  %6235 = vmatprep.subr.bf16.mxu1 %v8809_v9 }
 0x311   : > { %5732 = vmatprep.mubr.bf16.mxu0 %v8921_v22  ;;  %6265 = vmatprep.mubr.bf16.mxu1 %v8921_v22 }
 0x313   : > { %5703 = vmatpush1.bf16.msra.mxu0 %v8804_v17  ;;  %6236 = vmatpush1.bf16.msra.mxu1 %v8807_v18 }
 0x314   : > { %5704 = vmatprep.subr.bf16.mxu0 %v8812_v19  ;;  %6237 = vmatprep.subr.bf16.mxu1 %v8815_v20 }
 0x317   : > { %5705 = vmatpush1.bf16.msra.mxu0 %v8810_v23  ;;  %6238 = vmatpush1.bf16.msra.mxu1 %v8813_v24 }
 0x318   : > { %5706 = vmatprep.subr.bf16.mxu0 %v8818_v13  ;;  %6239 = vmatprep.subr.bf16.mxu1 %v8821_v27 }
 0x31b   : > { %5707 = vmatpush1.bf16.msra.mxu0 %v8816_v28  ;;  %6240 = vmatpush1.bf16.msra.mxu1 %v8819_v29 }
 0x31c   : > { %7457 = vmatprep.subr.bf16.mxu0 %v8822_v30  ;;  %7479 = vmatprep.subr.bf16.mxu1 %v8823_v31 }
 0x31e   : > { %7420 = vmatmul.mubr.msk.bf16.vlgmr.msra.gmra.mrb[0].mxu0 %vm5204_vm0, %v1238_v25  ;;  %7421 = vmatmul.mubr.msk.bf16.vlgmr.msra.gmra.mrb[0].mxu1 %vm5204_vm0, %v1238_v25 }
 0x31f   : > { %7458 = vmatpush3.bf16.msra.mxu0 %v8824_v32  ;;  %7480 = vmatpush3.bf16.msra.mxu1 %v8825_v33  ;;  %v1069_v33 = vld [vmem:[%s11646_s4] sm:$0x1] }
 0x320   : > { %7459 = vmatprep.subr.bf16.mxu0 %v8826_v26  ;;  %7481 = vmatprep.subr.bf16.mxu1 %v8827_v49 }
 0x323   : > { %7460 = vmatpush3.bf16.msra.mxu0 %v8828_v36  ;;  %7482 = vmatpush3.bf16.msra.mxu1 %v8829_v37 }
 0x324   : > { %7461 = vmatprep.subr.bf16.mxu0 %v8830_v21  ;;  %7483 = vmatprep.subr.bf16.mxu1 %v8831_v39 }
 0x327   : > { %7462 = vmatpush3.bf16.msra.mxu0 %v8832_v40  ;;  %7484 = vmatpush3.bf16.msra.mxu1 %v8833_v41 }
 0x328   : > { %7463 = vmatprep.subr.bf16.mxu0 %v8834_v34  ;;  %7485 = vmatprep.subr.bf16.mxu1 %v8835_v42 }
 0x32b   : > { %7464 = vmatpush3.bf16.msra.mxu0 %v8836_v45  ;;  %7486 = vmatpush3.bf16.msra.mxu1 %v8837_v46 }
 0x32c   : > { %7465 = vmatprep.subr.bf16.mxu0 %v8838_v35  ;;  %7487 = vmatprep.subr.bf16.mxu1 %v8839_v50 }
 0x32f   : > { %7466 = vmatpush3.bf16.msra.mxu0 %v8840_v53  ;;  %7488 = vmatpush3.bf16.msra.mxu1 %v8841_v38 }
 0x330   : > { %7467 = vmatprep.subr.bf16.mxu0 %v8842_v54  ;;  %7489 = vmatprep.subr.bf16.mxu1 %v8843_v55 }
 0x333   : > { %7468 = vmatpush3.bf16.msra.mxu0 %v8844_v56  ;;  %7490 = vmatpush3.bf16.msra.mxu1 %v8845_v47 }
 0x334   : > { %7469 = vmatprep.subr.bf16.mxu0 %v8846_v57  ;;  %7491 = vmatprep.subr.bf16.mxu1 %v8847_v58 }
 0x337   : > { %7470 = vmatpush3.bf16.msra.mxu0 %v8848_v59  ;;  %7492 = vmatpush3.bf16.msra.mxu1 %v8849_v48 }
 0x338   : > { %7471 = vmatprep.subr.bf16.mxu0 %v8850_v61  ;;  %7493 = vmatprep.subr.bf16.mxu1 %v8851_v63 }
 0x33b   : > { %7472 = vmatpush3.bf16.msra.mxu0 %v8852_v44  ;;  %7494 = vmatpush3.bf16.msra.mxu1 %v8853_v1 }
 0x3f1   : > { %v5734_v10 = vpop.f32.mrb[0].mxu0  ;;  %v6267_v11 = vpop.f32.mrb[0].mxu1 }
 0x3f2   : > { %v7501_v12 = vadd.f32 %v5734_v10, %v5187_v5  ;;  %v7503_v0 = vadd.f32 %v6267_v11, %v5195_v6  ;;  %v5736_v52 = vpop.f32.mrb[1].mxu0  ;;  %v6269_v15 = vpop.f32.mrb[1].mxu1 }
 0x3f3   : > { %v7502_v16 = vadd.f32 %v5736_v52, %v5191_v7  ;;  %v7504_v8 = vadd.f32 %v6269_v15, %v5199_v62  ;;  %v5738_v9 = vpop.f32.mrb[2].mxu0  ;;  %v6271_v17 = vpop.f32.mrb[2].mxu1 }
 0x3f4   : > { %vm6274_vm1 = vcmp.gt.f32.partialorder %v7501_v12, 0.0  ;;  %v6278_v18 = vmul.f32 0.01, %v7501_v12  ;;  %vm6276_vm2 = vcmp.gt.f32.partialorder %v7503_v0, 0.0  ;;  %v6280_v19 = vmul.f32 0.01, %v7503_v0 }
 0x3f5   : > { %vm6275_vm3 = vcmp.gt.f32.partialorder %v7502_v16, 0.0  ;;  %v6279_v43 = vmul.f32 0.01, %v7502_v16  ;;  %vm6277_vm4 = vcmp.gt.f32.partialorder %v7504_v8, 0.0  ;;  %v6281_v20 = vmul.f32 0.01, %v7504_v8 }
 0x3f6   : > { %v6282_v22 = vsel %vm6274_vm1, %v7501_v12, %v6278_v18  ;;  %v6284_v23 = vsel %vm6276_vm2, %v7503_v0, %v6280_v19  ;;  %v5739_v24 = vpop.f32.mrb[3].mxu0  ;;  %v6272_v13 = vpop.f32.mrb[3].mxu1 }
 0x3f7   : > { %v6283_v27 = vsel %vm6275_vm3, %v7502_v16, %v6279_v43  ;;  %v6285_v28 = vsel %vm6277_vm4, %v7504_v8, %v6281_v20  ;;  %v6286_v30 = vpack.c.bf16 %v6282_v22, %v6282_v22  ;;  %v6288_v31 = vpack.c.bf16 %v6284_v23, %v6284_v23 }
 0x3f8   : > { %v6287_v29 = vpack.c.bf16 %v6283_v27, %v6283_v27  ;;  %v6289_v14 = vpack.c.bf16 %v6285_v28, %v6285_v28 }
 0x3fa   : > { %6514 = vmatprep.mubr.bf16.mxu0 %v6287_v29  ;;  %6554 = vmatprep.mubr.bf16.mxu1 %v6289_v14 }
 0x3fb   : > { %6515 = vmatmul.mubr.bf16.vlgmr.msra.gmra.mrb[4].mxu0 %v6286_v30  ;;  %6555 = vmatmul.mubr.bf16.vlgmr.msra.gmra.mrb[4].mxu1 %v6288_v31 }
 0x4ce   : > { %v7473_v25 = vpop.f32.mrb[4].mxu0  ;;  %v7495_v32 = vpop.f32.mrb[4].mxu1 }
 0x4cf   : > { %v7474_v26 = vpop.f32.mrb[5].mxu0  ;;  %v7496_v49 = vpop.f32.mrb[5].mxu1 }
 0x4d0   : > { %v7475_v36 = vadd.f32 %v7474_v26, %v7473_v25  ;;  %v7497_v37 = vadd.f32 %v7496_v49, %v7495_v32  ;;  %v7476_v21 = vpop.f32.mrb[6].mxu0  ;;  %v7498_v39 = vpop.f32.mrb[6].mxu1 }
 0x4d1   : > { %v7477_v40 = vpop.f32.mrb[7].mxu0  ;;  %v7499_v41 = vpop.f32.mrb[7].mxu1 }
 0x4d2   : > { %v6517_v34 = vadd.f32 %v7475_v36, %v1069_v33 }
 0x4d4   : > { %v6557_v42 = vadd.f32 %v7497_v37, %v6517_v34 }
 0x4d6   : > { %6562 = vst [vmem:[%s214_s17] sm:$0x1] %v6557_v42 }
 0x4d7   : > { %8869 = shalt.err (!%p8866_p3)
}
 0x4d8   : > { %s8870_s11 = scalar_lea.hbm %s11600_s26, 16  ;;  %s8874_s14 = scalar_lea.hbm %s11647_s5, 32 }
 0x4d9   : > { %p8871_p4 = scmp.ne.s32.totalorder %s11600_s26, %s8870_s11  ;;  %p8875_p9 = scmp.lt.u32.totalorder %s11600_s26, %s11647_s5 }
 0x4da   : > { %p8876_p10 = scmp.lt.u32.totalorder %s8874_s14, %s8870_s11  ;;  %p8878_p12 = scmp.lt.u32.totalorder %s8870_s11, %s11600_s26 }
 0x4db   : > { %p8872_p7 = pnand %p8871_p4, %p8991_p5 }
 0x4dc   : > { %p8877_p11 = por %p8876_p10, %p8875_p9 }
 0x4dd   : > { %p8873_p8 = pneg %p8872_p7 }
 0x4de   : > { %p8879_p13 = por %p8878_p12, %p8877_p11 }
 0x4e0   : > { %p8880_p0 = pnand %p8879_p13, %p8873_p8 }
 0x4e2   : > { %8883 = shalt.err (!%p8880_p0)
}
 0x4e3   : > { %7602 = dma.vmem_to_hbm [thread:$0]  (%p8991_p5), %s11602_s25, 16, %s11600_s26, %s6564_s7  }
 0x4e4 PF: > { %p7608_p1 = scmp.ge.s32.totalorder %s8918_s21, 2  ;;  %s6588_s23 = sand.u32 1, %s8906_s18  }
 0x4e5   : > { %s6589_s17 = scalar_lea.sflag [#allocation3], %s6588_s23 }
 0x4e6   : > { %p7605_p2 = pnand %p7608_p1, %p8995_p6 }
 0x4e8   : > { %8901 = dma.done.wait (!%p7605_p2), %s6589_s17, 16  }
 0x4e9   : > { %8903 = vsyncadd (!%p7605_p2), %s6589_s17, 4294967280  ;;  %p15_p3 = scmp.ge.s32.totalorder %s8978_s24, 4   ;;  %s11650_s18 = smov %s8910_s19 }
 0x4ea   : > { %s11651_s19 = smov %s8914_s20  ;;  %s11652_s20 = smov %s8989_s27 }
 0x4eb   : > { %s11653_s21 = smov %s8978_s24  ;;  %17 = sbr.rel (!%p15_p3) target bundleno = 3 (0x3), region = 75 }
 0x4f2   :  { %6593 = vsyncpa [#allocation3], 1 }
 0x4f3   :  { %6595 = vsyncpa [#allocation3 + $0x1], 1 }

</bundles_post_ra>
